<compile_context>
chip_gen: v7x
topology: tpu7x:2x2x1
jax: 0.10.0
libtpu: 0.0.40
codegen_flags: <defaults>
</compile_context>

<pallas_src>
import functools

import jax
import jax.numpy as jnp
from jax.experimental import pallas as pl
from jax.experimental.pallas import tpu as pltpu

COMPUTE_DTYPE = jnp.bfloat16   # MXU operand / activation dtype (accumulate in f32)
_TM_CAP = 256                  # rows per M tile (multiple of 16 for bf16 packing)
_TN = 128                      # cols per N tile
# TODO(synk): at real ResNet50 channel counts (N >= 256) switch tn to 256 on
# v6e/v7x (256-wide MXU) and keep tn=128 on v5e; irrelevant at these toy widths.
_BN_EPS = 1e-5


def _round_up(x, m):
    return ((x + m - 1) // m) * m


def _detect_tc_per_chip():
    """2 TensorCores per chip on v7x; 1 on v5e/v6e (unknown -> 1)."""
    try:
        kind = jax.devices()[0].device_kind.lower()
    except Exception:
        return 1
    return 2 if "v7" in kind else 1


def _vmem_cap_bytes():
    """Generation-aware vmem_limit cap: never more than half of physical VMEM."""
    try:
        cap = int(pltpu.get_tpu_info().vmem_capacity_bytes)
    except Exception:
        cap = 128 * 1024 * 1024
    return int(min(cap // 2, 48 * 1024 * 1024))


_TC_PER_CHIP = _detect_tc_per_chip()
_VMEM_CAP = _vmem_cap_bytes()


# ---------------------------- Pallas kernels ----------------------------

def _mm_fused_kernel(x_ref, w_ref, s_ref, b_ref, *refs,
                     relu_blocks, n_col_blocks, has_res):
    """One (tm, K) @ (K, tn) GEMM tile with fused BN affine, optional bf16
    residual add (in f32) and per-column-band ReLU.  K is a single full-extent
    block: no reduction grid axis, no accumulator scratch."""
    out_ref = refs[-1]
    acc = jnp.dot(x_ref[...], w_ref[...], preferred_element_type=jnp.float32)
    y = acc * s_ref[...] + b_ref[...]
    if has_res:
        y = y + refs[0][...].astype(jnp.float32)
    if relu_blocks >= n_col_blocks:            # ReLU on every column band
        out_ref[...] = jnp.maximum(y, 0.0).astype(out_ref.dtype)
    elif relu_blocks == 0:                     # no ReLU anywhere
        out_ref[...] = y.astype(out_ref.dtype)
    else:                                      # ReLU only on leading bands (merged 1x1s)
        out_ref[...] = y.astype(out_ref.dtype)

        @pl.when(pl.program_id(1) < relu_blocks)
        def _():
            out_ref[...] = jnp.maximum(y, 0.0).astype(out_ref.dtype)


def _maxpool_kernel(ee_ref, eo_ref, oe_ref, oo_ref, out_ref):
    """3x3 / stride-2 max pool over parity-split inputs (no 9x window stack).

    ee/eo/oe/oo are the (even/odd row) x (even/odd col) planes of the padded
    map; each 3x3 window is the max of 9 plain (unstrided) slices of them."""
    Ho, Wo = out_ref.shape[1], out_ref.shape[2]
    taps = (
        ee_ref[:, 0:Ho, 0:Wo, :],     eo_ref[:, 0:Ho, 0:Wo, :],     ee_ref[:, 0:Ho, 1:Wo + 1, :],
        oe_ref[:, 0:Ho, 0:Wo, :],     oo_ref[:, 0:Ho, 0:Wo, :],     oe_ref[:, 0:Ho, 1:Wo + 1, :],
        ee_ref[:, 1:Ho + 1, 0:Wo, :], eo_ref[:, 1:Ho + 1, 0:Wo, :], ee_ref[:, 1:Ho + 1, 1:Wo + 1, :],
    )
    m = taps[0]
    for t in taps[1:]:
        m = jnp.maximum(m, t)
    out_ref[...] = m.astype(out_ref.dtype)


# ---------------------------- GEMM wrapper ----------------------------

def matmul_bn_act(x, w, scale, bias, relu_blocks, residual=None, res_col_off=0):
    """(M,K)@(K,N) * scale + bias (+ residual band) (+ per-band ReLU).

    x is bf16, N is already a multiple of _TN (weights/scale/bias built padded).
    Output is bf16 and stays channel-padded.  `residual` is a bf16 (M, R_N)
    array; its column block (i, j + res_col_off) is added to output block (i,j)."""
    M, K = x.shape
    K2, N = w.shape
    assert K == K2 and N % _TN == 0
    has_res = residual is not None

    Mp0 = _round_up(max(M, 1), 16)          # bf16 sublane packing is (16, 128)
    tm = min(_TM_CAP, Mp0)
    if _TC_PER_CHIP >= 2 and Mp0 // tm < 2 and Mp0 >= 32:
        # v7x: give every GEMM at least 2 "parallel" M tiles so both TCs work.
        tm = _round_up((Mp0 + 1) // 2, 16)
    Mp = _round_up(Mp0, tm)
    tn = _TN
    n_col_blocks = N // tn

    xp = x.astype(COMPUTE_DTYPE)
    if Mp != M:
        xp = jnp.pad(xp, ((0, Mp - M), (0, 0)))
    wp = w.astype(COMPUTE_DTYPE)
    sp = scale.astype(jnp.float32).reshape(1, N)
    bp = bias.astype(jnp.float32).reshape(1, N)

    # NOTE: x block depends only on i, so it is not re-fetched across the inner
    # j loop; the (K, tn) weight block is re-fetched per M block, which is
    # negligible at Mp//tm <= 2 here (revisit for the real 2048-channel trunk).
    in_specs = [
        pl.BlockSpec((tm, K), lambda i, j: (i, 0)),
        pl.BlockSpec((K, tn), lambda i, j: (0, j)),
        pl.BlockSpec((1, tn), lambda i, j: (0, j)),
        pl.BlockSpec((1, tn), lambda i, j: (0, j)),
    ]
    operands = [xp, wp, sp, bp]
    if has_res:
        rp = residual.astype(COMPUTE_DTYPE)
        if Mp != M:
            rp = jnp.pad(rp, ((0, Mp - M), (0, 0)))
        in_specs.append(pl.BlockSpec((tm, tn), lambda i, j: (i, j + res_col_off)))
        operands.append(rp)

    e = jnp.dtype(COMPUTE_DTYPE).itemsize
    vmem_need = 2 * (tm * K * e + K * tn * e + 2 * tn * 4
                     + (tm * tn * e if has_res else 0) + tm * tn * e)
    vmem_limit = int(min(max(4 * vmem_need, 8 * 1024 * 1024), _VMEM_CAP))

    cost = pl.CostEstimate(
        flops=2 * M * K * N,
        transcendentals=0,
        bytes_accessed=(M * K + K * N + M * N * (2 if has_res else 1)) * e + 2 * N * 4,
    )

    kernel = functools.partial(_mm_fused_kernel, relu_blocks=relu_blocks,
                               n_col_blocks=n_col_blocks, has_res=has_res)
    out = pl.pallas_call(
        kernel,
        out_shape=jax.ShapeDtypeStruct((Mp, N), COMPUTE_DTYPE),
        grid_spec=pltpu.PrefetchScalarGridSpec(
            num_scalar_prefetch=0,
            grid=(Mp // tm, n_col_blocks),
            in_specs=in_specs,
            out_specs=pl.BlockSpec((tm, tn), lambda i, j: (i, j)),
        ),
        compiler_params=pltpu.CompilerParams(
            dimension_semantics=("parallel", "parallel"),
            vmem_limit_bytes=vmem_limit),
        cost_estimate=cost,
    )(*operands)
    if Mp != M:
        out = out[:M, :]
    return out


# ---------------------------- conv / pool wrappers ----------------------------

def _im2col(x_nhwc, kh, kw, stride, pad):
    B, H, W, C = x_nhwc.shape
    xpad = jnp.pad(x_nhwc, ((0, 0), (pad, pad), (pad, pad), (0, 0)))
    Ho = (H + 2 * pad - kh) // stride + 1
    Wo = (W + 2 * pad - kw) // stride + 1
    cols = []
    for i in range(kh):
        for j in range(kw):
            cols.append(xpad[:, i:i + stride * Ho:stride,
                             j:j + stride * Wo:stride, :])
    patches = jnp.concatenate(cols, axis=-1)            # (B, Ho, Wo, kh*kw*C)
    return patches.reshape(B * Ho * Wo, kh * kw * C), Ho, Wo


def _conv_weight_matrix(w, cin_pad, cout_pad):
    """(O, I, kh, kw) PyTorch weight -> (kh*kw*cin_pad, cout_pad) GEMM matrix,
    zero rows for padded input channels, zero cols for padded output channels."""
    O, I, kh, kw = w.shape
    wt = jnp.transpose(w, (2, 3, 1, 0))                  # (kh, kw, I, O)
    wt = jnp.pad(wt, ((0, 0), (0, 0), (0, cin_pad - I), (0, cout_pad - O)))
    return wt.reshape(kh * kw * cin_pad, cout_pad)


def _fold_bn(p, cout_pad):
    """Eval-mode BN folded to scale/bias; padded channels get scale=bias=0 so
    padded output columns are exact zeros."""
    scale = p["gamma"] * jax.lax.rsqrt(p["var"] + _BN_EPS)
    bias = p["beta"] - p["mean"] * scale
    n = scale.shape[0]
    return (jnp.pad(scale, (0, cout_pad - n)), jnp.pad(bias, (0, cout_pad - n)))


def conv_bn(x_nhwc, branches, kh, kw, stride, pad, n_relu,
            residual2d=None, res_col_off=0):
    """Conv2d(bias=False) + eval BN (+ residual band) (+ ReLU), NHWC.

    `x_nhwc` is bf16 with channels already padded to the lane width.
    `branches` is a list of conv/BN param dicts that share (kh,kw,stride,pad)
    and the same input; branch b's Cout is padded to a multiple of 128 and
    occupies its own column band of the merged output (so two 1x1 convs of a
    bottleneck become one GEMM).  ReLU is applied to the first `n_relu`
    branches' bands only.  Returns a channel-padded NHWC bf16 map."""
    B, H, W, Cp = x_nhwc.shape
    if kh == 1 and kw == 1:
        # 1x1 conv: no im2col (stride handled by a cheap subsample).
        xs = x_nhwc[:, ::stride, ::stride, :] if stride > 1 else x_nhwc
        Ho, Wo = xs.shape[1], xs.shape[2]
        patches = xs.reshape(B * Ho * Wo, Cp)
    else:
        # TODO(synk): at real image sizes replace this XLA-side im2col with an
        # in-kernel gather (kh*kw reduction grid axis over the padded NHWC map)
        # to avoid the kh*kw x HBM expansion; negligible at these toy shapes.
        patches, Ho, Wo = _im2col(x_nhwc, kh, kw, stride, pad)

    w_cols, s_cols, b_cols = [], [], []
    relu_blocks = 0
    for bi, p in enumerate(branches):
        cout_pad = _round_up(p["w"].shape[0], _TN)
        w_cols.append(_conv_weight_matrix(p["w"], Cp, cout_pad))
        s, b = _fold_bn(p, cout_pad)
        s_cols.append(s)
        b_cols.append(b)
        if bi < n_relu:
            relu_blocks += cout_pad // _TN
    w_mat = w_cols[0] if len(w_cols) == 1 else jnp.concatenate(w_cols, axis=1)
    scale = s_cols[0] if len(s_cols) == 1 else jnp.concatenate(s_cols)
    bias = b_cols[0] if len(b_cols) == 1 else jnp.concatenate(b_cols)

    y2d = matmul_bn_act(patches, w_mat, scale, bias, relu_blocks,
                        residual=residual2d, res_col_off=res_col_off)
    return y2d.reshape(B, Ho, Wo, w_mat.shape[1])


def maxpool_3x3_s2_p1(x_nhwc):
    """MaxPool2d(kernel=3, stride=2, padding=1) on a channel-padded bf16 map.

    The padded map is split into 4 stride-2 parity planes (done once in XLA);
    the 9-tap max runs in one Pallas step over the whole batch (C=128 lanes,
    so the output stores are already lane-dense)."""
    B, H, W, C = x_nhwc.shape
    Ho = (H + 2 - 3) // 2 + 1
    Wo = (W + 2 - 3) // 2 + 1
    Hp, Wp = 2 * Ho + 2, 2 * Wo + 2
    neg = float(jnp.finfo(x_nhwc.dtype).min)
    xpad = jnp.pad(x_nhwc, ((0, 0), (1, Hp - H - 1), (1, Wp - W - 1), (0, 0)),
                   constant_values=neg)
    ee = xpad[:, 0::2, 0::2, :]
    eo = xpad[:, 0::2, 1::2, :]
    oe = xpad[:, 1::2, 0::2, :]
    oo = xpad[:, 1::2, 1::2, :]
    in_spec = pl.BlockSpec((B, Ho + 1, Wo + 1, C), lambda i: (0, 0, 0, 0))
    return pl.pallas_call(
        _maxpool_kernel,
        out_shape=jax.ShapeDtypeStruct((B, Ho, Wo, C), x_nhwc.dtype),
        grid_spec=pltpu.PrefetchScalarGridSpec(
            num_scalar_prefetch=0,
            grid=(1,),
            in_specs=[in_spec] * 4,
            out_specs=pl.BlockSpec((B, Ho, Wo, C), lambda i: (0, 0, 0, 0)),
        ),
        compiler_params=pltpu.CompilerParams(
            dimension_semantics=("arbitrary",)),
    )(ee, eo, oe, oo)


# ---------------------------- parameters ----------------------------

def _make_conv_bn(key, cin, cout, k):
    kw_, kb = jax.random.split(key)
    fan_in = cin * k * k
    w = jax.random.normal(kw_, (cout, cin, k, k), jnp.float32) * (2.0 / fan_in) ** 0.5
    g, b, m, v = jax.random.split(kb, 4)
    return {
        "w": w,
        "gamma": 1.0 + 0.1 * jax.random.normal(g, (cout,), jnp.float32),
        "beta": 0.1 * jax.random.normal(b, (cout,), jnp.float32),
        "mean": 0.1 * jax.random.normal(m, (cout,), jnp.float32),
        "var": 1.0 + 0.1 * jax.random.uniform(v, (cout,), jnp.float32),
    }


# TODO(synk): the original module wraps a *pretrained* torchvision ResNet50
# truncated before avgpool/fc (2048 output channels, stages [3,4,6,3]); here a
# deterministically-initialized, scaled-down ResNet50-style encoder
# (7x7/2 stem + 3x3/2 maxpool + 2 bottleneck stages with residuals) keeps the
# same structural ops at small synthetic shapes (no checkpoint loading).
def init_encoder_params(key):
    keys = jax.random.split(key, 9)
    p = {}
    p["stem"] = _make_conv_bn(keys[0], 3, 16, 7)
    # stage 1 bottleneck: 16 -> (8, 8, 32), stride 1, 1x1 projection shortcut
    p["s1_c1"] = _make_conv_bn(keys[1], 16, 8, 1)
    p["s1_c2"] = _make_conv_bn(keys[2], 8, 8, 3)
    p["s1_c3"] = _make_conv_bn(keys[3], 8, 32, 1)
    p["s1_ds"] = _make_conv_bn(keys[4], 16, 32, 1)
    # stage 2 bottleneck: 32 -> (16, 16, 64), stride 2, 1x1/2 projection shortcut
    p["s2_c1"] = _make_conv_bn(keys[5], 32, 16, 1)
    p["s2_c2"] = _make_conv_bn(keys[6], 16, 16, 3)
    p["s2_c3"] = _make_conv_bn(keys[7], 16, 64, 1)
    p["s2_ds"] = _make_conv_bn(keys[8], 32, 64, 1)
    return p


# ---------------------------- bottleneck / forward ----------------------------

def _bottleneck(x, p1, p2, p3, pds, stride):
    if stride == 1:
        # conv1 (ReLU) and the projection shortcut (no ReLU) read the same
        # input at the same stride -> one merged GEMM.  conv1's band is
        # columns [0, 128*nb1), the shortcut's band follows it.
        nb1 = _round_up(p1["w"].shape[0], _TN) // _TN
        m = conv_bn(x, [p1, pds], 1, 1, 1, 0, n_relu=1)
        B, H, W, Cm = m.shape
        out = conv_bn(m, [p2], 3, 3, stride, 1, n_relu=1)
        # residual add + final ReLU fused into the last conv's GEMM epilogue;
        # the shortcut band of the merged map is fed directly via res_col_off.
        out = conv_bn(out, [p3], 1, 1, 1, 0, n_relu=1,
                      residual2d=m.reshape(B * H * W, Cm), res_col_off=nb1)
    else:
        idn = conv_bn(x, [pds], 1, 1, stride, 0, n_relu=0)
        B, H, W, Ci = idn.shape
        out = conv_bn(x, [p1], 1, 1, 1, 0, n_relu=1)
        out = conv_bn(out, [p2], 3, 3, stride, 1, n_relu=1)
        out = conv_bn(out, [p3], 1, 1, 1, 0, n_relu=1,
                      residual2d=idn.reshape(B * H * W, Ci), res_col_off=0)
    return out


def encoder_cnn_forward(params, images_nchw):
    # images: NCHW (PyTorch convention) -> NHWC, cast to bf16 once.
    x = jnp.transpose(images_nchw, (0, 2, 3, 1)).astype(COMPUTE_DTYPE)
    x = conv_bn(x, [params["stem"]], 7, 7, 2, 3, n_relu=1)
    x = maxpool_3x3_s2_p1(x)
    x = _bottleneck(x, params["s1_c1"], params["s1_c2"], params["s1_c3"],
                    params["s1_ds"], stride=1)
    x = _bottleneck(x, params["s2_c1"], params["s2_c2"], params["s2_c3"],
                    params["s2_ds"], stride=2)
    # PyTorch: features.permute(0, 2, 3, 1).view(B, -1, C); x is already NHWC.
    # One slice at the very end drops the padded channels; final output in f32.
    B, H, W, _ = x.shape
    c = params["s2_c3"]["w"].shape[0]
    return x[..., :c].astype(jnp.float32).reshape(B, H * W, c)


if __name__ == "__main__":
    key = jax.random.PRNGKey(0)
    kp, kx = jax.random.split(key)
    params = init_encoder_params(kp)
    images = jax.random.normal(kx, (2, 3, 32, 32), jnp.float32)  # NCHW, like PyTorch
    feats = jax.jit(encoder_cnn_forward)(params, images)
    feats = jax.block_until_ready(feats)
    assert feats.shape == (2, 16, 64), feats.shape            # (B, H*W, C)
    assert bool(jnp.all(jnp.isfinite(feats)))
    print("KERNEL_OK")
</pallas_src>

<mosaic_0001>
module attributes {stable_mosaic.version = 11 : i64} {
  func.func @_mm_fused_kernel(%arg0: i32, %arg1: i32, %arg2: memref<256x147xbf16, #tpu.memory_space<vmem>>, %arg3: memref<147x128xbf16, #tpu.memory_space<vmem>>, %arg4: memref<1x128xf32, #tpu.memory_space<vmem>>, %arg5: memref<1x128xf32, #tpu.memory_space<vmem>>, %arg6: memref<256x128xbf16, #tpu.memory_space<vmem>>) attributes {dimension_semantics = [#tpu.dimension_semantics<parallel>, #tpu.dimension_semantics<parallel>], iteration_bounds = array<i64: 2, 1>, scalar_prefetch = 0 : i64, scratch_operands = 0 : i64, tpu.core_type = #tpu.core_type<tc>, window_params = [{transform_indices = @transform_0, window_bounds = array<i64: 256, 147>}, {transform_indices = @transform_1, window_bounds = array<i64: 147, 128>}, {transform_indices = @transform_2, window_bounds = array<i64: 1, 128>}, {transform_indices = @transform_3, window_bounds = array<i64: 1, 128>}, {transform_indices = @transform_4, window_bounds = array<i64: 256, 128>}]} {
    %c0 = arith.constant 0 : index
    %c0_0 = arith.constant 0 : index
    %0 = vector.load %arg2[%c0, %c0_0] : memref<256x147xbf16, #tpu.memory_space<vmem>>, vector<256x147xbf16>
    %c0_1 = arith.constant 0 : index
    %c0_2 = arith.constant 0 : index
    %1 = vector.load %arg3[%c0_1, %c0_2] : memref<147x128xbf16, #tpu.memory_space<vmem>>, vector<147x128xbf16>
    %cst = arith.constant dense<0.000000e+00> : vector<256x128xf32>
    %2 = tpu.matmul %0, %1, %cst {dimension_numbers = #tpu.dot_dimension_numbers<[1], [0], [0], [1], [0, 0, 1, 1], [], []>} : vector<256x147xbf16>, vector<147x128xbf16>, vector<256x128xf32> -> vector<256x128xf32>
    %c0_3 = arith.constant 0 : index
    %c0_4 = arith.constant 0 : index
    %3 = vector.load %arg4[%c0_3, %c0_4] : memref<1x128xf32, #tpu.memory_space<vmem>>, vector<1x128xf32>
    %4 = vector.broadcast %3 : vector<1x128xf32> to vector<256x128xf32>
    %5 = arith.mulf %2, %4 : vector<256x128xf32>
    %c0_5 = arith.constant 0 : index
    %c0_6 = arith.constant 0 : index
    %6 = vector.load %arg5[%c0_5, %c0_6] : memref<1x128xf32, #tpu.memory_space<vmem>>, vector<1x128xf32>
    %7 = vector.broadcast %6 : vector<1x128xf32> to vector<256x128xf32>
    %8 = arith.addf %5, %7 : vector<256x128xf32>
    %cst_7 = arith.constant 0.000000e+00 : f32
    %9 = vector.broadcast %cst_7 : f32 to vector<256x128xf32>
    %10 = arith.maximumf %8, %9 : vector<256x128xf32>
    %11 = arith.truncf %10 : vector<256x128xf32> to vector<256x128xbf16>
    %c0_8 = arith.constant 0 : index
    %c0_9 = arith.constant 0 : index
    %12 = vector.load %arg6[%c0_8, %c0_9] : memref<256x128xbf16, #tpu.memory_space<vmem>>, vector<256x128xbf16>
    tpu.vector_store %arg6[%c0_8, %c0_9], %11 {strides = array<i32>} : memref<256x128xbf16, #tpu.memory_space<vmem>>, vector<256x128xbf16>,
    return
  }
  func.func @transform_0(%arg0: i32, %arg1: i32) -> (i32, i32) {
    %c0_i32 = arith.constant 0 : i32
    %c0_i32_0 = arith.constant 0 : i32
    return %arg0, %c0_i32 : i32, i32
  }
  func.func @transform_1(%arg0: i32, %arg1: i32) -> (i32, i32) {
    %c0_i32 = arith.constant 0 : i32
    %c0_i32_0 = arith.constant 0 : i32
    return %c0_i32, %arg1 : i32, i32
  }
  func.func @transform_2(%arg0: i32, %arg1: i32) -> (i32, i32) {
    %c0_i32 = arith.constant 0 : i32
    %c0_i32_0 = arith.constant 0 : i32
    return %c0_i32, %arg1 : i32, i32
  }
  func.func @transform_3(%arg0: i32, %arg1: i32) -> (i32, i32) {
    %c0_i32 = arith.constant 0 : i32
    %c0_i32_0 = arith.constant 0 : i32
    return %c0_i32, %arg1 : i32, i32
  }
  func.func @transform_4(%arg0: i32, %arg1: i32) -> (i32, i32) {
    %c0_i32 = arith.constant 0 : i32
    return %arg0, %arg1 : i32, i32
  }
}

module attributes {stable_mosaic.version = 11 : i64} {
  func.func @_maxpool_kernel(%arg0: i32, %arg1: memref<2x9x9x128xbf16, #tpu.memory_space<vmem>>, %arg2: memref<2x9x9x128xbf16, #tpu.memory_space<vmem>>, %arg3: memref<2x9x9x128xbf16, #tpu.memory_space<vmem>>, %arg4: memref<2x9x9x128xbf16, #tpu.memory_space<vmem>>, %arg5: memref<2x8x8x128xbf16, #tpu.memory_space<vmem>>) attributes {dimension_semantics = [#tpu.dimension_semantics<arbitrary>], iteration_bounds = array<i64: 1>, scalar_prefetch = 0 : i64, scratch_operands = 0 : i64, tpu.core_type = #tpu.core_type<tc>, window_params = [{pipeline_mode = #tpu.pipeline_mode<synchronous>, transform_indices = @transform_0, window_bounds = array<i64: 2, 9, 9, 128>}, {pipeline_mode = #tpu.pipeline_mode<synchronous>, transform_indices = @transform_1, window_bounds = array<i64: 2, 9, 9, 128>}, {pipeline_mode = #tpu.pipeline_mode<synchronous>, transform_indices = @transform_2, window_bounds = array<i64: 2, 9, 9, 128>}, {pipeline_mode = #tpu.pipeline_mode<synchronous>, transform_indices = @transform_3, window_bounds = array<i64: 2, 9, 9, 128>}, {pipeline_mode = #tpu.pipeline_mode<synchronous>, transform_indices = @transform_4, window_bounds = array<i64: 2, 8, 8, 128>}]} {
    %c0 = arith.constant 0 : index
    %c0_0 = arith.constant 0 : index
    %c0_1 = arith.constant 0 : index
    %c0_2 = arith.constant 0 : index
    %0 = vector.load %arg1[%c0, %c0_0, %c0_1, %c0_2] : memref<2x9x9x128xbf16, #tpu.memory_space<vmem>>, vector<2x8x8x128xbf16>
    %c0_3 = arith.constant 0 : index
    %c0_4 = arith.constant 0 : index
    %c0_5 = arith.constant 0 : index
    %c0_6 = arith.constant 0 : index
    %1 = vector.load %arg2[%c0_3, %c0_4, %c0_5, %c0_6] : memref<2x9x9x128xbf16, #tpu.memory_space<vmem>>, vector<2x8x8x128xbf16>
    %c0_7 = arith.constant 0 : index
    %c0_8 = arith.constant 0 : index
    %c1 = arith.constant 1 : index
    %c0_9 = arith.constant 0 : index
    %2 = vector.load %arg1[%c0_7, %c0_8, %c1, %c0_9] : memref<2x9x9x128xbf16, #tpu.memory_space<vmem>>, vector<2x8x8x128xbf16>
    %c0_10 = arith.constant 0 : index
    %c0_11 = arith.constant 0 : index
    %c0_12 = arith.constant 0 : index
    %c0_13 = arith.constant 0 : index
    %3 = vector.load %arg3[%c0_10, %c0_11, %c0_12, %c0_13] : memref<2x9x9x128xbf16, #tpu.memory_space<vmem>>, vector<2x8x8x128xbf16>
    %c0_14 = arith.constant 0 : index
    %c0_15 = arith.constant 0 : index
    %c0_16 = arith.constant 0 : index
    %c0_17 = arith.constant 0 : index
    %4 = vector.load %arg4[%c0_14, %c0_15, %c0_16, %c0_17] : memref<2x9x9x128xbf16, #tpu.memory_space<vmem>>, vector<2x8x8x128xbf16>
    %c0_18 = arith.constant 0 : index
    %c0_19 = arith.constant 0 : index
    %c1_20 = arith.constant 1 : index
    %c0_21 = arith.constant 0 : index
    %5 = vector.load %arg3[%c0_18, %c0_19, %c1_20, %c0_21] : memref<2x9x9x128xbf16, #tpu.memory_space<vmem>>, vector<2x8x8x128xbf16>
    %c0_22 = arith.constant 0 : index
    %c1_23 = arith.constant 1 : index
    %c0_24 = arith.constant 0 : index
    %c0_25 = arith.constant 0 : index
    %6 = vector.load %arg1[%c0_22, %c1_23, %c0_24, %c0_25] : memref<2x9x9x128xbf16, #tpu.memory_space<vmem>>, vector<2x8x8x128xbf16>
    %c0_26 = arith.constant 0 : index
    %c1_27 = arith.constant 1 : index
    %c0_28 = arith.constant 0 : index
    %c0_29 = arith.constant 0 : index
    %7 = vector.load %arg2[%c0_26, %c1_27, %c0_28, %c0_29] : memref<2x9x9x128xbf16, #tpu.memory_space<vmem>>, vector<2x8x8x128xbf16>
    %c0_30 = arith.constant 0 : index
    %c1_31 = arith.constant 1 : index
    %c1_32 = arith.constant 1 : index
    %c0_33 = arith.constant 0 : index
    %8 = vector.load %arg1[%c0_30, %c1_31, %c1_32, %c0_33] : memref<2x9x9x128xbf16, #tpu.memory_space<vmem>>, vector<2x8x8x128xbf16>
    %9 = arith.maximumf %0, %1 : vector<2x8x8x128xbf16>
    %10 = arith.maximumf %9, %2 : vector<2x8x8x128xbf16>
    %11 = arith.maximumf %10, %3 : vector<2x8x8x128xbf16>
    %12 = arith.maximumf %11, %4 : vector<2x8x8x128xbf16>
    %13 = arith.maximumf %12, %5 : vector<2x8x8x128xbf16>
    %14 = arith.maximumf %13, %6 : vector<2x8x8x128xbf16>
    %15 = arith.maximumf %14, %7 : vector<2x8x8x128xbf16>
    %16 = arith.maximumf %15, %8 : vector<2x8x8x128xbf16>
    %c0_34 = arith.constant 0 : index
    %c0_35 = arith.constant 0 : index
    %c0_36 = arith.constant 0 : index
    %c0_37 = arith.constant 0 : index
    %17 = vector.load %arg5[%c0_34, %c0_35, %c0_36, %c0_37] : memref<2x8x8x128xbf16, #tpu.memory_space<vmem>>, vector<2x8x8x128xbf16>
    tpu.vector_store %arg5[%c0_34, %c0_35, %c0_36, %c0_37], %16 {strides = array<i32>} : memref<2x8x8x128xbf16, #tpu.memory_space<vmem>>, vector<2x8x8x128xbf16>,
    return
  }
  func.func @transform_0(%arg0: i32) -> (i32, i32, i32, i32) {
    %c0_i32 = arith.constant 0 : i32
    %c0_i32_0 = arith.constant 0 : i32
    %c0_i32_1 = arith.constant 0 : i32
    %c0_i32_2 = arith.constant 0 : i32
    %c0_i32_3 = arith.constant 0 : i32
    return %c0_i32, %c0_i32_0, %c0_i32_1, %c0_i32_2 : i32, i32, i32, i32
  }
  func.func @transform_1(%arg0: i32) -> (i32, i32, i32, i32) {
    %c0_i32 = arith.constant 0 : i32
    %c0_i32_0 = arith.constant 0 : i32
    %c0_i32_1 = arith.constant 0 : i32
    %c0_i32_2 = arith.constant 0 : i32
    %c0_i32_3 = arith.constant 0 : i32
    return %c0_i32, %c0_i32_0, %c0_i32_1, %c0_i32_2 : i32, i32, i32, i32
  }
  func.func @transform_2(%arg0: i32) -> (i32, i32, i32, i32) {
    %c0_i32 = arith.constant 0 : i32
    %c0_i32_0 = arith.constant 0 : i32
    %c0_i32_1 = arith.constant 0 : i32
    %c0_i32_2 = arith.constant 0 : i32
    %c0_i32_3 = arith.constant 0 : i32
    return %c0_i32, %c0_i32_0, %c0_i32_1, %c0_i32_2 : i32, i32, i32, i32
  }
  func.func @transform_3(%arg0: i32) -> (i32, i32, i32, i32) {
    %c0_i32 = arith.constant 0 : i32
    %c0_i32_0 = arith.constant 0 : i32
    %c0_i32_1 = arith.constant 0 : i32
    %c0_i32_2 = arith.constant 0 : i32
    %c0_i32_3 = arith.constant 0 : i32
    return %c0_i32, %c0_i32_0, %c0_i32_1, %c0_i32_2 : i32, i32, i32, i32
  }
  func.func @transform_4(%arg0: i32) -> (i32, i32, i32, i32) {
    %c0_i32 = arith.constant 0 : i32
    %c0_i32_0 = arith.constant 0 : i32
    %c0_i32_1 = arith.constant 0 : i32
    %c0_i32_2 = arith.constant 0 : i32
    %c0_i32_3 = arith.constant 0 : i32
    return %c0_i32, %c0_i32_0, %c0_i32_1, %c0_i32_2 : i32, i32, i32, i32
  }
}

module attributes {stable_mosaic.version = 11 : i64} {
  func.func @_mm_fused_kernel(%arg0: i32, %arg1: i32, %arg2: memref<128x128xbf16, #tpu.memory_space<vmem>>, %arg3: memref<128x128xbf16, #tpu.memory_space<vmem>>, %arg4: memref<1x128xf32, #tpu.memory_space<vmem>>, %arg5: memref<1x128xf32, #tpu.memory_space<vmem>>, %arg6: memref<128x128xbf16, #tpu.memory_space<vmem>>) attributes {dimension_semantics = [#tpu.dimension_semantics<parallel>, #tpu.dimension_semantics<parallel>], iteration_bounds = array<i64: 1, 2>, scalar_prefetch = 0 : i64, scratch_operands = 0 : i64, tpu.core_type = #tpu.core_type<tc>, window_params = [{transform_indices = @transform_0, window_bounds = array<i64: 128, 128>}, {transform_indices = @transform_1, window_bounds = array<i64: 128, 128>}, {transform_indices = @transform_2, window_bounds = array<i64: 1, 128>}, {transform_indices = @transform_3, window_bounds = array<i64: 1, 128>}, {transform_indices = @transform_4, window_bounds = array<i64: 128, 128>}]} {
    %c0 = arith.constant 0 : index
    %c0_0 = arith.constant 0 : index
    %0 = vector.load %arg2[%c0, %c0_0] : memref<128x128xbf16, #tpu.memory_space<vmem>>, vector<128x128xbf16>
    %c0_1 = arith.constant 0 : index
    %c0_2 = arith.constant 0 : index
    %1 = vector.load %arg3[%c0_1, %c0_2] : memref<128x128xbf16, #tpu.memory_space<vmem>>, vector<128x128xbf16>
    %cst = arith.constant dense<0.000000e+00> : vector<128x128xf32>
    %2 = tpu.matmul %0, %1, %cst {dimension_numbers = #tpu.dot_dimension_numbers<[1], [0], [0], [1], [0, 0, 1, 1], [], []>} : vector<128x128xbf16>, vector<128x128xbf16>, vector<128x128xf32> -> vector<128x128xf32>
    %c0_3 = arith.constant 0 : index
    %c0_4 = arith.constant 0 : index
    %3 = vector.load %arg4[%c0_3, %c0_4] : memref<1x128xf32, #tpu.memory_space<vmem>>, vector<1x128xf32>
    %4 = vector.broadcast %3 : vector<1x128xf32> to vector<128x128xf32>
    %5 = arith.mulf %2, %4 : vector<128x128xf32>
    %c0_5 = arith.constant 0 : index
    %c0_6 = arith.constant 0 : index
    %6 = vector.load %arg5[%c0_5, %c0_6] : memref<1x128xf32, #tpu.memory_space<vmem>>, vector<1x128xf32>
    %7 = vector.broadcast %6 : vector<1x128xf32> to vector<128x128xf32>
    %8 = arith.addf %5, %7 : vector<128x128xf32>
    %9 = arith.truncf %8 : vector<128x128xf32> to vector<128x128xbf16>
    %c0_7 = arith.constant 0 : index
    %c0_8 = arith.constant 0 : index
    %10 = vector.load %arg6[%c0_7, %c0_8] : memref<128x128xbf16, #tpu.memory_space<vmem>>, vector<128x128xbf16>
    tpu.vector_store %arg6[%c0_7, %c0_8], %9 {strides = array<i32>} : memref<128x128xbf16, #tpu.memory_space<vmem>>, vector<128x128xbf16>,
    %c1_i32 = arith.constant 1 : i32
    %11 = arith.cmpi slt, %arg1, %c1_i32 : i32
    %12 = arith.extui %11 : i1 to i32
    %c0_i32 = arith.constant 0 : i32
    %13 = arith.cmpi ne, %12, %c0_i32 : i32
    scf.if %13 {
      %cst_9 = arith.constant 0.000000e+00 : f32
      %14 = vector.broadcast %cst_9 : f32 to vector<128x128xf32>
      %15 = arith.maximumf %8, %14 : vector<128x128xf32>
      %16 = arith.truncf %15 : vector<128x128xf32> to vector<128x128xbf16>
      %c0_10 = arith.constant 0 : index
      %c0_11 = arith.constant 0 : index
      %17 = vector.load %arg6[%c0_10, %c0_11] : memref<128x128xbf16, #tpu.memory_space<vmem>>, vector<128x128xbf16>
      tpu.vector_store %arg6[%c0_10, %c0_11], %16 {strides = array<i32>} : memref<128x128xbf16, #tpu.memory_space<vmem>>, vector<128x128xbf16>,
    } else {
    }
    return
  }
  func.func @transform_0(%arg0: i32, %arg1: i32) -> (i32, i32) {
    %c0_i32 = arith.constant 0 : i32
    %c0_i32_0 = arith.constant 0 : i32
    return %arg0, %c0_i32 : i32, i32
  }
  func.func @transform_1(%arg0: i32, %arg1: i32) -> (i32, i32) {
    %c0_i32 = arith.constant 0 : i32
    %c0_i32_0 = arith.constant 0 : i32
    return %c0_i32, %arg1 : i32, i32
  }
  func.func @transform_2(%arg0: i32, %arg1: i32) -> (i32, i32) {
    %c0_i32 = arith.constant 0 : i32
    %c0_i32_0 = arith.constant 0 : i32
    return %c0_i32, %arg1 : i32, i32
  }
  func.func @transform_3(%arg0: i32, %arg1: i32) -> (i32, i32) {
    %c0_i32 = arith.constant 0 : i32
    %c0_i32_0 = arith.constant 0 : i32
    return %c0_i32, %arg1 : i32, i32
  }
  func.func @transform_4(%arg0: i32, %arg1: i32) -> (i32, i32) {
    %c0_i32 = arith.constant 0 : i32
    return %arg0, %arg1 : i32, i32
  }
}

module attributes {stable_mosaic.version = 11 : i64} {
  func.func @_mm_fused_kernel(%arg0: i32, %arg1: i32, %arg2: memref<128x2304xbf16, #tpu.memory_space<vmem>>, %arg3: memref<2304x128xbf16, #tpu.memory_space<vmem>>, %arg4: memref<1x128xf32, #tpu.memory_space<vmem>>, %arg5: memref<1x128xf32, #tpu.memory_space<vmem>>, %arg6: memref<128x128xbf16, #tpu.memory_space<vmem>>) attributes {dimension_semantics = [#tpu.dimension_semantics<parallel>, #tpu.dimension_semantics<parallel>], iteration_bounds = array<i64: 1, 1>, scalar_prefetch = 0 : i64, scratch_operands = 0 : i64, tpu.core_type = #tpu.core_type<tc>, window_params = [{transform_indices = @transform_0, window_bounds = array<i64: 128, 2304>}, {transform_indices = @transform_1, window_bounds = array<i64: 2304, 128>}, {transform_indices = @transform_2, window_bounds = array<i64: 1, 128>}, {transform_indices = @transform_3, window_bounds = array<i64: 1, 128>}, {transform_indices = @transform_4, window_bounds = array<i64: 128, 128>}]} {
    %c0 = arith.constant 0 : index
    %c0_0 = arith.constant 0 : index
    %0 = vector.load %arg2[%c0, %c0_0] : memref<128x2304xbf16, #tpu.memory_space<vmem>>, vector<128x2304xbf16>
    %c0_1 = arith.constant 0 : index
    %c0_2 = arith.constant 0 : index
    %1 = vector.load %arg3[%c0_1, %c0_2] : memref<2304x128xbf16, #tpu.memory_space<vmem>>, vector<2304x128xbf16>
    %cst = arith.constant dense<0.000000e+00> : vector<128x128xf32>
    %2 = tpu.matmul %0, %1, %cst {dimension_numbers = #tpu.dot_dimension_numbers<[1], [0], [0], [1], [0, 0, 1, 1], [], []>} : vector<128x2304xbf16>, vector<2304x128xbf16>, vector<128x128xf32> -> vector<128x128xf32>
    %c0_3 = arith.constant 0 : index
    %c0_4 = arith.constant 0 : index
    %3 = vector.load %arg4[%c0_3, %c0_4] : memref<1x128xf32, #tpu.memory_space<vmem>>, vector<1x128xf32>
    %4 = vector.broadcast %3 : vector<1x128xf32> to vector<128x128xf32>
    %5 = arith.mulf %2, %4 : vector<128x128xf32>
    %c0_5 = arith.constant 0 : index
    %c0_6 = arith.constant 0 : index
    %6 = vector.load %arg5[%c0_5, %c0_6] : memref<1x128xf32, #tpu.memory_space<vmem>>, vector<1x128xf32>
    %7 = vector.broadcast %6 : vector<1x128xf32> to vector<128x128xf32>
    %8 = arith.addf %5, %7 : vector<128x128xf32>
    %cst_7 = arith.constant 0.000000e+00 : f32
    %9 = vector.broadcast %cst_7 : f32 to vector<128x128xf32>
    %10 = arith.maximumf %8, %9 : vector<128x128xf32>
    %11 = arith.truncf %10 : vector<128x128xf32> to vector<128x128xbf16>
    %c0_8 = arith.constant 0 : index
    %c0_9 = arith.constant 0 : index
    %12 = vector.load %arg6[%c0_8, %c0_9] : memref<128x128xbf16, #tpu.memory_space<vmem>>, vector<128x128xbf16>
    tpu.vector_store %arg6[%c0_8, %c0_9], %11 {strides = array<i32>} : memref<128x128xbf16, #tpu.memory_space<vmem>>, vector<128x128xbf16>,
    return
  }
  func.func @transform_0(%arg0: i32, %arg1: i32) -> (i32, i32) {
    %c0_i32 = arith.constant 0 : i32
    %c0_i32_0 = arith.constant 0 : i32
    return %arg0, %c0_i32 : i32, i32
  }
  func.func @transform_1(%arg0: i32, %arg1: i32) -> (i32, i32) {
    %c0_i32 = arith.constant 0 : i32
    %c0_i32_0 = arith.constant 0 : i32
    return %c0_i32, %arg1 : i32, i32
  }
  func.func @transform_2(%arg0: i32, %arg1: i32) -> (i32, i32) {
    %c0_i32 = arith.constant 0 : i32
    %c0_i32_0 = arith.constant 0 : i32
    return %c0_i32, %arg1 : i32, i32
  }
  func.func @transform_3(%arg0: i32, %arg1: i32) -> (i32, i32) {
    %c0_i32 = arith.constant 0 : i32
    %c0_i32_0 = arith.constant 0 : i32
    return %c0_i32, %arg1 : i32, i32
  }
  func.func @transform_4(%arg0: i32, %arg1: i32) -> (i32, i32) {
    %c0_i32 = arith.constant 0 : i32
    return %arg0, %arg1 : i32, i32
  }
}

module attributes {stable_mosaic.version = 11 : i64} {
  func.func @_mm_fused_kernel(%arg0: i32, %arg1: i32, %arg2: memref<128x128xbf16, #tpu.memory_space<vmem>>, %arg3: memref<128x128xbf16, #tpu.memory_space<vmem>>, %arg4: memref<1x128xf32, #tpu.memory_space<vmem>>, %arg5: memref<1x128xf32, #tpu.memory_space<vmem>>, %arg6: memref<128x128xbf16, #tpu.memory_space<vmem>>, %arg7: memref<128x128xbf16, #tpu.memory_space<vmem>>) attributes {dimension_semantics = [#tpu.dimension_semantics<parallel>, #tpu.dimension_semantics<parallel>], iteration_bounds = array<i64: 1, 1>, scalar_prefetch = 0 : i64, scratch_operands = 0 : i64, tpu.core_type = #tpu.core_type<tc>, window_params = [{transform_indices = @transform_0, window_bounds = array<i64: 128, 128>}, {transform_indices = @transform_1, window_bounds = array<i64: 128, 128>}, {transform_indices = @transform_2, window_bounds = array<i64: 1, 128>}, {transform_indices = @transform_3, window_bounds = array<i64: 1, 128>}, {transform_indices = @transform_4, window_bounds = array<i64: 128, 128>}, {transform_indices = @transform_5, window_bounds = array<i64: 128, 128>}]} {
    %c0 = arith.constant 0 : index
    %c0_0 = arith.constant 0 : index
    %0 = vector.load %arg2[%c0, %c0_0] : memref<128x128xbf16, #tpu.memory_space<vmem>>, vector<128x128xbf16>
    %c0_1 = arith.constant 0 : index
    %c0_2 = arith.constant 0 : index
    %1 = vector.load %arg3[%c0_1, %c0_2] : memref<128x128xbf16, #tpu.memory_space<vmem>>, vector<128x128xbf16>
    %cst = arith.constant dense<0.000000e+00> : vector<128x128xf32>
    %2 = tpu.matmul %0, %1, %cst {dimension_numbers = #tpu.dot_dimension_numbers<[1], [0], [0], [1], [0, 0, 1, 1], [], []>} : vector<128x128xbf16>, vector<128x128xbf16>, vector<128x128xf32> -> vector<128x128xf32>
    %c0_3 = arith.constant 0 : index
    %c0_4 = arith.constant 0 : index
    %3 = vector.load %arg4[%c0_3, %c0_4] : memref<1x128xf32, #tpu.memory_space<vmem>>, vector<1x128xf32>
    %4 = vector.broadcast %3 : vector<1x128xf32> to vector<128x128xf32>
    %5 = arith.mulf %2, %4 : vector<128x128xf32>
    %c0_5 = arith.constant 0 : index
    %c0_6 = arith.constant 0 : index
    %6 = vector.load %arg5[%c0_5, %c0_6] : memref<1x128xf32, #tpu.memory_space<vmem>>, vector<1x128xf32>
    %7 = vector.broadcast %6 : vector<1x128xf32> to vector<128x128xf32>
    %8 = arith.addf %5, %7 : vector<128x128xf32>
    %c0_7 = arith.constant 0 : index
    %c0_8 = arith.constant 0 : index
    %9 = vector.load %arg6[%c0_7, %c0_8] : memref<128x128xbf16, #tpu.memory_space<vmem>>, vector<128x128xbf16>
    %10 = arith.extf %9 : vector<128x128xbf16> to vector<128x128xf32>
    %11 = arith.addf %8, %10 : vector<128x128xf32>
    %cst_9 = arith.constant 0.000000e+00 : f32
    %12 = vector.broadcast %cst_9 : f32 to vector<128x128xf32>
    %13 = arith.maximumf %11, %12 : vector<128x128xf32>
    %14 = arith.truncf %13 : vector<128x128xf32> to vector<128x128xbf16>
    %c0_10 = arith.constant 0 : index
    %c0_11 = arith.constant 0 : index
    %15 = vector.load %arg7[%c0_10, %c0_11] : memref<128x128xbf16, #tpu.memory_space<vmem>>, vector<128x128xbf16>
    tpu.vector_store %arg7[%c0_10, %c0_11], %14 {strides = array<i32>} : memref<128x128xbf16, #tpu.memory_space<vmem>>, vector<128x128xbf16>,
    return
  }
  func.func @transform_0(%arg0: i32, %arg1: i32) -> (i32, i32) {
    %c0_i32 = arith.constant 0 : i32
    %c0_i32_0 = arith.constant 0 : i32
    return %arg0, %c0_i32 : i32, i32
  }
  func.func @transform_1(%arg0: i32, %arg1: i32) -> (i32, i32) {
    %c0_i32 = arith.constant 0 : i32
    %c0_i32_0 = arith.constant 0 : i32
    return %c0_i32, %arg1 : i32, i32
  }
  func.func @transform_2(%arg0: i32, %arg1: i32) -> (i32, i32) {
    %c0_i32 = arith.constant 0 : i32
    %c0_i32_0 = arith.constant 0 : i32
    return %c0_i32, %arg1 : i32, i32
  }
  func.func @transform_3(%arg0: i32, %arg1: i32) -> (i32, i32) {
    %c0_i32 = arith.constant 0 : i32
    %c0_i32_0 = arith.constant 0 : i32
    return %c0_i32, %arg1 : i32, i32
  }
  func.func @transform_4(%arg0: i32, %arg1: i32) -> (i32, i32) {
    %c1_i32 = arith.constant 1 : i32
    %0 = arith.addi %arg1, %c1_i32 : i32
    %c0_i32 = arith.constant 0 : i32
    return %arg0, %0 : i32, i32
  }
  func.func @transform_5(%arg0: i32, %arg1: i32) -> (i32, i32) {
    %c0_i32 = arith.constant 0 : i32
    return %arg0, %arg1 : i32, i32
  }
}

module attributes {stable_mosaic.version = 11 : i64} {
  func.func @_mm_fused_kernel(%arg0: i32, %arg1: i32, %arg2: memref<128x128xbf16, #tpu.memory_space<vmem>>, %arg3: memref<128x128xbf16, #tpu.memory_space<vmem>>, %arg4: memref<1x128xf32, #tpu.memory_space<vmem>>, %arg5: memref<1x128xf32, #tpu.memory_space<vmem>>, %arg6: memref<128x128xbf16, #tpu.memory_space<vmem>>) attributes {dimension_semantics = [#tpu.dimension_semantics<parallel>, #tpu.dimension_semantics<parallel>], iteration_bounds = array<i64: 1, 1>, scalar_prefetch = 0 : i64, scratch_operands = 0 : i64, tpu.core_type = #tpu.core_type<tc>, window_params = [{transform_indices = @transform_0, window_bounds = array<i64: 128, 128>}, {transform_indices = @transform_1, window_bounds = array<i64: 128, 128>}, {transform_indices = @transform_2, window_bounds = array<i64: 1, 128>}, {transform_indices = @transform_3, window_bounds = array<i64: 1, 128>}, {transform_indices = @transform_4, window_bounds = array<i64: 128, 128>}]} {
    %c0 = arith.constant 0 : index
    %c0_0 = arith.constant 0 : index
    %0 = vector.load %arg2[%c0, %c0_0] : memref<128x128xbf16, #tpu.memory_space<vmem>>, vector<128x128xbf16>
    %c0_1 = arith.constant 0 : index
    %c0_2 = arith.constant 0 : index
    %1 = vector.load %arg3[%c0_1, %c0_2] : memref<128x128xbf16, #tpu.memory_space<vmem>>, vector<128x128xbf16>
    %cst = arith.constant dense<0.000000e+00> : vector<128x128xf32>
    %2 = tpu.matmul %0, %1, %cst {dimension_numbers = #tpu.dot_dimension_numbers<[1], [0], [0], [1], [0, 0, 1, 1], [], []>} : vector<128x128xbf16>, vector<128x128xbf16>, vector<128x128xf32> -> vector<128x128xf32>
    %c0_3 = arith.constant 0 : index
    %c0_4 = arith.constant 0 : index
    %3 = vector.load %arg4[%c0_3, %c0_4] : memref<1x128xf32, #tpu.memory_space<vmem>>, vector<1x128xf32>
    %4 = vector.broadcast %3 : vector<1x128xf32> to vector<128x128xf32>
    %5 = arith.mulf %2, %4 : vector<128x128xf32>
    %c0_5 = arith.constant 0 : index
    %c0_6 = arith.constant 0 : index
    %6 = vector.load %arg5[%c0_5, %c0_6] : memref<1x128xf32, #tpu.memory_space<vmem>>, vector<1x128xf32>
    %7 = vector.broadcast %6 : vector<1x128xf32> to vector<128x128xf32>
    %8 = arith.addf %5, %7 : vector<128x128xf32>
    %cst_7 = arith.constant 0.000000e+00 : f32
    %9 = vector.broadcast %cst_7 : f32 to vector<128x128xf32>
    %10 = arith.maximumf %8, %9 : vector<128x128xf32>
    %11 = arith.truncf %10 : vector<128x128xf32> to vector<128x128xbf16>
    %c0_8 = arith.constant 0 : index
    %c0_9 = arith.constant 0 : index
    %12 = vector.load %arg6[%c0_8, %c0_9] : memref<128x128xbf16, #tpu.memory_space<vmem>>, vector<128x128xbf16>
    tpu.vector_store %arg6[%c0_8, %c0_9], %11 {strides = array<i32>} : memref<128x128xbf16, #tpu.memory_space<vmem>>, vector<128x128xbf16>,
    return
  }
  func.func @transform_0(%arg0: i32, %arg1: i32) -> (i32, i32) {
    %c0_i32 = arith.constant 0 : i32
    %c0_i32_0 = arith.constant 0 : i32
    return %arg0, %c0_i32 : i32, i32
  }
  func.func @transform_1(%arg0: i32, %arg1: i32) -> (i32, i32) {
    %c0_i32 = arith.constant 0 : i32
    %c0_i32_0 = arith.constant 0 : i32
    return %c0_i32, %arg1 : i32, i32
  }
  func.func @transform_2(%arg0: i32, %arg1: i32) -> (i32, i32) {
    %c0_i32 = arith.constant 0 : i32
    %c0_i32_0 = arith.constant 0 : i32
    return %c0_i32, %arg1 : i32, i32
  }
  func.func @transform_3(%arg0: i32, %arg1: i32) -> (i32, i32) {
    %c0_i32 = arith.constant 0 : i32
    %c0_i32_0 = arith.constant 0 : i32
    return %c0_i32, %arg1 : i32, i32
  }
  func.func @transform_4(%arg0: i32, %arg1: i32) -> (i32, i32) {
    %c0_i32 = arith.constant 0 : i32
    return %arg0, %arg1 : i32, i32
  }
}

module attributes {stable_mosaic.version = 11 : i64} {
  func.func @_mm_fused_kernel(%arg0: i32, %arg1: i32, %arg2: memref<32x1152xbf16, #tpu.memory_space<vmem>>, %arg3: memref<1152x128xbf16, #tpu.memory_space<vmem>>, %arg4: memref<1x128xf32, #tpu.memory_space<vmem>>, %arg5: memref<1x128xf32, #tpu.memory_space<vmem>>, %arg6: memref<32x128xbf16, #tpu.memory_space<vmem>>) attributes {dimension_semantics = [#tpu.dimension_semantics<parallel>, #tpu.dimension_semantics<parallel>], iteration_bounds = array<i64: 1, 1>, scalar_prefetch = 0 : i64, scratch_operands = 0 : i64, tpu.core_type = #tpu.core_type<tc>, window_params = [{transform_indices = @transform_0, window_bounds = array<i64: 32, 1152>}, {transform_indices = @transform_1, window_bounds = array<i64: 1152, 128>}, {transform_indices = @transform_2, window_bounds = array<i64: 1, 128>}, {transform_indices = @transform_3, window_bounds = array<i64: 1, 128>}, {transform_indices = @transform_4, window_bounds = array<i64: 32, 128>}]} {
    %c0 = arith.constant 0 : index
    %c0_0 = arith.constant 0 : index
    %0 = vector.load %arg2[%c0, %c0_0] : memref<32x1152xbf16, #tpu.memory_space<vmem>>, vector<32x1152xbf16>
    %c0_1 = arith.constant 0 : index
    %c0_2 = arith.constant 0 : index
    %1 = vector.load %arg3[%c0_1, %c0_2] : memref<1152x128xbf16, #tpu.memory_space<vmem>>, vector<1152x128xbf16>
    %cst = arith.constant dense<0.000000e+00> : vector<32x128xf32>
    %2 = tpu.matmul %0, %1, %cst {dimension_numbers = #tpu.dot_dimension_numbers<[1], [0], [0], [1], [0, 0, 1, 1], [], []>} : vector<32x1152xbf16>, vector<1152x128xbf16>, vector<32x128xf32> -> vector<32x128xf32>
    %c0_3 = arith.constant 0 : index
    %c0_4 = arith.constant 0 : index
    %3 = vector.load %arg4[%c0_3, %c0_4] : memref<1x128xf32, #tpu.memory_space<vmem>>, vector<1x128xf32>
    %4 = vector.broadcast %3 : vector<1x128xf32> to vector<32x128xf32>
    %5 = arith.mulf %2, %4 : vector<32x128xf32>
    %c0_5 = arith.constant 0 : index
    %c0_6 = arith.constant 0 : index
    %6 = vector.load %arg5[%c0_5, %c0_6] : memref<1x128xf32, #tpu.memory_space<vmem>>, vector<1x128xf32>
    %7 = vector.broadcast %6 : vector<1x128xf32> to vector<32x128xf32>
    %8 = arith.addf %5, %7 : vector<32x128xf32>
    %cst_7 = arith.constant 0.000000e+00 : f32
    %9 = vector.broadcast %cst_7 : f32 to vector<32x128xf32>
    %10 = arith.maximumf %8, %9 : vector<32x128xf32>
    %11 = arith.truncf %10 : vector<32x128xf32> to vector<32x128xbf16>
    %c0_8 = arith.constant 0 : index
    %c0_9 = arith.constant 0 : index
    %12 = vector.load %arg6[%c0_8, %c0_9] : memref<32x128xbf16, #tpu.memory_space<vmem>>, vector<32x128xbf16>
    tpu.vector_store %arg6[%c0_8, %c0_9], %11 {strides = array<i32>} : memref<32x128xbf16, #tpu.memory_space<vmem>>, vector<32x128xbf16>,
    return
  }
  func.func @transform_0(%arg0: i32, %arg1: i32) -> (i32, i32) {
    %c0_i32 = arith.constant 0 : i32
    %c0_i32_0 = arith.constant 0 : i32
    return %arg0, %c0_i32 : i32, i32
  }
  func.func @transform_1(%arg0: i32, %arg1: i32) -> (i32, i32) {
    %c0_i32 = arith.constant 0 : i32
    %c0_i32_0 = arith.constant 0 : i32
    return %c0_i32, %arg1 : i32, i32
  }
  func.func @transform_2(%arg0: i32, %arg1: i32) -> (i32, i32) {
    %c0_i32 = arith.constant 0 : i32
    %c0_i32_0 = arith.constant 0 : i32
    return %c0_i32, %arg1 : i32, i32
  }
  func.func @transform_3(%arg0: i32, %arg1: i32) -> (i32, i32) {
    %c0_i32 = arith.constant 0 : i32
    %c0_i32_0 = arith.constant 0 : i32
    return %c0_i32, %arg1 : i32, i32
  }
  func.func @transform_4(%arg0: i32, %arg1: i32) -> (i32, i32) {
    %c0_i32 = arith.constant 0 : i32
    return %arg0, %arg1 : i32, i32
  }
}

module attributes {stable_mosaic.version = 11 : i64} {
  func.func @_mm_fused_kernel(%arg0: i32, %arg1: i32, %arg2: memref<32x128xbf16, #tpu.memory_space<vmem>>, %arg3: memref<128x128xbf16, #tpu.memory_space<vmem>>, %arg4: memref<1x128xf32, #tpu.memory_space<vmem>>, %arg5: memref<1x128xf32, #tpu.memory_space<vmem>>, %arg6: memref<32x128xbf16, #tpu.memory_space<vmem>>) attributes {dimension_semantics = [#tpu.dimension_semantics<parallel>, #tpu.dimension_semantics<parallel>], iteration_bounds = array<i64: 1, 1>, scalar_prefetch = 0 : i64, scratch_operands = 0 : i64, tpu.core_type = #tpu.core_type<tc>, window_params = [{transform_indices = @transform_0, window_bounds = array<i64: 32, 128>}, {transform_indices = @transform_1, window_bounds = array<i64: 128, 128>}, {transform_indices = @transform_2, window_bounds = array<i64: 1, 128>}, {transform_indices = @transform_3, window_bounds = array<i64: 1, 128>}, {transform_indices = @transform_4, window_bounds = array<i64: 32, 128>}]} {
    %c0 = arith.constant 0 : index
    %c0_0 = arith.constant 0 : index
    %0 = vector.load %arg2[%c0, %c0_0] : memref<32x128xbf16, #tpu.memory_space<vmem>>, vector<32x128xbf16>
    %c0_1 = arith.constant 0 : index
    %c0_2 = arith.constant 0 : index
    %1 = vector.load %arg3[%c0_1, %c0_2] : memref<128x128xbf16, #tpu.memory_space<vmem>>, vector<128x128xbf16>
    %cst = arith.constant dense<0.000000e+00> : vector<32x128xf32>
    %2 = tpu.matmul %0, %1, %cst {dimension_numbers = #tpu.dot_dimension_numbers<[1], [0], [0], [1], [0, 0, 1, 1], [], []>} : vector<32x128xbf16>, vector<128x128xbf16>, vector<32x128xf32> -> vector<32x128xf32>
    %c0_3 = arith.constant 0 : index
    %c0_4 = arith.constant 0 : index
    %3 = vector.load %arg4[%c0_3, %c0_4] : memref<1x128xf32, #tpu.memory_space<vmem>>, vector<1x128xf32>
    %4 = vector.broadcast %3 : vector<1x128xf32> to vector<32x128xf32>
    %5 = arith.mulf %2, %4 : vector<32x128xf32>
    %c0_5 = arith.constant 0 : index
    %c0_6 = arith.constant 0 : index
    %6 = vector.load %arg5[%c0_5, %c0_6] : memref<1x128xf32, #tpu.memory_space<vmem>>, vector<1x128xf32>
    %7 = vector.broadcast %6 : vector<1x128xf32> to vector<32x128xf32>
    %8 = arith.addf %5, %7 : vector<32x128xf32>
    %9 = arith.truncf %8 : vector<32x128xf32> to vector<32x128xbf16>
    %c0_7 = arith.constant 0 : index
    %c0_8 = arith.constant 0 : index
    %10 = vector.load %arg6[%c0_7, %c0_8] : memref<32x128xbf16, #tpu.memory_space<vmem>>, vector<32x128xbf16>
    tpu.vector_store %arg6[%c0_7, %c0_8], %9 {strides = array<i32>} : memref<32x128xbf16, #tpu.memory_space<vmem>>, vector<32x128xbf16>,
    return
  }
  func.func @transform_0(%arg0: i32, %arg1: i32) -> (i32, i32) {
    %c0_i32 = arith.constant 0 : i32
    %c0_i32_0 = arith.constant 0 : i32
    return %arg0, %c0_i32 : i32, i32
  }
  func.func @transform_1(%arg0: i32, %arg1: i32) -> (i32, i32) {
    %c0_i32 = arith.constant 0 : i32
    %c0_i32_0 = arith.constant 0 : i32
    return %c0_i32, %arg1 : i32, i32
  }
  func.func @transform_2(%arg0: i32, %arg1: i32) -> (i32, i32) {
    %c0_i32 = arith.constant 0 : i32
    %c0_i32_0 = arith.constant 0 : i32
    return %c0_i32, %arg1 : i32, i32
  }
  func.func @transform_3(%arg0: i32, %arg1: i32) -> (i32, i32) {
    %c0_i32 = arith.constant 0 : i32
    %c0_i32_0 = arith.constant 0 : i32
    return %c0_i32, %arg1 : i32, i32
  }
  func.func @transform_4(%arg0: i32, %arg1: i32) -> (i32, i32) {
    %c0_i32 = arith.constant 0 : i32
    return %arg0, %arg1 : i32, i32
  }
}

module attributes {stable_mosaic.version = 11 : i64} {
  func.func @_mm_fused_kernel(%arg0: i32, %arg1: i32, %arg2: memref<32x128xbf16, #tpu.memory_space<vmem>>, %arg3: memref<128x128xbf16, #tpu.memory_space<vmem>>, %arg4: memref<1x128xf32, #tpu.memory_space<vmem>>, %arg5: memref<1x128xf32, #tpu.memory_space<vmem>>, %arg6: memref<32x128xbf16, #tpu.memory_space<vmem>>, %arg7: memref<32x128xbf16, #tpu.memory_space<vmem>>) attributes {dimension_semantics = [#tpu.dimension_semantics<parallel>, #tpu.dimension_semantics<parallel>], iteration_bounds = array<i64: 1, 1>, scalar_prefetch = 0 : i64, scratch_operands = 0 : i64, tpu.core_type = #tpu.core_type<tc>, window_params = [{transform_indices = @transform_0, window_bounds = array<i64: 32, 128>}, {transform_indices = @transform_1, window_bounds = array<i64: 128, 128>}, {transform_indices = @transform_2, window_bounds = array<i64: 1, 128>}, {transform_indices = @transform_3, window_bounds = array<i64: 1, 128>}, {transform_indices = @transform_4, window_bounds = array<i64: 32, 128>}, {transform_indices = @transform_5, window_bounds = array<i64: 32, 128>}]} {
    %c0 = arith.constant 0 : index
    %c0_0 = arith.constant 0 : index
    %0 = vector.load %arg2[%c0, %c0_0] : memref<32x128xbf16, #tpu.memory_space<vmem>>, vector<32x128xbf16>
    %c0_1 = arith.constant 0 : index
    %c0_2 = arith.constant 0 : index
    %1 = vector.load %arg3[%c0_1, %c0_2] : memref<128x128xbf16, #tpu.memory_space<vmem>>, vector<128x128xbf16>
    %cst = arith.constant dense<0.000000e+00> : vector<32x128xf32>
    %2 = tpu.matmul %0, %1, %cst {dimension_numbers = #tpu.dot_dimension_numbers<[1], [0], [0], [1], [0, 0, 1, 1], [], []>} : vector<32x128xbf16>, vector<128x128xbf16>, vector<32x128xf32> -> vector<32x128xf32>
    %c0_3 = arith.constant 0 : index
    %c0_4 = arith.constant 0 : index
    %3 = vector.load %arg4[%c0_3, %c0_4] : memref<1x128xf32, #tpu.memory_space<vmem>>, vector<1x128xf32>
    %4 = vector.broadcast %3 : vector<1x128xf32> to vector<32x128xf32>
    %5 = arith.mulf %2, %4 : vector<32x128xf32>
    %c0_5 = arith.constant 0 : index
    %c0_6 = arith.constant 0 : index
    %6 = vector.load %arg5[%c0_5, %c0_6] : memref<1x128xf32, #tpu.memory_space<vmem>>, vector<1x128xf32>
    %7 = vector.broadcast %6 : vector<1x128xf32> to vector<32x128xf32>
    %8 = arith.addf %5, %7 : vector<32x128xf32>
    %c0_7 = arith.constant 0 : index
    %c0_8 = arith.constant 0 : index
    %9 = vector.load %arg6[%c0_7, %c0_8] : memref<32x128xbf16, #tpu.memory_space<vmem>>, vector<32x128xbf16>
    %10 = arith.extf %9 : vector<32x128xbf16> to vector<32x128xf32>
    %11 = arith.addf %8, %10 : vector<32x128xf32>
    %cst_9 = arith.constant 0.000000e+00 : f32
    %12 = vector.broadcast %cst_9 : f32 to vector<32x128xf32>
    %13 = arith.maximumf %11, %12 : vector<32x128xf32>
    %14 = arith.truncf %13 : vector<32x128xf32> to vector<32x128xbf16>
    %c0_10 = arith.constant 0 : index
    %c0_11 = arith.constant 0 : index
    %15 = vector.load %arg7[%c0_10, %c0_11] : memref<32x128xbf16, #tpu.memory_space<vmem>>, vector<32x128xbf16>
    tpu.vector_store %arg7[%c0_10, %c0_11], %14 {strides = array<i32>} : memref<32x128xbf16, #tpu.memory_space<vmem>>, vector<32x128xbf16>,
    return
  }
  func.func @transform_0(%arg0: i32, %arg1: i32) -> (i32, i32) {
    %c0_i32 = arith.constant 0 : i32
    %c0_i32_0 = arith.constant 0 : i32
    return %arg0, %c0_i32 : i32, i32
  }
  func.func @transform_1(%arg0: i32, %arg1: i32) -> (i32, i32) {
    %c0_i32 = arith.constant 0 : i32
    %c0_i32_0 = arith.constant 0 : i32
    return %c0_i32, %arg1 : i32, i32
  }
  func.func @transform_2(%arg0: i32, %arg1: i32) -> (i32, i32) {
    %c0_i32 = arith.constant 0 : i32
    %c0_i32_0 = arith.constant 0 : i32
    return %c0_i32, %arg1 : i32, i32
  }
  func.func @transform_3(%arg0: i32, %arg1: i32) -> (i32, i32) {
    %c0_i32 = arith.constant 0 : i32
    %c0_i32_0 = arith.constant 0 : i32
    return %c0_i32, %arg1 : i32, i32
  }
  func.func @transform_4(%arg0: i32, %arg1: i32) -> (i32, i32) {
    %c0_i32 = arith.constant 0 : i32
    %0 = arith.addi %arg1, %c0_i32 : i32
    %c0_i32_0 = arith.constant 0 : i32
    return %arg0, %0 : i32, i32
  }
  func.func @transform_5(%arg0: i32, %arg1: i32) -> (i32, i32) {
    %c0_i32 = arith.constant 0 : i32
    return %arg0, %arg1 : i32, i32
  }
}

</mosaic_0001>

<bundles_post_ra>
// kernel: encoder_cnn_forward.9
= control target key start
LH: loop header
LB: loop body
LE: loop exit
PB: predicated region body
PF: predicated region fallthrough
CT: control target
= control target key end

     0   :  { %s1513_s15 = smov 0   ;;  %s1515_s16 = smov 0   ;;  %s1722_s0 = inlined_call_operand.vmem [shape: bf16[512,147], index: 0, kind: input, shape index: {}]   ;;  %s1723_s1 = inlined_call_operand.vmem [shape: bf16[147,128], index: 1, kind: input, shape index: {}]   ;;  %s1724_s2 = inlined_call_operand.vmem [shape: f32[1,128], index: 2, kind: input, shape index: {}]   ;;  %s1725_s3 = inlined_call_operand.vmem [shape: f32[1,128], index: 3, kind: input, shape index: {}]   ;;  %s1726_s4 = inlined_call_operand.vmem [shape: bf16[512,128], index: 4, kind: output, shape index: {}]  }
   0x1   :  { %s1517_s17 = smov 0  }
   0x2 LB: > { %s26_s18 = sadd.s32 1, %s1480_s16  ;;  %p1130_p0 = scmp.ge.s32.totalorder %s1484_s17, 1  ;;  %s1484_s17 = sphi %s1517_s17, %s14_s17   ;;  %s1480_s16 = sphi %s1515_s16, %s1728_s16   ;;  %s1476_s15 = sphi %s1513_s15, %s1727_s15  }
   0x3   : > { %p28_p1 = scmp.ge.s32.totalorder %s26_s18, 2  ;;  %p203_p2 = scmp.lt.s32.totalorder %s1484_s17, 3 }
   0x5   : > { %s1730_s18 = smov (%p28_p1, %s26_s18), 0  ;;  %p204_p3 = pnand %p1130_p0, %p203_p2 }
   0x6   : > { %v1404_v0 = vld [vmem:[%s1723_s1] sm:$0xff] (!%p204_p3)   ;;  %v1486_v1 = vmov (!%p204_p3), 0   ;;  %v1405_v2 = vld [vmem:[%s1723_s1 + $0x8] sm:$0xff] (!%p204_p3)   ;;  %v1406_v3 = vld [vmem:[%s1723_s1 + $0x10] sm:$0xff] (!%p204_p3)   ;;  %s1131_s25 = sshll.u32 (!%p204_p3), %s1476_s15, 5  ;;  %vm522_vm0 = vcmask (!%p204_p3), 154624  }
   0x7   : > { %207 = sbr.rel (%p204_p3) target bundleno = 327 (0x147), region = 36  ;;  %578 = vmatprep.subr.bf16.mxu0 (!%p204_p3), %v1486_v1  ;;  %1358 = vmatprep.subr.bf16.mxu1 (!%p204_p3), %v1486_v1  ;;  %p244_p4 = scmp.lt.s32.totalorder (!%p204_p3), %s1131_s25, 63  ;;  %v1407_v4 = vld [vmem:[%s1723_s1 + $0x18] sm:$0xff] (!%p204_p3)   ;;  %v1408_v5 = vld [vmem:[%s1723_s1 + $0x20] sm:$0xff] (!%p204_p3)   ;;  %v1409_v8 = vld [vmem:[%s1723_s1 + $0x28] sm:$0xff] (!%p204_p3)   ;;  %vm571_vm1 = vcmask (!%p204_p3), 1040384  }
   0x8   : > { %579 = vmatpush1.bf16.msra.mxu0 (!%p204_p3), %v1404_v0  ;;  %1368 = vmatpush1.bf16.msra.mxu1 (!%p204_p3), %v1404_v0  ;;  %v1410_v9 = vld [vmem:[%s1723_s1 + $0x30] sm:$0xff] (!%p204_p3)   ;;  %v1411_v10 = vld [vmem:[%s1723_s1 + $0x38] sm:$0xff] (!%p204_p3)   ;;  %vm572_vm2 = vcmask (!%p204_p3), 1041408   ;;  %v1487_v11 = vmov (!%p204_p3), 65535   ;;  %v1412_v13 = vld [vmem:[%s1723_s1 + $0x40] sm:$0xff] (!%p204_p3)  }
   0x9   : > { %580 = vmatprep.subr.bf16.mxu0 (!%p204_p3), %v1486_v1  ;;  %1359 = vmatprep.subr.bf16.mxu1 (!%p204_p3), %v1486_v1  ;;  %v573_v12 = vsel (!%p204_p3), %vm571_vm1, 4294967295, %v1487_v11  ;;  %v1413_v14 = vld [vmem:[%s1723_s1 + $0x48] ss:$0 sps:$4 sm:$0x33] (!%p204_p3)   ;;  %v1620_v47 = vld [vmem:[%s1724_s2] ss:$0 sm:$0xff] (!%p204_p3) }
   0xa   : > { %v574_v15 = vsel (!%p204_p3), %vm572_vm2, %v573_v12, 0  ;;  %v1625_v49 = vld [vmem:[%s1725_s3] ss:$0 sm:$0xff] (!%p204_p3) }
   0xb   : > { %v576_v16 = vand.u32 (!%p204_p3), %v1413_v14, %v574_v15 }
   0xc   : > { %581 = vmatpush1.bf16.msra.mxu0 (!%p204_p3), %v1405_v2  ;;  %1369 = vmatpush1.bf16.msra.mxu1 (!%p204_p3), %v1405_v2 }
   0xd   : > { %582 = vmatprep.subr.bf16.mxu0 (!%p204_p3), %v1486_v1  ;;  %1360 = vmatprep.subr.bf16.mxu1 (!%p204_p3), %v1486_v1 }
   0xe   : > { %s1732_s25 = smov (!%p244_p4, %s1131_s25), 63 }
   0xf   : > { %s1230_s28 = sshll.u32 %s1732_s25, 3  ;;  %s1135_s26 = sshll.u32 %s1732_s25, 2 }
  0x10   : > { %583 = vmatpush1.bf16.msra.mxu0 %v1406_v3  ;;  %1370 = vmatpush1.bf16.msra.mxu1 %v1406_v3  ;;  %s1549_s5 = scalar_lea.vmem %s1722_s0, %s1230_s28  ;;  %s1639_s29 = scalar_lea.vmem %s1726_s4, %s1135_s26 }
  0x11   : > { %584 = vmatprep.subr.bf16.mxu0 %v1486_v1  ;;  %1361 = vmatprep.subr.bf16.mxu1 %v1486_v1  ;;  %v1416_v6 = vld [vmem:[%s1549_s5 + $0x4] ss:$8 sps:$4 sm:$0xff]   ;;  %v1414_v17 = vld [vmem:[%s1549_s5] ss:$8 sps:$4 sm:$0xff]   ;;  %v1420_v19 = vld [vmem:[%s1549_s5 + $0x14] ss:$8 sps:$4 sm:$0xff]  }
  0x12   : > { %v1419_v7 = vld [vmem:[%s1549_s5 + $0x84] ss:$8 sps:$4 sm:$0xff]   ;;  %1178 = vmatprep.mubr.msk.bf16.mxu0 %vm522_vm0, %v1416_v6  ;;  %v1417_v18 = vld [vmem:[%s1549_s5 + $0x80] ss:$8 sps:$4 sm:$0xff]   ;;  %v1422_v20 = vld [vmem:[%s1549_s5 + $0x94] ss:$8 sps:$4 sm:$0xff]  }
  0x13   : > { %1186 = vmatprep.mubr.msk.bf16.mxu1 %vm522_vm0, %v1419_v7  ;;  %v1424_v21 = vld [vmem:[%s1549_s5 + $0x10] ss:$8 sps:$4 sm:$0xff]   ;;  %v1426_v23 = vld [vmem:[%s1549_s5 + $0x24] ss:$8 sps:$4 sm:$0xff]   ;;  %v1430_v25 = vld [vmem:[%s1549_s5 + $0x20] ss:$8 sps:$4 sm:$0xff]  }
  0x14   : > { %585 = vmatpush1.bf16.msra.mxu0 %v1407_v4  ;;  %1371 = vmatpush1.bf16.msra.mxu1 %v1407_v4  ;;  %v1425_v22 = vld [vmem:[%s1549_s5 + $0x90] ss:$8 sps:$4 sm:$0xff]   ;;  %v1428_v24 = vld [vmem:[%s1549_s5 + $0xa4] ss:$8 sps:$4 sm:$0xff]   ;;  %v1431_v26 = vld [vmem:[%s1549_s5 + $0xa0] ss:$8 sps:$4 sm:$0xff]  }
  0x15   : > { %586 = vmatprep.subr.bf16.mxu0 %v1486_v1  ;;  %1362 = vmatprep.subr.bf16.mxu1 %v1486_v1  ;;  %v1432_v27 = vld [vmem:[%s1549_s5 + $0x34] ss:$8 sps:$4 sm:$0xff]   ;;  %v1436_v29 = vld [vmem:[%s1549_s5 + $0x30] ss:$8 sps:$4 sm:$0xff]   ;;  %v1438_v31 = vld [vmem:[%s1549_s5 + $0x44] ss:$8 sps:$4 sm:$0xff]  }
  0x16   : > { %v1434_v28 = vld [vmem:[%s1549_s5 + $0xb4] ss:$8 sps:$4 sm:$0xff]   ;;  %v1437_v30 = vld [vmem:[%s1549_s5 + $0xb0] ss:$8 sps:$4 sm:$0xff]   ;;  %v1440_v32 = vld [vmem:[%s1549_s5 + $0xc4] ss:$8 sps:$4 sm:$0xff]  }
  0x17   : > { %v1442_v33 = vld [vmem:[%s1549_s5 + $0x40] ss:$8 sps:$4 sm:$0xff]   ;;  %v1444_v35 = vld [vmem:[%s1549_s5 + $0x54] ss:$8 sps:$4 sm:$0xff]   ;;  %v1448_v37 = vld [vmem:[%s1549_s5 + $0x50] ss:$8 sps:$4 sm:$0xff]  }
  0x18   : > { %587 = vmatpush1.bf16.msra.mxu0 %v1408_v5  ;;  %1372 = vmatpush1.bf16.msra.mxu1 %v1408_v5  ;;  %v1443_v34 = vld [vmem:[%s1549_s5 + $0xc0] ss:$8 sps:$4 sm:$0xff]   ;;  %v1446_v36 = vld [vmem:[%s1549_s5 + $0xd4] ss:$8 sps:$4 sm:$0xff]   ;;  %v1449_v38 = vld [vmem:[%s1549_s5 + $0xd0] ss:$8 sps:$4 sm:$0xff]  }
  0x19   : > { %588 = vmatprep.subr.bf16.mxu0 %v1486_v1  ;;  %1363 = vmatprep.subr.bf16.mxu1 %v1486_v1  ;;  %v1450_v39 = vld [vmem:[%s1549_s5 + $0x64] ss:$8 sps:$4 sm:$0xff]   ;;  %v1454_v41 = vld [vmem:[%s1549_s5 + $0x60] ss:$8 sps:$4 sm:$0xff]   ;;  %v1456_v43 = vld [vmem:[%s1549_s5 + $0x74] ss:$8 sps:$4 sm:$0xff]  }
  0x1a   : > { %v1452_v40 = vld [vmem:[%s1549_s5 + $0xe4] ss:$8 sps:$4 sm:$0xff]   ;;  %v1455_v42 = vld [vmem:[%s1549_s5 + $0xe0] ss:$8 sps:$4 sm:$0xff]   ;;  %v1458_v44 = vld [vmem:[%s1549_s5 + $0xf4] ss:$8 sps:$4 sm:$0xff]  }
  0x1b   : > { %v1460_v45 = vld [vmem:[%s1549_s5 + $0x70] ss:$8 sps:$4 sm:$0xff]  }
  0x1c   : > { %589 = vmatpush1.bf16.msra.mxu0 %v1409_v8  ;;  %1373 = vmatpush1.bf16.msra.mxu1 %v1409_v8  ;;  %v1461_v46 = vld [vmem:[%s1549_s5 + $0xf0] ss:$8 sps:$4 sm:$0xff]  }
  0x1d   : > { %590 = vmatprep.subr.bf16.mxu0 %v1486_v1  ;;  %1364 = vmatprep.subr.bf16.mxu1 %v1486_v1 }
  0x20   : > { %591 = vmatpush1.bf16.msra.mxu0 %v1410_v9  ;;  %1374 = vmatpush1.bf16.msra.mxu1 %v1410_v9 }
  0x21   : > { %592 = vmatprep.subr.bf16.mxu0 %v1486_v1  ;;  %1365 = vmatprep.subr.bf16.mxu1 %v1486_v1 }
  0x24   : > { %593 = vmatpush1.bf16.msra.mxu0 %v1411_v10  ;;  %1375 = vmatpush1.bf16.msra.mxu1 %v1411_v10 }
  0x25   : > { %594 = vmatprep.subr.bf16.mxu0 %v1486_v1  ;;  %1366 = vmatprep.subr.bf16.mxu1 %v1486_v1 }
  0x28   : > { %595 = vmatpush1.bf16.msra.mxu0 %v1412_v13  ;;  %1376 = vmatpush1.bf16.msra.mxu1 %v1412_v13 }
  0x29   : > { %596 = vmatprep.subr.bf16.mxu0 %v1486_v1  ;;  %1367 = vmatprep.subr.bf16.mxu1 %v1486_v1 }
  0x2c   : > { %597 = vmatpush1.bf16.msra.mxu0 %v576_v16  ;;  %1377 = vmatpush1.bf16.msra.mxu1 %v576_v16 }
  0x2f   : > { %611 = vmatmul.mubr.bf16.vlgmr.msra.gmra.mrb[0].mxu0 %v1414_v17  ;;  %675 = vmatmul.mubr.bf16.vlgmr.msra.gmra.mrb[0].mxu1 %v1417_v18 }
  0x30   : > { %1179 = vmatprep.mubr.msk.bf16.mxu0 %vm522_vm0, %v1420_v19  ;;  %1187 = vmatprep.mubr.msk.bf16.mxu1 %vm522_vm0, %v1422_v20 }
  0x37   : > { %619 = vmatmul.mubr.bf16.gmra.mrb[4].mxu0 %v1424_v21  ;;  %683 = vmatmul.mubr.bf16.gmra.mrb[4].mxu1 %v1425_v22 }
  0x38   : > { %1180 = vmatprep.mubr.msk.bf16.mxu0 %vm522_vm0, %v1426_v23  ;;  %1188 = vmatprep.mubr.msk.bf16.mxu1 %vm522_vm0, %v1428_v24 }
  0x3f   : > { %627 = vmatmul.mubr.bf16.gmra.mrb[8].mxu0 %v1430_v25  ;;  %691 = vmatmul.mubr.bf16.gmra.mrb[8].mxu1 %v1431_v26 }
  0x40   : > { %1181 = vmatprep.mubr.msk.bf16.mxu0 %vm522_vm0, %v1432_v27  ;;  %1189 = vmatprep.mubr.msk.bf16.mxu1 %vm522_vm0, %v1434_v28 }
  0x47   : > { %635 = vmatmul.mubr.bf16.gmra.mrb[12].mxu0 %v1436_v29  ;;  %699 = vmatmul.mubr.bf16.gmra.mrb[12].mxu1 %v1437_v30 }
  0x48   : > { %1182 = vmatprep.mubr.msk.bf16.mxu0 %vm522_vm0, %v1438_v31  ;;  %1190 = vmatprep.mubr.msk.bf16.mxu1 %vm522_vm0, %v1440_v32 }
  0x4f   : > { %643 = vmatmul.mubr.bf16.gmra.mrb[16].mxu0 %v1442_v33  ;;  %707 = vmatmul.mubr.bf16.gmra.mrb[16].mxu1 %v1443_v34 }
  0x50   : > { %1183 = vmatprep.mubr.msk.bf16.mxu0 %vm522_vm0, %v1444_v35  ;;  %1191 = vmatprep.mubr.msk.bf16.mxu1 %vm522_vm0, %v1446_v36 }
  0x57   : > { %651 = vmatmul.mubr.bf16.gmra.mrb[20].mxu0 %v1448_v37  ;;  %715 = vmatmul.mubr.bf16.gmra.mrb[20].mxu1 %v1449_v38 }
  0x58   : > { %1184 = vmatprep.mubr.msk.bf16.mxu0 %vm522_vm0, %v1450_v39  ;;  %1192 = vmatprep.mubr.msk.bf16.mxu1 %vm522_vm0, %v1452_v40 }
  0x5f   : > { %659 = vmatmul.mubr.bf16.gmra.mrb[24].mxu0 %v1454_v41  ;;  %723 = vmatmul.mubr.bf16.gmra.mrb[24].mxu1 %v1455_v42 }
  0x60   : > { %1185 = vmatprep.mubr.msk.bf16.mxu0 %vm522_vm0, %v1456_v43  ;;  %1193 = vmatprep.mubr.msk.bf16.mxu1 %vm522_vm0, %v1458_v44 }
  0x67   : > { %667 = vmatmul.mubr.bf16.gmra.mrb[28].mxu0 %v1460_v45  ;;  %731 = vmatmul.mubr.bf16.gmra.mrb[28].mxu1 %v1461_v46 }
 0x102   : > { %v612_v48 = vpop.f32.mrb[0].mxu0  ;;  %v676_v50 = vpop.f32.mrb[0].mxu1 }
 0x103   : > { %v746_v51 = vmul.f32 %v1620_v47, %v612_v48  ;;  %v762_v52 = vmul.f32 %v1620_v47, %v676_v50  ;;  %v614_v53 = vpop.f32.mrb[1].mxu0  ;;  %v678_v54 = vpop.f32.mrb[1].mxu1 }
 0x104   : > { %v615_v55 = vpop.f32.mrb[2].mxu0  ;;  %v679_v56 = vpop.f32.mrb[2].mxu1 }
 0x105   : > { %v785_v57 = vadd.f32 %v1625_v49, %v746_v51  ;;  %v801_v58 = vadd.f32 %v1625_v49, %v762_v52  ;;  %v747_v59 = vmul.f32 %v1620_v47, %v615_v55  ;;  %v763_v60 = vmul.f32 %v1620_v47, %v679_v56  ;;  %v617_v61 = vpop.f32.mrb[3].mxu0  ;;  %v681_v62 = vpop.f32.mrb[3].mxu1 }
 0x107   : > { %v786_v63 = vadd.f32 %v1625_v49, %v747_v59  ;;  %v802_v0 = vadd.f32 %v1625_v49, %v763_v60  ;;  %v817_v1 = vmax.f32 %v785_v57, 0.0  ;;  %v833_v2 = vmax.f32 %v801_v58, 0.0 }
 0x109   : > { %v818_v3 = vmax.f32 %v786_v63, 0.0  ;;  %v834_v4 = vmax.f32 %v802_v0, 0.0 }
 0x10a   : > { %v620_v5 = vpop.f32.mrb[4].mxu0  ;;  %v684_v6 = vpop.f32.mrb[4].mxu1 }
 0x10b   : > { %v1266_v7 = vpack.c.bf16 %v818_v3, %v817_v1  ;;  %v1306_v8 = vpack.c.bf16 %v834_v4, %v833_v2  ;;  %v748_v9 = vmul.f32 %v1620_v47, %v620_v5  ;;  %v764_v10 = vmul.f32 %v1620_v47, %v684_v6  ;;  %v622_v11 = vpop.f32.mrb[5].mxu0  ;;  %v686_v12 = vpop.f32.mrb[5].mxu1 }
 0x10c   : > { %v623_v13 = vpop.f32.mrb[6].mxu0  ;;  %v687_v14 = vpop.f32.mrb[6].mxu1 }
 0x10d   : > { %1267 = vst [vmem:[%s1639_s29] sm:$0xff] %v1266_v7   ;;  %1350 = vst [vmem:[%s1639_s29 + $0x40] sm:$0xff] %v1306_v8   ;;  %v787_v15 = vadd.f32 %v1625_v49, %v748_v9  ;;  %v803_v16 = vadd.f32 %v1625_v49, %v764_v10  ;;  %v749_v17 = vmul.f32 %v1620_v47, %v623_v13  ;;  %v625_v19 = vpop.f32.mrb[7].mxu0  ;;  %v689_v20 = vpop.f32.mrb[7].mxu1 }
 0x10e   : > { %v765_v18 = vmul.f32 %v1620_v47, %v687_v14 }
 0x10f   : > { %v788_v21 = vadd.f32 %v1625_v49, %v749_v17  ;;  %v819_v23 = vmax.f32 %v787_v15, 0.0  ;;  %v835_v24 = vmax.f32 %v803_v16, 0.0 }
 0x110   : > { %v804_v22 = vadd.f32 %v1625_v49, %v765_v18 }
 0x111   : > { %v820_v25 = vmax.f32 %v788_v21, 0.0 }
 0x112   : > { %v836_v26 = vmax.f32 %v804_v22, 0.0  ;;  %v628_v27 = vpop.f32.mrb[8].mxu0  ;;  %v692_v28 = vpop.f32.mrb[8].mxu1 }
 0x113   : > { %v1271_v29 = vpack.c.bf16 %v820_v25, %v819_v23  ;;  %v750_v31 = vmul.f32 %v1620_v47, %v628_v27  ;;  %v766_v32 = vmul.f32 %v1620_v47, %v692_v28  ;;  %v630_v33 = vpop.f32.mrb[9].mxu0  ;;  %v694_v34 = vpop.f32.mrb[9].mxu1 }
 0x114   : > { %v1311_v30 = vpack.c.bf16 %v836_v26, %v835_v24  ;;  %v631_v35 = vpop.f32.mrb[10].mxu0  ;;  %v695_v36 = vpop.f32.mrb[10].mxu1 }
 0x115   : > { %1343 = vst [vmem:[%s1639_s29 + $0x8] sm:$0xff] %v1271_v29   ;;  %v789_v37 = vadd.f32 %v1625_v49, %v750_v31  ;;  %v805_v38 = vadd.f32 %v1625_v49, %v766_v32  ;;  %v751_v39 = vmul.f32 %v1620_v47, %v631_v35  ;;  %v767_v40 = vmul.f32 %v1620_v47, %v695_v36  ;;  %v633_v41 = vpop.f32.mrb[11].mxu0  ;;  %v697_v42 = vpop.f32.mrb[11].mxu1 }
 0x116   : > { %1351 = vst [vmem:[%s1639_s29 + $0x48] sm:$0xff] %v1311_v30  }
 0x117   : > { %v790_v43 = vadd.f32 %v1625_v49, %v751_v39  ;;  %v806_v44 = vadd.f32 %v1625_v49, %v767_v40  ;;  %v821_v45 = vmax.f32 %v789_v37, 0.0  ;;  %v837_v46 = vmax.f32 %v805_v38, 0.0 }
 0x119   : > { %v822_v48 = vmax.f32 %v790_v43, 0.0  ;;  %v838_v50 = vmax.f32 %v806_v44, 0.0 }
 0x11a   : > { %v636_v51 = vpop.f32.mrb[12].mxu0  ;;  %v700_v52 = vpop.f32.mrb[12].mxu1 }
 0x11b   : > { %v1276_v53 = vpack.c.bf16 %v822_v48, %v821_v45  ;;  %v1316_v54 = vpack.c.bf16 %v838_v50, %v837_v46  ;;  %v752_v55 = vmul.f32 %v1620_v47, %v636_v51  ;;  %v768_v56 = vmul.f32 %v1620_v47, %v700_v52  ;;  %v638_v57 = vpop.f32.mrb[13].mxu0  ;;  %v702_v58 = vpop.f32.mrb[13].mxu1 }
 0x11c   : > { %v639_v59 = vpop.f32.mrb[14].mxu0  ;;  %v703_v60 = vpop.f32.mrb[14].mxu1 }
 0x11d   : > { %1344 = vst [vmem:[%s1639_s29 + $0x10] sm:$0xff] %v1276_v53   ;;  %1352 = vst [vmem:[%s1639_s29 + $0x50] sm:$0xff] %v1316_v54   ;;  %v791_v61 = vadd.f32 %v1625_v49, %v752_v55  ;;  %v807_v62 = vadd.f32 %v1625_v49, %v768_v56  ;;  %v753_v63 = vmul.f32 %v1620_v47, %v639_v59  ;;  %v641_v1 = vpop.f32.mrb[15].mxu0  ;;  %v705_v2 = vpop.f32.mrb[15].mxu1 }
 0x11e   : > { %v769_v0 = vmul.f32 %v1620_v47, %v703_v60 }
 0x11f   : > { %v792_v3 = vadd.f32 %v1625_v49, %v753_v63  ;;  %v823_v5 = vmax.f32 %v791_v61, 0.0  ;;  %v839_v6 = vmax.f32 %v807_v62, 0.0 }
 0x120   : > { %v808_v4 = vadd.f32 %v1625_v49, %v769_v0 }
 0x121   : > { %v824_v7 = vmax.f32 %v792_v3, 0.0 }
 0x122   : > { %v840_v8 = vmax.f32 %v808_v4, 0.0  ;;  %v644_v9 = vpop.f32.mrb[16].mxu0  ;;  %v708_v10 = vpop.f32.mrb[16].mxu1 }
 0x123   : > { %v1281_v11 = vpack.c.bf16 %v824_v7, %v823_v5  ;;  %v754_v13 = vmul.f32 %v1620_v47, %v644_v9  ;;  %v770_v14 = vmul.f32 %v1620_v47, %v708_v10  ;;  %v646_v15 = vpop.f32.mrb[17].mxu0  ;;  %v710_v16 = vpop.f32.mrb[17].mxu1 }
 0x124   : > { %v1321_v12 = vpack.c.bf16 %v840_v8, %v839_v6  ;;  %v647_v17 = vpop.f32.mrb[18].mxu0  ;;  %v711_v18 = vpop.f32.mrb[18].mxu1 }
 0x125   : > { %1345 = vst [vmem:[%s1639_s29 + $0x18] sm:$0xff] %v1281_v11   ;;  %v793_v19 = vadd.f32 %v1625_v49, %v754_v13  ;;  %v809_v20 = vadd.f32 %v1625_v49, %v770_v14  ;;  %v755_v21 = vmul.f32 %v1620_v47, %v647_v17  ;;  %v771_v22 = vmul.f32 %v1620_v47, %v711_v18  ;;  %v649_v23 = vpop.f32.mrb[19].mxu0  ;;  %v713_v24 = vpop.f32.mrb[19].mxu1 }
 0x126   : > { %1353 = vst [vmem:[%s1639_s29 + $0x58] sm:$0xff] %v1321_v12  }
 0x127   : > { %v794_v25 = vadd.f32 %v1625_v49, %v755_v21  ;;  %v810_v26 = vadd.f32 %v1625_v49, %v771_v22  ;;  %v825_v27 = vmax.f32 %v793_v19, 0.0  ;;  %v841_v28 = vmax.f32 %v809_v20, 0.0 }
 0x129   : > { %v826_v29 = vmax.f32 %v794_v25, 0.0  ;;  %v842_v30 = vmax.f32 %v810_v26, 0.0 }
 0x12a   : > { %v652_v31 = vpop.f32.mrb[20].mxu0  ;;  %v716_v32 = vpop.f32.mrb[20].mxu1 }
 0x12b   : > { %v1286_v33 = vpack.c.bf16 %v826_v29, %v825_v27  ;;  %v1326_v34 = vpack.c.bf16 %v842_v30, %v841_v28  ;;  %v756_v35 = vmul.f32 %v1620_v47, %v652_v31  ;;  %v772_v36 = vmul.f32 %v1620_v47, %v716_v32  ;;  %v654_v37 = vpop.f32.mrb[21].mxu0  ;;  %v718_v38 = vpop.f32.mrb[21].mxu1 }
 0x12c   : > { %v655_v39 = vpop.f32.mrb[22].mxu0  ;;  %v719_v40 = vpop.f32.mrb[22].mxu1 }
 0x12d   : > { %1346 = vst [vmem:[%s1639_s29 + $0x20] sm:$0xff] %v1286_v33   ;;  %1354 = vst [vmem:[%s1639_s29 + $0x60] sm:$0xff] %v1326_v34   ;;  %v795_v41 = vadd.f32 %v1625_v49, %v756_v35  ;;  %v811_v42 = vadd.f32 %v1625_v49, %v772_v36  ;;  %v757_v43 = vmul.f32 %v1620_v47, %v655_v39  ;;  %v657_v45 = vpop.f32.mrb[23].mxu0  ;;  %v721_v46 = vpop.f32.mrb[23].mxu1 }
 0x12e   : > { %v773_v44 = vmul.f32 %v1620_v47, %v719_v40 }
 0x12f   : > { %v796_v48 = vadd.f32 %v1625_v49, %v757_v43  ;;  %v827_v51 = vmax.f32 %v795_v41, 0.0  ;;  %v843_v52 = vmax.f32 %v811_v42, 0.0 }
 0x130   : > { %v812_v50 = vadd.f32 %v1625_v49, %v773_v44 }
 0x131   : > { %v828_v53 = vmax.f32 %v796_v48, 0.0 }
 0x132   : > { %v844_v54 = vmax.f32 %v812_v50, 0.0  ;;  %v660_v55 = vpop.f32.mrb[24].mxu0  ;;  %v724_v56 = vpop.f32.mrb[24].mxu1 }
 0x133   : > { %v1291_v57 = vpack.c.bf16 %v828_v53, %v827_v51  ;;  %v758_v59 = vmul.f32 %v1620_v47, %v660_v55  ;;  %v774_v60 = vmul.f32 %v1620_v47, %v724_v56  ;;  %v662_v61 = vpop.f32.mrb[25].mxu0  ;;  %v726_v62 = vpop.f32.mrb[25].mxu1 }
 0x134   : > { %v1331_v58 = vpack.c.bf16 %v844_v54, %v843_v52  ;;  %v663_v63 = vpop.f32.mrb[26].mxu0  ;;  %v727_v0 = vpop.f32.mrb[26].mxu1 }
 0x135   : > { %1347 = vst [vmem:[%s1639_s29 + $0x28] sm:$0xff] %v1291_v57   ;;  %v797_v1 = vadd.f32 %v1625_v49, %v758_v59  ;;  %v813_v2 = vadd.f32 %v1625_v49, %v774_v60  ;;  %v759_v3 = vmul.f32 %v1620_v47, %v663_v63  ;;  %v775_v4 = vmul.f32 %v1620_v47, %v727_v0  ;;  %v665_v5 = vpop.f32.mrb[27].mxu0  ;;  %v729_v6 = vpop.f32.mrb[27].mxu1 }
 0x136   : > { %1355 = vst [vmem:[%s1639_s29 + $0x68] sm:$0xff] %v1331_v58  }
 0x137   : > { %v798_v7 = vadd.f32 %v1625_v49, %v759_v3  ;;  %v814_v8 = vadd.f32 %v1625_v49, %v775_v4  ;;  %v829_v9 = vmax.f32 %v797_v1, 0.0  ;;  %v845_v10 = vmax.f32 %v813_v2, 0.0 }
 0x139   : > { %v830_v11 = vmax.f32 %v798_v7, 0.0  ;;  %v846_v12 = vmax.f32 %v814_v8, 0.0 }
 0x13a   : > { %v668_v13 = vpop.f32.mrb[28].mxu0  ;;  %v732_v14 = vpop.f32.mrb[28].mxu1 }
 0x13b   : > { %v1296_v15 = vpack.c.bf16 %v830_v11, %v829_v9  ;;  %v1336_v16 = vpack.c.bf16 %v846_v12, %v845_v10  ;;  %v760_v17 = vmul.f32 %v1620_v47, %v668_v13  ;;  %v776_v18 = vmul.f32 %v1620_v47, %v732_v14  ;;  %v670_v19 = vpop.f32.mrb[29].mxu0  ;;  %v734_v20 = vpop.f32.mrb[29].mxu1 }
 0x13c   : > { %v671_v21 = vpop.f32.mrb[30].mxu0  ;;  %v735_v22 = vpop.f32.mrb[30].mxu1 }
 0x13d   : > { %1348 = vst [vmem:[%s1639_s29 + $0x30] sm:$0xff] %v1296_v15   ;;  %1356 = vst [vmem:[%s1639_s29 + $0x70] sm:$0xff] %v1336_v16   ;;  %v799_v23 = vadd.f32 %v1625_v49, %v760_v17  ;;  %v815_v24 = vadd.f32 %v1625_v49, %v776_v18  ;;  %v761_v25 = vmul.f32 %v1620_v47, %v671_v21  ;;  %v673_v27 = vpop.f32.mrb[31].mxu0  ;;  %v737_v28 = vpop.f32.mrb[31].mxu1 }
 0x13e   : > { %v777_v26 = vmul.f32 %v1620_v47, %v735_v22 }
 0x13f   : > { %v800_v29 = vadd.f32 %v1625_v49, %v761_v25  ;;  %v831_v31 = vmax.f32 %v799_v23, 0.0  ;;  %v847_v32 = vmax.f32 %v815_v24, 0.0 }
 0x140   : > { %v816_v30 = vadd.f32 %v1625_v49, %v777_v26 }
 0x141   : > { %v832_v33 = vmax.f32 %v800_v29, 0.0 }
 0x142   : > { %v848_v34 = vmax.f32 %v816_v30, 0.0 }
 0x143   : > { %v1301_v35 = vpack.c.bf16 %v832_v33, %v831_v31 }
 0x144   : > { %v1341_v36 = vpack.c.bf16 %v848_v34, %v847_v32 }
 0x145   : > { %1349 = vst [vmem:[%s1639_s29 + $0x38] sm:$0xff] %v1301_v35  }
 0x146   : > { %1357 = vst [vmem:[%s1639_s29 + $0x78] sm:$0xff] %v1341_v36  }
 0x147 PF: > { %s14_s17 = sadd.s32 1, %s1484_s17   ;;  %s1727_s15 = smov %s1480_s16 }
 0x148   : > { %p11_p5 = scmp.ge.s32.totalorder %s14_s17, 4   ;;  %s1728_s16 = smov %s1730_s18 }
 0x14a   :  { %13 = sbr.rel (!%p11_p5) target bundleno = 2 (0x2), region = 75 }

// kernel: encoder_cnn_forward.10
= control target key start
LH: loop header
LB: loop body
LE: loop exit
PB: predicated region body
PF: predicated region fallthrough
CT: control target
= control target key end

     0   :  { %vm179_vm0 = vsmask.f32 3328  ;;  %vm180_vm1 = vsmask.f32 7440  ;;  %s2529_s1 = inlined_call_operand.vmem [shape: bf16[2,9,9,128], index: 1, kind: input, shape index: {}]   ;;  %s2530_s0 = inlined_call_operand.vmem [shape: bf16[2,9,9,128], index: 0, kind: input, shape index: {}]   ;;  %s2531_s2 = inlined_call_operand.vmem [shape: bf16[2,9,9,128], index: 2, kind: input, shape index: {}]   ;;  %s2532_s3 = inlined_call_operand.vmem [shape: bf16[2,9,9,128], index: 3, kind: input, shape index: {}]   ;;  %s2533_s4 = inlined_call_operand.vmem [shape: bf16[2,8,8,128], index: 4, kind: output, shape index: {}]  }
   0x1   :  { %v1165_v0 = vld [vmem:[%s2529_s1] sm:$0xf]  ;;  %v1170_v1 = vld [vmem:[%s2529_s1 + $0x8] sm:$0xf]  ;;  %v1175_v2 = vld [vmem:[%s2529_s1 + $0x10] sm:$0xf] }
   0x2   :  { %v1180_v3 = vld [vmem:[%s2529_s1 + $0x18] sm:$0xf]  ;;  %v1185_v4 = vld [vmem:[%s2530_s0] sm:$0xf]  ;;  %v1190_v5 = vld [vmem:[%s2530_s0 + $0x8] sm:$0xf] }
   0x3   :  { %v1195_v6 = vld [vmem:[%s2530_s0 + $0x10] sm:$0xf]  ;;  %v1200_v7 = vld [vmem:[%s2530_s0 + $0x18] sm:$0xf]  ;;  %v1205_v8 = vld [vmem:[%s2529_s1 + $0x20] sm:$0xf] }
   0x4   :  { %v1210_v9 = vld [vmem:[%s2529_s1 + $0x28] sm:$0xf]  ;;  %v1215_v10 = vld [vmem:[%s2529_s1 + $0x30] sm:$0xf]  ;;  %v1220_v11 = vld [vmem:[%s2530_s0 + $0x20] sm:$0xf] }
   0x5   :  { %v1225_v12 = vld [vmem:[%s2530_s0 + $0x28] sm:$0xf]  ;;  %v1230_v13 = vld [vmem:[%s2530_s0 + $0x30] sm:$0xf]  ;;  %v1235_v14 = vld [vmem:[%s2530_s0 + $0x38] sm:$0xf] }
   0x6   :  { %v1240_v15 = vld [vmem:[%s2529_s1 + $0x38] sm:$0xf]  ;;  %v1245_v16 = vld [vmem:[%s2529_s1 + $0x48] sm:$0xf]  ;;  %v1250_v17 = vld [vmem:[%s2529_s1 + $0x50] sm:$0xf] }
   0x7   :  { %2549 = vst [vmem:[#allocation2_spill] sm:$0xff] %v1250_v17  ;;  %v1255_v18 = vld [vmem:[%s2530_s0 + $0x48] sm:$0xf]  ;;  %v1260_v19 = vld [vmem:[%s2530_s0 + $0x50] sm:$0xf]  ;;  %v183_v50 = vshrl.u32 %v1185_v4, 16  ;;  %vm1383_vm2 = vmor %vm179_vm0, %vm180_vm1 }
   0x8   :  { %2550 = vst [vmem:[#allocation3_spill] sm:$0xff] %v1255_v18  ;;  %2551 = vst [vmem:[#allocation4_spill] sm:$0xff] %v1260_v19  ;;  %v1265_v20 = vld [vmem:[%s2530_s0 + $0x58] sm:$0xf]  ;;  %v1270_v21 = vld [vmem:[%s2530_s0 + $0x60] sm:$0xf] }
   0x9   :  { %2552 = vst [vmem:[#allocation5_spill] sm:$0xff] %v1265_v20  ;;  %2553 = vst [vmem:[#allocation6_spill] sm:$0xff] %v1270_v21  ;;  %v1275_v22 = vld [vmem:[%s2529_s1 + $0x58] sm:$0xf]  ;;  %v1280_v23 = vld [vmem:[%s2529_s1 + $0x60] sm:$0xf] }
   0xa   :  { %2554 = vst [vmem:[#allocation7_spill] sm:$0xff] %v1275_v22  ;;  %2555 = vst [vmem:[#allocation8_spill] sm:$0xff] %v1280_v23  ;;  %v1285_v24 = vld [vmem:[%s2529_s1 + $0x68] sm:$0xf]  ;;  %v1290_v25 = vld [vmem:[%s2529_s1 + $0x70] sm:$0xf] }
   0xb   :  { %2556 = vst [vmem:[#allocation9_spill] sm:$0xff] %v1285_v24  ;;  %2557 = vst [vmem:[#allocation10_spill] sm:$0xff] %v1290_v25  ;;  %v1295_v26 = vld [vmem:[%s2529_s1 + $0x78] sm:$0xf]  ;;  %v1300_v27 = vld [vmem:[%s2529_s1 + $0x80] sm:$0xf] }
   0xc   :  { %2558 = vst [vmem:[#allocation11_spill] sm:$0xff] %v1295_v26  ;;  %2559 = vst [vmem:[#allocation12_spill] sm:$0xff] %v1300_v27  ;;  %v1313_v32 = vld [vmem:[%s2530_s0 + $0x68] sm:$0xf]  ;;  %v1318_v33 = vld [vmem:[%s2530_s0 + $0x70] sm:$0xf] }
   0xd   :  { %2560 = vst [vmem:[#allocation13_spill] sm:$0xff] %v1313_v32  ;;  %2561 = vst [vmem:[#allocation14_spill] sm:$0xff] %v1318_v33  ;;  %v49_v34 = vld [vmem:[%s2530_s0 + $0x4] sm:$0x1]  ;;  %v1334_v39 = vld [vmem:[%s2530_s0 + $0x78] sm:$0xf] }
   0xe   :  { %v1339_v40 = vld [vmem:[%s2530_s0 + $0x80] sm:$0xf]  ;;  %v50_v41 = vld [vmem:[%s2530_s0 + $0xc] sm:$0x1]  ;;  %v186_v51 = vshll.u32 %v1185_v4, 16  ;;  %v192_v52 = vshll.u32 %v49_v34, 16 }
   0xf   :  { %v197_v53 = vshrl.u32 %v1190_v5, 16  ;;  %v51_v54 = vld [vmem:[%s2530_s0 + $0x14] sm:$0x1]  ;;  %v200_v55 = vshll.u32 %v1190_v5, 16  ;;  %v206_v56 = vshll.u32 %v50_v41, 16  ;;  %v211_v57 = vshrl.u32 %v1195_v6, 16 }
  0x10   :  { %v214_v58 = vshll.u32 %v1195_v6, 16  ;;  %v52_v59 = vld [vmem:[%s2530_s0 + $0x1c] sm:$0x1]  ;;  %v185_v60 = vrot.slane %v183_v50, 4  ;;  %v188_v61 = vrot.slane %v186_v51, 5  ;;  %v1372_v62 = vrot.slane %v192_v52, 5 }
  0x11   :  { %v199_v63 = vrot.slane %v197_v53, 4  ;;  %v202_v34 = vrot.slane %v200_v55, 5  ;;  %v1374_v49 = vrot.slane %v206_v56, 5  ;;  %v213_v48 = vrot.slane %v211_v57, 4  ;;  %v53_v43 = vld [vmem:[%s2530_s0 + $0x24] sm:$0x1] }
  0x12   :  { %v216_v47 = vrot.slane %v214_v58, 5  ;;  %v189_v46 = vor.u32 %v188_v61, %v185_v60  ;;  %v220_v41 = vshll.u32 %v51_v54, 16  ;;  %v225_v45 = vshrl.u32 %v1200_v7, 16  ;;  %v54_v60 = vld [vmem:[%s2530_s0 + $0x2c] sm:$0x1] }
  0x13   :  { %v228_v44 = vshll.u32 %v1200_v7, 16  ;;  %v203_v51 = vor.u32 %v202_v34, %v199_v63  ;;  %v234_v53 = vshll.u32 %v52_v59, 16  ;;  %v239_v55 = vshrl.u32 %v1220_v11, 16  ;;  %v55_v59 = vld [vmem:[%s2530_s0 + $0x34] sm:$0x1] }
  0x14   :  { %v217_v52 = vor.u32 %v216_v47, %v213_v48  ;;  %v1388_v54 = vrot.slane %v189_v46, 4  ;;  %v1390_v56 = vrot.slane %v220_v41, 5  ;;  %v227_v57 = vrot.slane %v225_v45, 4 }
  0x15   :  { %v230_v58 = vrot.slane %v228_v44, 5  ;;  %v1395_v61 = vrot.slane %v203_v51, 4  ;;  %v1399_v38 = vrot.slane %v234_v53, 5  ;;  %v241_v47 = vrot.slane %v239_v55, 4 }
  0x16   :  { %v1397_v42 = vrot.slane %v217_v52, 4  ;;  %v242_v45 = vshll.u32 %v1220_v11, 16  ;;  %v248_v44 = vshll.u32 %v53_v43, 16  ;;  %v253_v41 = vshrl.u32 %v1225_v12, 16 }
  0x17   :  { %v231_v48 = vor.u32 %v230_v58, %v227_v57  ;;  %v256_v51 = vshll.u32 %v1225_v12, 16  ;;  %v262_v55 = vshll.u32 %v54_v60, 16  ;;  %v56_v57 = vld [vmem:[%s2530_s0 + $0x3c] sm:$0x1]  ;;  %v267_v36 = vshrl.u32 %v1230_v13, 16 }
  0x18   :  { %v244_v43 = vrot.slane %v242_v45, 5  ;;  %v1421_v53 = vrot.slane %v248_v44, 5  ;;  %v255_v58 = vrot.slane %v253_v41, 4  ;;  %v270_v35 = vshll.u32 %v1230_v13, 16  ;;  %v57_v41 = vld [vmem:[%s2530_s0 + $0x4c] sm:$0x1] }
  0x19   :  { %v1419_v52 = vrot.slane %v231_v48, 4  ;;  %v258_v37 = vrot.slane %v256_v51, 5  ;;  %v1432_v45 = vrot.slane %v262_v55, 5  ;;  %v276_v44 = vshll.u32 %v55_v59, 16 }
  0x1a   :  { %v245_v31 = vor.u32 %v244_v43, %v241_v47  ;;  %v269_v34 = vrot.slane %v267_v36, 4  ;;  %v272_v30 = vrot.slane %v270_v35, 5  ;;  %v281_v63 = vshrl.u32 %v1235_v14, 16  ;;  %v58_v35 = vld [vmem:[%s2530_s0 + $0x54] sm:$0x1] }
  0x1b   :  { %v259_v60 = vor.u32 %v258_v37, %v255_v58  ;;  %v1440_v29 = vrot.slane %v276_v44, 5  ;;  %v284_v46 = vshll.u32 %v1235_v14, 16  ;;  %v290_v48 = vshll.u32 %v56_v57, 16  ;;  %v59_v44 = vld [vmem:[%s2530_s0 + $0x5c] sm:$0x1] }
  0x1c   :  { %v1438_v51 = vrot.slane %v245_v31, 4  ;;  %v273_v43 = vor.u32 %v272_v30, %v269_v34  ;;  %v283_v59 = vrot.slane %v281_v63, 4  ;;  %v295_v36 = vshrl.u32 %v1255_v18, 16 }
  0x1d   :  { %v1443_v47 = vrot.slane %v259_v60, 4  ;;  %v286_v37 = vrot.slane %v284_v46, 5  ;;  %v1453_v55 = vrot.slane %v290_v48, 5  ;;  %v298_v57 = vshll.u32 %v1255_v18, 16 }
  0x1e   :  { %v1460_v63 = vrot.slane %v273_v43, 4  ;;  %v297_v34 = vrot.slane %v295_v36, 4  ;;  %v304_v58 = vshll.u32 %v57_v41, 16  ;;  %v309_v46 = vshrl.u32 %v1260_v19, 16  ;;  %v60_v36 = vld [vmem:[%s2530_s0 + $0x64] sm:$0x1] }
  0x1f   :  { %v287_v60 = vor.u32 %v286_v37, %v283_v59  ;;  %v300_v31 = vrot.slane %v298_v57, 5  ;;  %v312_v48 = vshll.u32 %v1260_v19, 16  ;;  %v318_v43 = vshll.u32 %v58_v35, 16 }
  0x20   :  { %v1471_v30 = vrot.slane %v304_v58, 5  ;;  %v323_v41 = vshrl.u32 %v1265_v20, 16  ;;  %v311_v57 = vrot.slane %v309_v46, 4  ;;  %v326_v24 = vshll.u32 %v1265_v20, 16  ;;  %v63_v20 = vld [vmem:[%s2530_s0 + $0x7c] sm:$0x1] }
  0x21   :  { %v1477_v59 = vrot.slane %v287_v60, 4  ;;  %v301_v37 = vor.u32 %v300_v31, %v297_v34  ;;  %v314_v27 = vrot.slane %v312_v48, 5  ;;  %v1479_v26 = vrot.slane %v318_v43, 5  ;;  %v61_v31 = vld [vmem:[%s2530_s0 + $0x6c] sm:$0x1] }
  0x22   :  { %2564 = vst [vmem:[#allocation15_spill] sm:$0xff] %v1471_v30  ;;  %v325_v25 = vrot.slane %v323_v41, 4  ;;  %v332_v28 = vshll.u32 %v59_v44, 16  ;;  %v337_v60 = vshrl.u32 %v1270_v21, 16  ;;  %v328_v34 = vrot.slane %v326_v24, 5 }
  0x23   :  { %v1486_v58 = vrot.slane %v301_v37, 4  ;;  %v315_v23 = vor.u32 %v314_v27, %v311_v57  ;;  %v340_v48 = vshll.u32 %v1270_v21, 16  ;;  %v346_v44 = vshll.u32 %v60_v36, 16  ;;  %v62_v57 = vld [vmem:[%s2530_s0 + $0x74] sm:$0x1] }
  0x24   :  { %v1492_v46 = vrot.slane %v332_v28, 5  ;;  %v339_v27 = vrot.slane %v337_v60, 4  ;;  %v351_v37 = vshrl.u32 %v1313_v32, 16  ;;  %v329_v24 = vor.u32 %v328_v34, %v325_v25 }
  0x25   :  { %2565 = vst [vmem:[#allocation16_spill] sm:$0xff] %v1486_v58  ;;  %v1499_v41 = vrot.slane %v315_v23, 4  ;;  %v342_v28 = vrot.slane %v340_v48, 5  ;;  %v1505_v35 = vrot.slane %v346_v44, 5  ;;  %v354_v36 = vshll.u32 %v1313_v32, 16 }
  0x26   :  { %v353_v23 = vrot.slane %v351_v37, 4  ;;  %v360_v21 = vshll.u32 %v61_v31, 16  ;;  %v365_v60 = vshrl.u32 %v1318_v33, 16  ;;  %v330_v22 = vrot.slane %v329_v24, 4 }
  0x27   :  { %v321_v43 = vsel %vm1383_vm2, %v1499_v41, %v1479_v26  ;;  %v343_v25 = vor.u32 %v342_v28, %v339_v27  ;;  %v356_v34 = vrot.slane %v354_v36, 5  ;;  %v368_v48 = vshll.u32 %v1318_v33, 16  ;;  %v64_v26 = vld [vmem:[%s2530_s0 + $0x84] sm:$0x1] }
  0x28   :  { %v362_v44 = vrot.slane %v360_v21, 5  ;;  %v367_v32 = vrot.slane %v365_v60, 4  ;;  %v374_v19 = vshll.u32 %v62_v57, 16  ;;  %v379_v17 = vshrl.u32 %v1334_v39, 16 }
  0x29   :  { %v335_v31 = vsel %vm1383_vm2, %v330_v22, %v1492_v46  ;;  %v344_v41 = vrot.slane %v343_v25, 4  ;;  %v357_v37 = vor.u32 %v356_v34, %v353_v23  ;;  %v370_v24 = vrot.slane %v368_v48, 5 }
  0x2a   :  { %v376_v27 = vrot.slane %v374_v19, 5  ;;  %v381_v28 = vrot.slane %v379_v17, 4  ;;  %v382_v36 = vshll.u32 %v1334_v39, 16  ;;  %v388_v21 = vshll.u32 %v63_v20, 16 }
  0x2b   :  { %v349_v57 = vsel %vm1383_vm2, %v344_v41, %v1505_v35  ;;  %v358_v60 = vrot.slane %v357_v37, 4  ;;  %v371_v33 = vor.u32 %v370_v24, %v367_v32  ;;  %v393_v30 = vshrl.u32 %v1339_v40, 16  ;;  %v2587_v24 = vld [vmem:[#allocation2_spill] sm:$0xff] }
  0x2c   :  { %v384_v58 = vrot.slane %v382_v36, 5  ;;  %v390_v18 = vrot.slane %v388_v21, 5  ;;  %v396_v22 = vshll.u32 %v1339_v40, 16  ;;  %v402_v46 = vshll.u32 %v64_v26, 16  ;;  %v2591_v36 = vld [vmem:[#allocation5_spill] sm:$0xff] }
  0x2d   :  { %v363_v19 = vsel %vm1383_vm2, %v358_v60, %v362_v44  ;;  %v372_v17 = vrot.slane %v371_v33, 4  ;;  %v395_v23 = vrot.slane %v393_v30, 4  ;;  %v2566_v20 = vmax.bf16 %v1165_v0, %v1185_v4  ;;  %v2585_v44 = vld [vmem:[#allocation15_spill] sm:$0xff]  ;;  %v1667_v21 = vld [vmem:[%s2531_s2 + $0x30] sm:$0xf] }
  0x2e   :  { %v2567_v32 = vsel %vm1383_vm2, %v1388_v54, %v1372_v62  ;;  %v385_v25 = vor.u32 %v384_v58, %v381_v28  ;;  %v398_v34 = vrot.slane %v396_v22, 5  ;;  %v404_v48 = vrot.slane %v402_v46, 5  ;;  %v2584_v58 = vld [vmem:[#allocation16_spill] sm:$0xff]  ;;  %v2590_v28 = vld [vmem:[#allocation7_spill] sm:$0xff]  ;;  %v2594_v46 = vld [vmem:[#allocation6_spill] sm:$0xff] }
  0x2f   :  { %v1540_v35 = vmax.bf16 %v2567_v32, %v2566_v20  ;;  %v2568_v26 = vmax.bf16 %v1170_v1, %v1190_v5  ;;  %v2569_v33 = vsel %vm1383_vm2, %v1395_v61, %v1374_v49  ;;  %v377_v0 = vsel %vm1383_vm2, %v372_v17, %v376_v27  ;;  %v2588_v27 = vld [vmem:[#allocation4_spill] sm:$0xff]  ;;  %v2596_v20 = vld [vmem:[#allocation9_spill] sm:$0xff] }
  0x30   :  { %v2570_v4 = vmax.bf16 %v1175_v2, %v1195_v6  ;;  %v2571_v62 = vsel %vm1383_vm2, %v1397_v42, %v1390_v56  ;;  %v2572_v1 = vmax.bf16 %v1180_v3, %v1200_v7  ;;  %v2573_v5 = vsel %vm1383_vm2, %v1419_v52, %v1399_v38  ;;  %v1587_v3 = vld [vmem:[%s2531_s2] sm:$0xf]  ;;  %v1592_v7 = vld [vmem:[%s2531_s2 + $0x8] sm:$0xf]  ;;  %v2593_v22 = vld [vmem:[#allocation8_spill] sm:$0xff] }
  0x31   :  { %v1550_v30 = vmax.bf16 %v2569_v33, %v2568_v26  ;;  %v2574_v2 = vmax.bf16 %v1205_v8, %v1220_v11  ;;  %v2575_v6 = vsel %vm1383_vm2, %v1438_v51, %v1421_v53  ;;  %v386_v38 = vrot.slane %v385_v25, 4  ;;  %v2597_v32 = vld [vmem:[#allocation13_spill] sm:$0xff]  ;;  %v1685_v26 = vld [vmem:[%s2531_s2 + $0x48] sm:$0xf]  ;;  %v1690_v33 = vld [vmem:[%s2531_s2 + $0x50] sm:$0xf] }
  0x32   :  { %v1562_v54 = vmax.bf16 %v2571_v62, %v2570_v4  ;;  %v1572_v49 = vmax.bf16 %v2573_v5, %v2572_v1  ;;  %v399_v56 = vor.u32 %v398_v34, %v395_v23  ;;  %v2576_v8 = vmax.bf16 %v1210_v9, %v1225_v12  ;;  %v1617_v9 = vld [vmem:[%s2531_s2 + $0x10] sm:$0xf]  ;;  %v1622_v12 = vld [vmem:[%s2531_s2 + $0x18] sm:$0xf]  ;;  %v2599_v4 = vld [vmem:[#allocation10_spill] sm:$0xff] }
  0x33   :  { %v1582_v42 = vmax.bf16 %v2575_v6, %v2574_v2  ;;  %v2577_v11 = vsel %vm1383_vm2, %v1443_v47, %v1432_v45  ;;  %v2578_v52 = vmax.bf16 %v1215_v10, %v1230_v13  ;;  %v2579_v53 = vsel %vm1383_vm2, %v1460_v63, %v1440_v29  ;;  %v1627_v10 = vld [vmem:[%s2531_s2 + $0x20] sm:$0xf]  ;;  %v2582_v47 = vld [vmem:[#allocation3_spill] sm:$0xff] }
  0x34   :  { %v1602_v61 = vmax.bf16 %v2577_v11, %v2576_v8  ;;  %v2580_v13 = vmax.bf16 %v1240_v15, %v1235_v14  ;;  %v2581_v29 = vsel %vm1383_vm2, %v1477_v59, %v1453_v55  ;;  %v2583_v63 = vmax.bf16 %v1245_v16, %v2582_v47  ;;  %v1662_v16 = vld [vmem:[%s2531_s2 + $0x28] sm:$0xf]  ;;  %v2600_v62 = vld [vmem:[#allocation14_spill] sm:$0xff] }
  0x35   :  { %v1612_v51 = vmax.bf16 %v2579_v53, %v2578_v52  ;;  %v2586_v41 = vsel %vm1383_vm2, %v2584_v58, %v2585_v44  ;;  %v2589_v14 = vmax.bf16 %v2587_v24, %v2588_v27  ;;  %v2592_v55 = vmax.bf16 %v2590_v28, %v2591_v36  ;;  %v2602_v2 = vld [vmem:[#allocation11_spill] sm:$0xff]  ;;  %v1723_v52 = vld [vmem:[%s2531_s2 + $0x70] sm:$0xf]  ;;  %v84_v53 = vld [vmem:[%s2532_s3 + $0x18] sm:$0xf] }
  0x36   :  { %v1637_v45 = vmax.bf16 %v2581_v29, %v2580_v13  ;;  %v1647_v37 = vmax.bf16 %v2586_v41, %v2583_v63  ;;  %v391_v60 = vsel %vm1383_vm2, %v386_v38, %v390_v18  ;;  %v2595_v17 = vmax.bf16 %v2593_v22, %v2594_v46  ;;  %v1695_v18 = vld [vmem:[%s2531_s2 + $0x58] sm:$0xf]  ;;  %v1718_v11 = vld [vmem:[%s2531_s2 + $0x68] sm:$0xf]  ;;  %v85_v58 = vld [vmem:[%s2532_s3 + $0x20] sm:$0xf] }
  0x37   :  { %v1652_v15 = vmax.bf16 %v321_v43, %v2589_v14  ;;  %v1657_v59 = vmax.bf16 %v335_v31, %v2592_v55  ;;  %v1672_v43 = vld [vmem:[%s2531_s2 + $0x38] sm:$0xf]  ;;  %v400_v31 = vrot.slane %v399_v56, 4  ;;  %v2598_v25 = vmax.bf16 %v2596_v20, %v2597_v32  ;;  %v86_v44 = vld [vmem:[%s2532_s3 + $0x28] sm:$0xf]  ;;  %v2604_v41 = vld [vmem:[#allocation12_spill] sm:$0xff] }
  0x38   :  { %v433_v23 = vmax.bf16 %v349_v57, %v2595_v17  ;;  %v1700_v57 = vld [vmem:[%s2531_s2 + $0x60] sm:$0xf]  ;;  %v2601_v1 = vmax.bf16 %v2599_v4, %v2600_v62  ;;  %v2603_v6 = vmax.bf16 %v2602_v2, %v1334_v39  ;;  %v438_v56 = vmax.bf16 %v1540_v35, %v1587_v3  ;;  %v1728_v39 = vld [vmem:[%s2531_s2 + $0x78] sm:$0xf]  ;;  %v89_v28 = vld [vmem:[%s2532_s3 + $0x48] sm:$0xf] }
  0x39   :  { %v434_v34 = vmax.bf16 %v363_v19, %v2598_v25  ;;  %v81_v19 = vld [vmem:[%s2532_s3] sm:$0xf]  ;;  %v439_v8 = vmax.bf16 %v1550_v30, %v1592_v7  ;;  %v82_v30 = vld [vmem:[%s2532_s3 + $0x8] sm:$0xf]  ;;  %v405_v13 = vsel %vm1383_vm2, %v400_v31, %v404_v48  ;;  %v440_v29 = vmax.bf16 %v1562_v54, %v1617_v9  ;;  %v87_v48 = vld [vmem:[%s2532_s3 + $0x30] sm:$0xf] }
  0x3a   :  { %v435_v5 = vmax.bf16 %v377_v0, %v2601_v1  ;;  %v436_v38 = vmax.bf16 %v391_v60, %v2603_v6  ;;  %v1733_v35 = vld [vmem:[%s2531_s2 + $0x80] sm:$0xf]  ;;  %v83_v0 = vld [vmem:[%s2532_s3 + $0x10] sm:$0xf]  ;;  %v441_v47 = vmax.bf16 %v1572_v49, %v1622_v12  ;;  %v442_v63 = vmax.bf16 %v1582_v42, %v1627_v10  ;;  %v88_v14 = vld [vmem:[%s2532_s3 + $0x38] sm:$0xf] }
  0x3b   :  { %v2605_v54 = vmax.bf16 %v2604_v41, %v1339_v40  ;;  %v443_v49 = vmax.bf16 %v1602_v61, %v1662_v16  ;;  %v444_v42 = vmax.bf16 %v1612_v51, %v1667_v21  ;;  %v445_v27 = vmax.bf16 %v1637_v45, %v1672_v43  ;;  %v90_v40 = vld [vmem:[%s2532_s3 + $0x50] sm:$0xf]  ;;  %v91_v55 = vld [vmem:[%s2532_s3 + $0x58] sm:$0xf]  ;;  %v92_v60 = vld [vmem:[%s2532_s3 + $0x60] sm:$0xf] }
  0x3c   :  { %v446_v61 = vmax.bf16 %v1647_v37, %v1685_v26  ;;  %v447_v51 = vmax.bf16 %v1652_v15, %v1690_v33  ;;  %v448_v45 = vmax.bf16 %v1657_v59, %v1695_v18  ;;  %v449_v36 = vmax.bf16 %v433_v23, %v1700_v57  ;;  %v93_v37 = vld [vmem:[%s2532_s3 + $0x68] sm:$0xf]  ;;  %v94_v46 = vld [vmem:[%s2532_s3 + $0x70] sm:$0xf]  ;;  %v95_v17 = vld [vmem:[%s2532_s3 + $0x78] sm:$0xf] }
  0x3d   :  { %v437_v24 = vmax.bf16 %v405_v13, %v2605_v54  ;;  %v450_v31 = vmax.bf16 %v434_v34, %v1718_v11  ;;  %v451_v15 = vmax.bf16 %v435_v5, %v1723_v52  ;;  %v452_v59 = vmax.bf16 %v436_v38, %v1728_v39  ;;  %v96_v23 = vld [vmem:[%s2532_s3 + $0x80] sm:$0xf]  ;;  %v97_v4 = vld [vmem:[%s2531_s2 + $0x4] sm:$0x1] }
  0x3e   :  { %v1808_v20 = vmax.bf16 %v438_v56, %v81_v19  ;;  %v1810_v32 = vmax.bf16 %v439_v8, %v82_v30  ;;  %v1812_v25 = vmax.bf16 %v440_v29, %v83_v0  ;;  %v1814_v34 = vmax.bf16 %v441_v47, %v84_v53  ;;  %v98_v19 = vld [vmem:[%s2531_s2 + $0xc] sm:$0x1] }
  0x3f   :  { %v453_v22 = vmax.bf16 %v437_v24, %v1733_v35  ;;  %v1819_v62 = vmax.bf16 %v442_v63, %v85_v58  ;;  %v1821_v1 = vmax.bf16 %v443_v49, %v86_v44  ;;  %v1823_v5 = vmax.bf16 %v444_v42, %v87_v48  ;;  %v99_v44 = vld [vmem:[%s2531_s2 + $0x14] sm:$0x1]  ;;  %v100_v49 = vld [vmem:[%s2531_s2 + $0x1c] sm:$0x1] }
  0x40   :  { %v1825_v2 = vmax.bf16 %v445_v27, %v88_v14  ;;  %v1830_v6 = vmax.bf16 %v446_v61, %v89_v28  ;;  %v1832_v38 = vmax.bf16 %v447_v51, %v90_v40  ;;  %v1834_v56 = vmax.bf16 %v448_v45, %v91_v55  ;;  %v101_v55 = vld [vmem:[%s2531_s2 + $0x24] sm:$0x1] }
  0x41   :  { %v1836_v8 = vmax.bf16 %v449_v36, %v92_v60  ;;  %v1838_v30 = vmax.bf16 %v450_v31, %v93_v37  ;;  %v1840_v0 = vmax.bf16 %v451_v15, %v94_v46  ;;  %v1842_v53 = vmax.bf16 %v452_v59, %v95_v17 }
  0x42   :  { %v1844_v13 = vmax.bf16 %v453_v22, %v96_v23  ;;  %v471_v29 = vshrl.u32 %v1587_v3, 16  ;;  %v474_v47 = vshll.u32 %v1587_v3, 16  ;;  %v480_v63 = vshll.u32 %v97_v4, 16  ;;  %v102_v23 = vld [vmem:[%s2531_s2 + $0x2c] sm:$0x1] }
  0x43   :  { %v485_v58 = vshrl.u32 %v1592_v7, 16  ;;  %v488_v48 = vshll.u32 %v1592_v7, 16  ;;  %v494_v41 = vshll.u32 %v98_v19, 16  ;;  %v499_v54 = vshrl.u32 %v1617_v9, 16 }
  0x44   :  { %v502_v24 = vshll.u32 %v1617_v9, 16  ;;  %v473_v42 = vrot.slane %v471_v29, 4  ;;  %v476_v3 = vrot.slane %v474_v47, 5  ;;  %v1858_v27 = vrot.slane %v480_v63, 5 }
  0x45   :  { %v487_v14 = vrot.slane %v485_v58, 4  ;;  %v490_v28 = vrot.slane %v488_v48, 5  ;;  %v1860_v40 = vrot.slane %v494_v41, 5  ;;  %v501_v61 = vrot.slane %v499_v54, 4  ;;  %v103_v48 = vld [vmem:[%s2531_s2 + $0x34] sm:$0x1] }
  0x46   :  { %v504_v51 = vrot.slane %v502_v24, 5  ;;  %v477_v7 = vor.u32 %v476_v3, %v473_v42  ;;  %v508_v45 = vshll.u32 %v99_v44, 16  ;;  %v513_v36 = vshrl.u32 %v1622_v12, 16 }
  0x47   :  { %v516_v9 = vshll.u32 %v1622_v12, 16  ;;  %v491_v60 = vor.u32 %v490_v28, %v487_v14  ;;  %v522_v31 = vshll.u32 %v100_v49, 16  ;;  %v527_v15 = vshrl.u32 %v1627_v10, 16  ;;  %v104_v28 = vld [vmem:[%s2531_s2 + $0x3c] sm:$0x1] }
  0x48   :  { %v505_v37 = vor.u32 %v504_v51, %v501_v61  ;;  %v1868_v59 = vrot.slane %v477_v7, 4  ;;  %v1870_v22 = vrot.slane %v508_v45, 5  ;;  %v515_v46 = vrot.slane %v513_v36, 4 }
  0x49   :  { %v518_v17 = vrot.slane %v516_v9, 5  ;;  %v1875_v12 = vrot.slane %v491_v60, 4  ;;  %v1879_v19 = vrot.slane %v522_v31, 5  ;;  %v529_v29 = vrot.slane %v527_v15, 4 }
  0x4a   :  { %v1877_v4 = vrot.slane %v505_v37, 4  ;;  %v530_v58 = vshll.u32 %v1627_v10, 16  ;;  %v536_v44 = vshll.u32 %v101_v55, 16  ;;  %v541_v24 = vshrl.u32 %v1662_v16, 16 }
  0x4b   :  { %v519_v63 = vor.u32 %v518_v17, %v515_v46  ;;  %v544_v49 = vshll.u32 %v1662_v16, 16  ;;  %v550_v14 = vshll.u32 %v102_v23, 16  ;;  %v555_v7 = vshrl.u32 %v1667_v21, 16  ;;  %v105_v46 = vld [vmem:[%s2531_s2 + $0x4c] sm:$0x1] }
  0x4c   :  { %v532_v42 = vrot.slane %v530_v58, 5  ;;  %v1901_v3 = vrot.slane %v536_v44, 5  ;;  %v543_v61 = vrot.slane %v541_v24, 4  ;;  %v558_v45 = vshll.u32 %v1667_v21, 16  ;;  %v106_v24 = vld [vmem:[%s2531_s2 + $0x54] sm:$0x1] }
  0x4d   :  { %v1899_v10 = vrot.slane %v519_v63, 4  ;;  %v546_v51 = vrot.slane %v544_v49, 5  ;;  %v1912_v9 = vrot.slane %v550_v14, 5  ;;  %v564_v55 = vshll.u32 %v103_v48, 16 }
  0x4e   :  { %v533_v36 = vor.u32 %v532_v42, %v529_v29  ;;  %v557_v37 = vrot.slane %v555_v7, 4  ;;  %v560_v31 = vrot.slane %v558_v45, 5  ;;  %v569_v15 = vshrl.u32 %v1672_v43, 16  ;;  %v107_v45 = vld [vmem:[%s2531_s2 + $0x5c] sm:$0x1] }
  0x4f   :  { %v547_v60 = vor.u32 %v546_v51, %v543_v61  ;;  %v1920_v21 = vrot.slane %v564_v55, 5  ;;  %v572_v23 = vshll.u32 %v1672_v43, 16  ;;  %v578_v63 = vshll.u32 %v104_v28, 16 }
  0x50   :  { %v1918_v17 = vrot.slane %v533_v36, 4  ;;  %v561_v58 = vor.u32 %v560_v31, %v557_v37  ;;  %v571_v44 = vrot.slane %v569_v15, 4  ;;  %v583_v48 = vshrl.u32 %v1685_v26, 16 }
  0x51   :  { %v1923_v29 = vrot.slane %v547_v60, 4  ;;  %v574_v42 = vrot.slane %v572_v23, 5  ;;  %v1933_v14 = vrot.slane %v578_v63, 5  ;;  %v586_v43 = vshll.u32 %v1685_v26, 16  ;;  %v108_v23 = vld [vmem:[%s2531_s2 + $0x64] sm:$0x1] }
  0x52   :  { %v1940_v61 = vrot.slane %v561_v58, 4  ;;  %v585_v51 = vrot.slane %v583_v48, 4  ;;  %v592_v7 = vshll.u32 %v105_v46, 16  ;;  %v597_v60 = vshrl.u32 %v1690_v33, 16 }
  0x53   :  { %v575_v36 = vor.u32 %v574_v42, %v571_v44  ;;  %v588_v55 = vrot.slane %v586_v43, 5  ;;  %v600_v37 = vshll.u32 %v1690_v33, 16  ;;  %v606_v15 = vshll.u32 %v106_v24, 16 }
  0x54   :  { %v1951_v31 = vrot.slane %v592_v7, 5  ;;  %v611_v46 = vshrl.u32 %v1695_v18, 16  ;;  %v599_v44 = vrot.slane %v597_v60, 4  ;;  %v614_v43 = vshll.u32 %v1695_v18, 16 }
  0x55   :  { %v1957_v63 = vrot.slane %v575_v36, 4  ;;  %v589_v58 = vor.u32 %v588_v55, %v585_v51  ;;  %v602_v48 = vrot.slane %v600_v37, 5  ;;  %v1959_v33 = vrot.slane %v606_v15, 5  ;;  %v109_v51 = vld [vmem:[%s2531_s2 + $0x6c] sm:$0x1] }
  0x56   :  { %v613_v42 = vrot.slane %v611_v46, 4  ;;  %v620_v26 = vshll.u32 %v107_v45, 16  ;;  %v625_v36 = vshrl.u32 %v1700_v57, 16  ;;  %v616_v55 = vrot.slane %v614_v43, 5 }
  0x57   :  { %v1966_v7 = vrot.slane %v589_v58, 4  ;;  %v603_v28 = vor.u32 %v602_v48, %v599_v44  ;;  %v628_v18 = vshll.u32 %v1700_v57, 16  ;;  %v634_v45 = vshll.u32 %v108_v23, 16  ;;  %v110_v44 = vld [vmem:[%s2531_s2 + $0x74] sm:$0x1] }
  0x58   :  { %v1972_v60 = vrot.slane %v620_v26, 5  ;;  %v627_v46 = vrot.slane %v625_v36, 4  ;;  %v639_v58 = vshrl.u32 %v1718_v11, 16  ;;  %v617_v48 = vor.u32 %v616_v55, %v613_v42 }
  0x59   :  { %v595_v37 = vsel %vm1383_vm2, %v1966_v7, %v1951_v31  ;;  %v604_v15 = vrot.slane %v603_v28, 4  ;;  %v630_v43 = vrot.slane %v628_v18, 5  ;;  %v1983_v26 = vrot.slane %v634_v45, 5  ;;  %v111_v7 = vld [vmem:[%s2531_s2 + $0x7c] sm:$0x1] }
  0x5a   :  { %v642_v57 = vshll.u32 %v1718_v11, 16  ;;  %v641_v24 = vrot.slane %v639_v58, 4  ;;  %v648_v31 = vshll.u32 %v109_v51, 16  ;;  %v653_v28 = vshrl.u32 %v1723_v52, 16 }
  0x5b   :  { %v609_v23 = vsel %vm1383_vm2, %v604_v15, %v1959_v33  ;;  %v618_v36 = vrot.slane %v617_v48, 4  ;;  %v631_v49 = vor.u32 %v630_v43, %v627_v46  ;;  %v656_v55 = vshll.u32 %v1723_v52, 16  ;;  %v112_v33 = vld [vmem:[%s2531_s2 + $0x84] sm:$0x1] }
  0x5c   :  { %v644_v42 = vrot.slane %v642_v57, 5  ;;  %v650_v18 = vrot.slane %v648_v31, 5  ;;  %v655_v45 = vrot.slane %v653_v28, 4  ;;  %v662_v11 = vshll.u32 %v110_v44, 16 }
  0x5d   :  { %v667_v16 = vshrl.u32 %v1728_v39, 16  ;;  %v623_v51 = vsel %vm1383_vm2, %v618_v36, %v1972_v60  ;;  %v632_v15 = vrot.slane %v631_v49, 4  ;;  %v658_v48 = vrot.slane %v656_v55, 5 }
  0x5e   :  { %v645_v58 = vor.u32 %v644_v42, %v641_v24  ;;  %v664_v46 = vrot.slane %v662_v11, 5  ;;  %v670_v52 = vshll.u32 %v1728_v39, 16  ;;  %v676_v57 = vshll.u32 %v111_v7, 16  ;;  %v2141_v11 = vld [vmem:[%s2530_s0 + $0x60] sm:$0xf] }
  0x5f   :  { %v669_v43 = vrot.slane %v667_v16, 4  ;;  %v637_v44 = vsel %vm1383_vm2, %v632_v15, %v1983_v26  ;;  %v659_v28 = vor.u32 %v658_v48, %v655_v45  ;;  %v681_v54 = vshrl.u32 %v1733_v35, 16  ;;  %v2112_v45 = vld [vmem:[%s2530_s0 + $0x30] sm:$0xf]  ;;  %v2165_v48 = vld [vmem:[%s2530_s0 + $0x78] sm:$0xf] }
  0x60   :  { %v646_v31 = vrot.slane %v645_v58, 4  ;;  %v672_v41 = vrot.slane %v670_v52, 5  ;;  %v678_v47 = vrot.slane %v676_v57, 5  ;;  %v684_v60 = vshll.u32 %v1733_v35, 16  ;;  %v2160_v58 = vld [vmem:[%s2530_s0 + $0x70] sm:$0xf] }
  0x61   :  { %v690_v49 = vshll.u32 %v112_v33, 16  ;;  %v660_v16 = vrot.slane %v659_v28, 4  ;;  %v683_v36 = vrot.slane %v681_v54, 4  ;;  %v2606_v39 = vsel %vm1383_vm2, %v1868_v59, %v1858_v27  ;;  %v1053_v52 = vld [vmem:[%s2529_s1 + $0x20] sm:$0xf] }
  0x62   :  { %v651_v24 = vsel %vm1383_vm2, %v646_v31, %v650_v18  ;;  %v2015_v26 = vmax.bf16 %v2606_v39, %v1808_v20  ;;  %v673_v7 = vor.u32 %v672_v41, %v669_v43  ;;  %v686_v42 = vrot.slane %v684_v60, 5  ;;  %v1052_v43 = vld [vmem:[%s2529_s1 + $0x18] sm:$0xf]  ;;  %v1054_v60 = vld [vmem:[%s2529_s1 + $0x28] sm:$0xf] }
  0x63   :  { %v692_v55 = vrot.slane %v690_v49, 5  ;;  %v2607_v35 = vsel %vm1383_vm2, %v1875_v12, %v1860_v40  ;;  %v665_v54 = vsel %vm1383_vm2, %v660_v16, %v664_v46  ;;  %v2608_v20 = vsel %vm1383_vm2, %v1877_v4, %v1870_v22  ;;  %v2059_v22 = vld [vmem:[%s2530_s0 + $0x10] sm:$0xf] }
  0x64   :  { %v2023_v18 = vmax.bf16 %v2607_v35, %v1810_v32  ;;  %v2033_v27 = vmax.bf16 %v2608_v20, %v1812_v25  ;;  %v2609_v59 = vsel %vm1383_vm2, %v1899_v10, %v1879_v19  ;;  %v2610_v32 = vsel %vm1383_vm2, %v1918_v17, %v1901_v3  ;;  %v2054_v25 = vld [vmem:[%s2530_s0 + $0x8] sm:$0xf]  ;;  %v2080_v3 = vld [vmem:[%s2530_s0 + $0x18] sm:$0xf]  ;;  %v2085_v17 = vld [vmem:[%s2530_s0 + $0x20] sm:$0xf] }
  0x65   :  { %v2041_v40 = vmax.bf16 %v2609_v59, %v1814_v34  ;;  %v2049_v12 = vmax.bf16 %v2610_v32, %v1819_v62  ;;  %v674_v34 = vrot.slane %v673_v7, 4  ;;  %v687_v4 = vor.u32 %v686_v42, %v683_v36  ;;  %v1051_v46 = vld [vmem:[%s2529_s1 + $0x10] sm:$0xf]  ;;  %v1057_v7 = vld [vmem:[%s2529_s1 + $0x40] sm:$0xf] }
  0x66   :  { %v2611_v19 = vsel %vm1383_vm2, %v1923_v29, %v1912_v9  ;;  %v2612_v41 = vsel %vm1383_vm2, %v1940_v61, %v1920_v21  ;;  %v2101_v21 = vmax.bf16 %v595_v37, %v1830_v6  ;;  %v2104_v29 = vmax.bf16 %v609_v23, %v1832_v38  ;;  %v2131_v37 = vld [vmem:[%s2530_s0 + $0x50] sm:$0xf]  ;;  %v2136_v23 = vld [vmem:[%s2530_s0 + $0x58] sm:$0xf]  ;;  %v1060_v20 = vld [vmem:[%s2529_s1 + $0x60] sm:$0xf] }
  0x67   :  { %v2067_v62 = vmax.bf16 %v2611_v19, %v1821_v1  ;;  %v2075_v10 = vmax.bf16 %v2612_v41, %v1823_v5  ;;  %v2090_v1 = vld [vmem:[%s2530_s0 + $0x28] sm:$0xf]  ;;  %v2613_v5 = vsel %vm1383_vm2, %v1957_v63, %v1933_v14  ;;  %v2107_v61 = vmax.bf16 %v623_v51, %v1834_v56  ;;  %v2117_v14 = vld [vmem:[%s2530_s0 + $0x38] sm:$0xf]  ;;  %v1055_v49 = vld [vmem:[%s2529_s1 + $0x30] sm:$0xf] }
  0x68   :  { %v2098_v9 = vmax.bf16 %v2613_v5, %v1825_v2  ;;  %v2122_v2 = vld [vmem:[%s2530_s0 + $0x40] sm:$0xf]  ;;  %v679_v6 = vsel %vm1383_vm2, %v674_v34, %v678_v47  ;;  %v688_v38 = vrot.slane %v687_v4, 4  ;;  %v721_v56 = vmax.bf16 %v637_v44, %v1836_v8  ;;  %v2146_v8 = vld [vmem:[%s2530_s0 + $0x68] sm:$0xf] }
  0x69   :  { %v722_v63 = vmax.bf16 %v651_v24, %v1838_v30  ;;  %v1050_v30 = vld [vmem:[%s2529_s1 + $0x8] sm:$0xf]  ;;  %v723_v47 = vmax.bf16 %v665_v54, %v1840_v0  ;;  %v724_v33 = vmax.bf16 %v679_v6, %v1842_v53  ;;  %v726_v51 = vmax.bf16 %v2054_v25, %v2015_v26  ;;  %v2170_v0 = vld [vmem:[%s2530_s0 + $0x80] sm:$0xf]  ;;  %v1056_v24 = vld [vmem:[%s2529_s1 + $0x38] sm:$0xf] }
  0x6a   :  { %v727_v15 = vmax.bf16 %v2059_v22, %v2023_v18  ;;  %v2175_v53 = vld [vmem:[%s2530_s0 + $0x88] sm:$0xf]  ;;  %v693_v57 = vsel %vm1383_vm2, %v688_v38, %v692_v55  ;;  %v728_v44 = vmax.bf16 %v2080_v3, %v2033_v27  ;;  %v729_v31 = vmax.bf16 %v2085_v17, %v2041_v40  ;;  %v1058_v42 = vld [vmem:[%s2529_s1 + $0x50] sm:$0xf]  ;;  %v1063_v4 = vld [vmem:[%s2529_s1 + $0x78] sm:$0xf] }
  0x6b   :  { %v730_v28 = vmax.bf16 %v2090_v1, %v2049_v12  ;;  %v725_v16 = vmax.bf16 %v693_v57, %v1844_v13  ;;  %v731_v36 = vmax.bf16 %v2112_v45, %v2067_v62  ;;  %v732_v39 = vmax.bf16 %v2117_v14, %v2075_v10  ;;  %v1059_v13 = vld [vmem:[%s2529_s1 + $0x58] sm:$0xf]  ;;  %v1061_v27 = vld [vmem:[%s2529_s1 + $0x68] sm:$0xf]  ;;  %v1062_v59 = vld [vmem:[%s2529_s1 + $0x70] sm:$0xf] }
  0x6c   :  { %v733_v26 = vmax.bf16 %v2122_v2, %v2098_v9  ;;  %v734_v55 = vmax.bf16 %v2131_v37, %v2101_v21  ;;  %v735_v35 = vmax.bf16 %v2136_v23, %v2104_v29  ;;  %v736_v18 = vmax.bf16 %v2141_v11, %v2107_v61  ;;  %v1064_v19 = vld [vmem:[%s2529_s1 + $0x80] sm:$0xf]  ;;  %v1065_v62 = vld [vmem:[%s2529_s1 + $0x88] sm:$0xf]  ;;  %v1066_v21 = vld [vmem:[%s2530_s0 + $0xc] sm:$0x1] }
  0x6d   :  { %v737_v54 = vmax.bf16 %v2146_v8, %v721_v56  ;;  %v738_v40 = vmax.bf16 %v2160_v58, %v722_v63  ;;  %v739_v32 = vmax.bf16 %v2165_v48, %v723_v47  ;;  %v740_v12 = vmax.bf16 %v2170_v0, %v724_v33  ;;  %v1067_v56 = vld [vmem:[%s2530_s0 + $0x14] sm:$0x1] }
  0x6e   :  { %v741_v34 = vmax.bf16 %v2175_v53, %v725_v16  ;;  %v2248_v41 = vmax.bf16 %v1050_v30, %v726_v51  ;;  %v2250_v10 = vmax.bf16 %v1051_v46, %v727_v15  ;;  %v2252_v5 = vmax.bf16 %v1052_v43, %v728_v44 }
  0x6f   :  { %v2254_v9 = vmax.bf16 %v1053_v52, %v729_v31  ;;  %v2259_v29 = vmax.bf16 %v1054_v60, %v730_v28  ;;  %v2261_v61 = vmax.bf16 %v1055_v49, %v731_v36  ;;  %v2263_v6 = vmax.bf16 %v1056_v24, %v732_v39  ;;  %v1068_v28 = vld [vmem:[%s2530_s0 + $0x1c] sm:$0x1]  ;;  %v1069_v36 = vld [vmem:[%s2530_s0 + $0x24] sm:$0x1] }
  0x70   :  { %v2265_v38 = vmax.bf16 %v1057_v7, %v733_v26  ;;  %v2270_v63 = vmax.bf16 %v1058_v42, %v734_v55  ;;  %v2272_v30 = vmax.bf16 %v1059_v13, %v735_v35  ;;  %v2274_v47 = vmax.bf16 %v1060_v20, %v736_v18  ;;  %v1070_v20 = vld [vmem:[%s2530_s0 + $0x2c] sm:$0x1] }
  0x71   :  { %v2276_v33 = vmax.bf16 %v1061_v27, %v737_v54  ;;  %v2278_v51 = vmax.bf16 %v1062_v59, %v738_v40  ;;  %v2280_v15 = vmax.bf16 %v1063_v4, %v739_v32  ;;  %v2282_v46 = vmax.bf16 %v1064_v19, %v740_v12 }
  0x72   :  { %v2284_v43 = vmax.bf16 %v1065_v62, %v741_v34  ;;  %v759_v52 = vshrl.u32 %v2054_v25, 16  ;;  %v762_v57 = vshll.u32 %v2054_v25, 16  ;;  %v768_v44 = vshll.u32 %v1066_v21, 16  ;;  %v1071_v62 = vld [vmem:[%s2530_s0 + $0x34] sm:$0x1] }
  0x73   :  { %v773_v31 = vshrl.u32 %v2059_v22, 16  ;;  %v776_v60 = vshll.u32 %v2059_v22, 16  ;;  %v782_v49 = vshll.u32 %v1067_v56, 16  ;;  %v787_v24 = vshrl.u32 %v2080_v3, 16 }
  0x74   :  { %2614 = vst [vmem:[#allocation3_spill] sm:$0xff] %v2284_v43  ;;  %v790_v16 = vshll.u32 %v2080_v3, 16  ;;  %v761_v39 = vrot.slane %v759_v52, 4  ;;  %v764_v25 = vrot.slane %v762_v57, 5  ;;  %v2298_v26 = vrot.slane %v768_v44, 5 }
  0x75   :  { %v775_v7 = vrot.slane %v773_v31, 4  ;;  %v778_v42 = vrot.slane %v776_v60, 5  ;;  %v2300_v13 = vrot.slane %v782_v49, 5  ;;  %v789_v55 = vrot.slane %v787_v24, 4  ;;  %v1072_v60 = vld [vmem:[%s2530_s0 + $0x3c] sm:$0x1] }
  0x76   :  { %v792_v35 = vrot.slane %v790_v16, 5  ;;  %v765_v22 = vor.u32 %v764_v25, %v761_v39  ;;  %v796_v18 = vshll.u32 %v1068_v28, 16  ;;  %v801_v54 = vshrl.u32 %v2085_v17, 16 }
  0x77   :  { %v804_v3 = vshll.u32 %v2085_v17, 16  ;;  %v779_v27 = vor.u32 %v778_v42, %v775_v7  ;;  %v810_v40 = vshll.u32 %v1069_v36, 16  ;;  %v815_v32 = vshrl.u32 %v2090_v1, 16  ;;  %v1073_v42 = vld [vmem:[%s2530_s0 + $0x44] sm:$0x1] }
  0x78   :  { %v793_v59 = vor.u32 %v792_v35, %v789_v55  ;;  %v2308_v12 = vrot.slane %v765_v22, 4  ;;  %v2310_v34 = vrot.slane %v796_v18, 5  ;;  %v803_v4 = vrot.slane %v801_v54, 4 }
  0x79   :  { %v806_v19 = vrot.slane %v804_v3, 5  ;;  %v2315_v17 = vrot.slane %v779_v27, 4  ;;  %v2319_v56 = vrot.slane %v810_v40, 5  ;;  %v817_v52 = vrot.slane %v815_v32, 4 }
  0x7a   :  { %v2317_v21 = vrot.slane %v793_v59, 4  ;;  %v818_v31 = vshll.u32 %v2090_v1, 16  ;;  %v824_v28 = vshll.u32 %v1070_v20, 16  ;;  %v829_v16 = vshrl.u32 %v2112_v45, 16 }
  0x7b   :  { %v807_v44 = vor.u32 %v806_v19, %v803_v4  ;;  %v832_v36 = vshll.u32 %v2112_v45, 16  ;;  %v838_v7 = vshll.u32 %v1071_v62, 16  ;;  %v843_v22 = vshrl.u32 %v2117_v14, 16  ;;  %v1074_v4 = vld [vmem:[%s2530_s0 + $0x54] sm:$0x1] }
  0x7c   :  { %v820_v39 = vrot.slane %v818_v31, 5  ;;  %v2341_v25 = vrot.slane %v824_v28, 5  ;;  %v831_v55 = vrot.slane %v829_v16, 4  ;;  %v846_v18 = vshll.u32 %v2117_v14, 16  ;;  %v1075_v16 = vld [vmem:[%s2530_s0 + $0x5c] sm:$0x1] }
  0x7d   :  { %v2339_v1 = vrot.slane %v807_v44, 4  ;;  %v834_v35 = vrot.slane %v832_v36, 5  ;;  %v2352_v3 = vrot.slane %v838_v7, 5  ;;  %v852_v20 = vshll.u32 %v1072_v60, 16 }
  0x7e   :  { %v821_v54 = vor.u32 %v820_v39, %v817_v52  ;;  %v845_v59 = vrot.slane %v843_v22, 4  ;;  %v848_v40 = vrot.slane %v846_v18, 5  ;;  %v857_v32 = vshrl.u32 %v2122_v2, 16  ;;  %v1076_v18 = vld [vmem:[%s2530_s0 + $0x64] sm:$0x1] }
  0x7f   :  { %v835_v27 = vor.u32 %v834_v35, %v831_v55  ;;  %v2360_v14 = vrot.slane %v852_v20, 5  ;;  %v860_v62 = vshll.u32 %v2122_v2, 16  ;;  %v866_v44 = vshll.u32 %v1073_v42, 16 }
  0x80   :  { %v2358_v19 = vrot.slane %v821_v54, 4  ;;  %v849_v31 = vor.u32 %v848_v40, %v845_v59  ;;  %v859_v28 = vrot.slane %v857_v32, 4  ;;  %v871_v60 = vshrl.u32 %v2131_v37, 16 }
  0x81   :  { %v2363_v52 = vrot.slane %v835_v27, 4  ;;  %v862_v39 = vrot.slane %v860_v62, 5  ;;  %v2373_v7 = vrot.slane %v866_v44, 5  ;;  %v874_v2 = vshll.u32 %v2131_v37, 16  ;;  %v1077_v62 = vld [vmem:[%s2530_s0 + $0x6c] sm:$0x1] }
  0x82   :  { %v2380_v55 = vrot.slane %v849_v31, 4  ;;  %v873_v35 = vrot.slane %v871_v60, 4  ;;  %v880_v22 = vshll.u32 %v1074_v4, 16  ;;  %v885_v27 = vshrl.u32 %v2136_v23, 16 }
  0x83   :  { %v863_v54 = vor.u32 %v862_v39, %v859_v28  ;;  %v876_v20 = vrot.slane %v874_v2, 5  ;;  %v888_v59 = vshll.u32 %v2136_v23, 16  ;;  %v894_v32 = vshll.u32 %v1075_v16, 16 }
  0x84   :  { %v2391_v40 = vrot.slane %v880_v22, 5  ;;  %v899_v4 = vshrl.u32 %v2141_v11, 16  ;;  %v887_v28 = vrot.slane %v885_v27, 4  ;;  %v902_v2 = vshll.u32 %v2141_v11, 16 }
  0x85   :  { %v2397_v44 = vrot.slane %v863_v54, 4  ;;  %v877_v31 = vor.u32 %v876_v20, %v873_v35  ;;  %v890_v60 = vrot.slane %v888_v59, 5  ;;  %v2399_v23 = vrot.slane %v894_v32, 5  ;;  %v1078_v35 = vld [vmem:[%s2530_s0 + $0x74] sm:$0x1] }
  0x86   :  { %v901_v39 = vrot.slane %v899_v4, 4  ;;  %v908_v37 = vshll.u32 %v1076_v18, 16  ;;  %v913_v54 = vshrl.u32 %v2146_v8, 16  ;;  %v904_v20 = vrot.slane %v902_v2, 5 }
  0x87   :  { %v2406_v22 = vrot.slane %v877_v31, 4  ;;  %v891_v42 = vor.u32 %v890_v60, %v887_v28  ;;  %v916_v59 = vshll.u32 %v2146_v8, 16  ;;  %v922_v11 = vshll.u32 %v1077_v62, 16  ;;  %v1079_v28 = vld [vmem:[%s2530_s0 + $0x7c] sm:$0x1] }
  0x88   :  { %v910_v27 = vrot.slane %v908_v37, 5  ;;  %v915_v4 = vrot.slane %v913_v54, 4  ;;  %v927_v31 = vshrl.u32 %v2160_v58, 16  ;;  %v905_v60 = vor.u32 %v904_v20, %v901_v39 }
  0x89   :  { %v883_v18 = vsel %vm1383_vm2, %v2406_v22, %v2391_v40  ;;  %v892_v32 = vrot.slane %v891_v42, 4  ;;  %v918_v16 = vrot.slane %v916_v59, 5  ;;  %v924_v2 = vrot.slane %v922_v11, 5  ;;  %v1080_v40 = vld [vmem:[%s2530_s0 + $0x84] sm:$0x1] }
  0x8a   :  { %v930_v37 = vshll.u32 %v2160_v58, 16  ;;  %v929_v62 = vrot.slane %v927_v31, 4  ;;  %v936_v36 = vshll.u32 %v1078_v35, 16  ;;  %v941_v42 = vshrl.u32 %v2165_v48, 16 }
  0x8b   :  { %v897_v8 = vsel %vm1383_vm2, %v892_v32, %v2399_v23  ;;  %v906_v22 = vrot.slane %v905_v60, 4  ;;  %v919_v54 = vor.u32 %v918_v16, %v915_v4  ;;  %v944_v39 = vshll.u32 %v2165_v48, 16  ;;  %v1081_v23 = vld [vmem:[%s2530_s0 + $0x8c] sm:$0x1] }
  0x8c   :  { %v932_v45 = vrot.slane %v930_v37, 5  ;;  %v938_v20 = vrot.slane %v936_v36, 5  ;;  %v943_v59 = vrot.slane %v941_v42, 4  ;;  %v950_v58 = vshll.u32 %v1079_v28, 16 }
  0x8d   :  { %v955_v11 = vshrl.u32 %v2170_v0, 16  ;;  %v911_v35 = vsel %vm1383_vm2, %v906_v22, %v910_v27  ;;  %v920_v32 = vrot.slane %v919_v54, 4  ;;  %v946_v24 = vrot.slane %v944_v39, 5 }
  0x8e   :  { %v933_v31 = vor.u32 %v932_v45, %v929_v62  ;;  %v952_v60 = vrot.slane %v950_v58, 5  ;;  %v958_v4 = vshll.u32 %v2170_v0, 16  ;;  %v964_v48 = vshll.u32 %v1080_v40, 16 }
  0x8f   :  { %v957_v16 = vrot.slane %v955_v11, 4  ;;  %v925_v36 = vsel %vm1383_vm2, %v920_v32, %v924_v2  ;;  %v947_v37 = vor.u32 %v946_v24, %v943_v59  ;;  %v969_v42 = vshrl.u32 %v2175_v53, 16 }
  0x90   :  { %v934_v28 = vrot.slane %v933_v31, 4  ;;  %v960_v49 = vrot.slane %v958_v4, 5  ;;  %v966_v57 = vrot.slane %v964_v48, 5  ;;  %v972_v43 = vshll.u32 %v2175_v53, 16 }
  0x91   :  { %v978_v27 = vshll.u32 %v1081_v23, 16  ;;  %v948_v62 = vrot.slane %v947_v37, 4  ;;  %v971_v22 = vrot.slane %v969_v42, 4  ;;  %v2615_v0 = vsel %vm1383_vm2, %v2308_v12, %v2298_v26 }
  0x92   :  { %v939_v45 = vsel %vm1383_vm2, %v934_v28, %v938_v20  ;;  %v998_v2 = vmax.bf16 %v2615_v0, %v2248_v41  ;;  %v961_v24 = vor.u32 %v960_v49, %v957_v16  ;;  %v974_v40 = vrot.slane %v972_v43, 5 }
  0x93   :  { %v980_v54 = vrot.slane %v978_v27, 5  ;;  %v2616_v53 = vsel %vm1383_vm2, %v2315_v17, %v2300_v13  ;;  %v953_v20 = vsel %vm1383_vm2, %v948_v62, %v952_v60  ;;  %v2617_v26 = vsel %vm1383_vm2, %v2317_v21, %v2310_v34 }
  0x94   :  { %v999_v39 = vmax.bf16 %v2616_v53, %v2250_v10  ;;  %v1000_v41 = vmax.bf16 %v2617_v26, %v2252_v5  ;;  %v2618_v43 = vsel %vm1383_vm2, %v2339_v1, %v2319_v56  ;;  %v2619_v10 = vsel %vm1383_vm2, %v2358_v19, %v2341_v25 }
  0x95   :  { %v1001_v12 = vmax.bf16 %v2618_v43, %v2254_v9  ;;  %v1002_v13 = vmax.bf16 %v2619_v10, %v2259_v29  ;;  %v962_v17 = vrot.slane %v961_v24, 4  ;;  %v975_v49 = vor.u32 %v974_v40, %v971_v22 }
  0x96   :  { %v2620_v5 = vsel %vm1383_vm2, %v2363_v52, %v2352_v3  ;;  %v2621_v9 = vsel %vm1383_vm2, %v2380_v55, %v2360_v14  ;;  %v2622_v29 = vsel %vm1383_vm2, %v2397_v44, %v2373_v7  ;;  %v1006_v1 = vmax.bf16 %v883_v18, %v2270_v63  ;;  %v2623_v18 = vld [vmem:[#allocation3_spill] sm:$0xff] }
  0x97   :  { %v1003_v34 = vmax.bf16 %v2620_v5, %v2261_v61  ;;  %v1004_v21 = vmax.bf16 %v2621_v9, %v2263_v6  ;;  %v1005_v56 = vmax.bf16 %v2622_v29, %v2265_v38  ;;  %v1007_v25 = vmax.bf16 %v897_v8, %v2272_v30 }
  0x98   :  { %v1008_v61 = vmax.bf16 %v911_v35, %v2274_v47  ;;  %v967_v3 = vsel %vm1383_vm2, %v962_v17, %v966_v57  ;;  %v976_v19 = vrot.slane %v975_v49, 4  ;;  %v1009_v14 = vmax.bf16 %v925_v36, %v2276_v33 }
  0x99   :  { %v1010_v6 = vmax.bf16 %v939_v45, %v2278_v51  ;;  %v1011_v52 = vmax.bf16 %v953_v20, %v2280_v15  ;;  %v1012_v55 = vmax.bf16 %v967_v3, %v2282_v46  ;;  %v1122_v7 = vcombine.low %v998_v2, %v999_v39 }
  0x9a   :  { %v1123_v38 = vcombine.low %v1000_v41, %v1001_v12  ;;  %v981_v63 = vsel %vm1383_vm2, %v976_v19, %v980_v54  ;;  %v1125_v30 = vcombine.low %v1002_v13, %v1003_v34  ;;  %v1127_v44 = vcombine.low %v1004_v21, %v1005_v56 }
  0x9b   :  { %v1129_v47 = vcombine.low %v1006_v1, %v1007_v25  ;;  %v1013_v8 = vmax.bf16 %v981_v63, %v2623_v18  ;;  %1086 = vst [vmem:[%s2533_s4] sm:$0xff] %v1122_v7   ;;  %v1131_v33 = vcombine.low %v1008_v61, %v1009_v14  ;;  %v1133_v51 = vcombine.low %v1010_v6, %v1011_v52 }
  0x9c   :  { %1124 = vst [vmem:[%s2533_s4 + $0x8] sm:$0xff] %v1123_v38   ;;  %1126 = vst [vmem:[%s2533_s4 + $0x10] sm:$0xff] %v1125_v30  }
  0x9d   :  { %1128 = vst [vmem:[%s2533_s4 + $0x18] sm:$0xff] %v1127_v44   ;;  %1130 = vst [vmem:[%s2533_s4 + $0x20] sm:$0xff] %v1129_v47   ;;  %v1135_v50 = vcombine.low %v1012_v55, %v1013_v8 }
  0x9e   :  { %1132 = vst [vmem:[%s2533_s4 + $0x28] sm:$0xff] %v1131_v33   ;;  %1134 = vst [vmem:[%s2533_s4 + $0x30] sm:$0xff] %v1133_v51  }
  0x9f   :  { %1136 = vst [vmem:[%s2533_s4 + $0x38] sm:$0xff] %v1135_v50  }

// kernel: encoder_cnn_forward.11
= control target key start
LH: loop header
LB: loop body
LE: loop exit
PB: predicated region body
PF: predicated region fallthrough
CT: control target
= control target key end

     0   :  { %s1397_s15 = smov 0   ;;  %s1399_s16 = smov 0   ;;  %s1584_s0 = inlined_call_operand.vmem [shape: bf16[128,128], index: 0, kind: input, shape index: {}]   ;;  %s1585_s1 = inlined_call_operand.vmem [shape: bf16[128,256], index: 1, kind: input, shape index: {}]   ;;  %s1586_s2 = inlined_call_operand.vmem [shape: f32[1,256], index: 2, kind: input, shape index: {}]   ;;  %s1587_s3 = inlined_call_operand.vmem [shape: f32[1,256], index: 3, kind: input, shape index: {}]   ;;  %s1588_s4 = inlined_call_operand.vmem [shape: bf16[128,256], index: 4, kind: output, shape index: {}]  }
   0x1   :  { %s1401_s17 = smov 0   ;;  %s1403_s18 = smov 0  }
   0x2   :  { %s1405_s19 = smov 0  }
   0x3 LB: > { %s23_s20 = sadd.s32 1, %s1366_s18  ;;  %s1021_s21 = sadd.s32 4294967295, %s1370_s19   ;;  %s1370_s19 = sphi %s1405_s19, %s14_s19   ;;  %s1366_s18 = sphi %s1403_s18, %s1593_s18   ;;  %s1362_s17 = sphi %s1401_s17, %s1592_s17   ;;  %s1358_s16 = sphi %s1399_s16, %s1591_s16   ;;  %s1354_s15 = sphi %s1397_s15, %s1590_s15  }
   0x4   : > { %p24_p0 = scmp.ge.s32.totalorder %s23_s20, 2  ;;  %p66_p1 = scmp.ne.s32.totalorder %s1358_s16, %s1354_s15 }
   0x5   : > { %p67_p2 = scmp.eq.s32.totalorder %s1370_s19, 0  ;;  %p150_p4 = scmp.eq.s32.totalorder %s1021_s21, 1 }
   0x6   : > { %s1595_s20 = smov (%p24_p0, %s23_s20), 0  ;;  %s59_s23 = sadd.s32 1, %s1358_s16 }
   0x7   : > { %p68_p3 = por %p67_p2, %p66_p1  ;;  %s56_s22 = ssub.s32 %s1366_s18, %s1595_s20 }
   0x8   : > { %p57_p5 = scmp.eq.s32.totalorder %s56_s22, 0  ;;  %p1432_p6 = por %p150_p4, %p66_p1 }
   0x9   : > { %p1025_p7 = scmp.ge.s32.totalorder %s1370_s19, 2 }
   0xa   : > { %s1437_s25 = scalar_select %p57_p5, %s1358_s16, %s59_s23  }
   0xb   : > { %181 = sbr.rel (%p1025_p7) target bundleno = 32 (0x20), region = 20 }
  0x12   : > { %184 = sbr.rel (!%p68_p3) target bundleno = 32 (0x20), region = 24  ;;  %s186_s26 = sand.u32 (%p68_p3), 1, %s1358_s16  }
  0x13   : > { %s1027_s27 = sshll.u32 (%p68_p3), %s1366_s18, 2  ;;  %s1026_s28 = sshll.u32 (%p68_p3), %s186_s26, 6 }
  0x14   : > { %s1445_s5 = scalar_lea.vmem (%p68_p3), %s1585_s1, %s1027_s27  ;;  %s188_s6 = scalar_lea.vmem (%p68_p3), [#allocation2], %s1026_s28 }
  0x15   : > { %v206_v0 = vld [vmem:[%s1445_s5] sm:$0xf] (%p68_p3)  ;;  %v208_v1 = vld [vmem:[%s1445_s5 + $0x8] sm:$0xf] (%p68_p3)  ;;  %v210_v2 = vld [vmem:[%s1445_s5 + $0x10] sm:$0xf] (%p68_p3) }
  0x16   : > { %207 = vst [vmem:[%s188_s6] sm:$0xf] (%p68_p3), %v206_v0  ;;  %209 = vst [vmem:[%s188_s6 + $0x4] sm:$0xf] (%p68_p3), %v208_v1  ;;  %v212_v3 = vld [vmem:[%s1445_s5 + $0x18] sm:$0xf] (%p68_p3) }
  0x17   : > { %v214_v4 = vld [vmem:[%s1445_s5 + $0x20] sm:$0xf] (%p68_p3)  ;;  %211 = vst [vmem:[%s188_s6 + $0x8] sm:$0xf] (%p68_p3), %v210_v2  ;;  %213 = vst [vmem:[%s188_s6 + $0xc] sm:$0xf] (%p68_p3), %v212_v3 }
  0x18   : > { %215 = vst [vmem:[%s188_s6 + $0x10] sm:$0xf] (%p68_p3), %v214_v4  ;;  %v216_v5 = vld [vmem:[%s1445_s5 + $0x28] sm:$0xf] (%p68_p3)  ;;  %v218_v6 = vld [vmem:[%s1445_s5 + $0x30] sm:$0xf] (%p68_p3) }
  0x19   : > { %v220_v7 = vld [vmem:[%s1445_s5 + $0x38] sm:$0xf]  ;;  %217 = vst [vmem:[%s188_s6 + $0x14] sm:$0xf] %v216_v5  ;;  %219 = vst [vmem:[%s188_s6 + $0x18] sm:$0xf] %v218_v6 }
  0x1a   : > { %221 = vst [vmem:[%s188_s6 + $0x1c] sm:$0xf] %v220_v7  ;;  %v222_v8 = vld [vmem:[%s1445_s5 + $0x40] sm:$0xf]  ;;  %v224_v9 = vld [vmem:[%s1445_s5 + $0x48] sm:$0xf] }
  0x1b   : > { %v226_v10 = vld [vmem:[%s1445_s5 + $0x50] sm:$0xf]  ;;  %223 = vst [vmem:[%s188_s6 + $0x20] sm:$0xf] %v222_v8  ;;  %225 = vst [vmem:[%s188_s6 + $0x24] sm:$0xf] %v224_v9 }
  0x1c   : > { %227 = vst [vmem:[%s188_s6 + $0x28] sm:$0xf] %v226_v10  ;;  %v228_v11 = vld [vmem:[%s1445_s5 + $0x58] sm:$0xf]  ;;  %v230_v12 = vld [vmem:[%s1445_s5 + $0x60] sm:$0xf] }
  0x1d   : > { %v232_v13 = vld [vmem:[%s1445_s5 + $0x68] sm:$0xf]  ;;  %229 = vst [vmem:[%s188_s6 + $0x2c] sm:$0xf] %v228_v11  ;;  %231 = vst [vmem:[%s188_s6 + $0x30] sm:$0xf] %v230_v12 }
  0x1e   : > { %233 = vst [vmem:[%s188_s6 + $0x34] sm:$0xf] %v232_v13  ;;  %v234_v14 = vld [vmem:[%s1445_s5 + $0x70] sm:$0xf]  ;;  %v236_v15 = vld [vmem:[%s1445_s5 + $0x78] sm:$0xf] }
  0x1f   : > { %235 = vst [vmem:[%s188_s6 + $0x38] sm:$0xf] %v234_v14  ;;  %237 = vst [vmem:[%s188_s6 + $0x3c] sm:$0xf] %v236_v15 }
  0x20 PF: > { %p1028_p8 = scmp.ge.s32.totalorder %s1370_s19, 1  ;;  %p303_p9 = scmp.lt.s32.totalorder %s1370_s19, 3 }
  0x22   : > { %p304_p10 = pnand %p1028_p8, %p303_p9 }
  0x23   : > { %s310_s7 = sand.u32 (!%p304_p10), 1, %s1354_s15   ;;  %v1324_v16 = vld [vmem:[%s1584_s0] sm:$0xff] (!%p304_p10)   ;;  %v1326_v26 = vld [vmem:[%s1584_s0 + $0x8] sm:$0xff] (!%p304_p10)   ;;  %v1328_v28 = vld [vmem:[%s1584_s0 + $0x10] sm:$0xff] (!%p304_p10)   ;;  %p351_p11 = scmp.lt.s32.totalorder (!%p304_p10), %s1362_s17, 1 }
  0x24   : > { %307 = sbr.rel (%p304_p10) target bundleno = 317 (0x13d), region = 73  ;;  %s1469_s10 = sshll.u32 (!%p304_p10), %s310_s7, 6  ;;  %v1325_v17 = vld [vmem:[%s1584_s0 + $0x20] sm:$0xff] (!%p304_p10)   ;;  %1244 = vmatprep.mubr.bf16.mxu0 (!%p304_p10), %v1324_v16  ;;  %v1327_v27 = vld [vmem:[%s1584_s0 + $0x28] sm:$0xff] (!%p304_p10)   ;;  %v1329_v29 = vld [vmem:[%s1584_s0 + $0x30] sm:$0xff] (!%p304_p10)  }
  0x25   : > { %s1475_s13 = scalar_lea.vmem (!%p304_p10), [#allocation2], %s1469_s10  ;;  %1252 = vmatprep.mubr.bf16.mxu1 (!%p304_p10), %v1325_v17  ;;  %v1330_v30 = vld [vmem:[%s1584_s0 + $0x18] sm:$0xff] (!%p304_p10)   ;;  %s1524_s15 = scalar_lea.vmem (!%p304_p10), [#allocation3], %s1469_s10 }
  0x26   : > { %v1316_v18 = vld [vmem:[%s1475_s13] sm:$0xff] (!%p304_p10)   ;;  %v1317_v19 = vld [vmem:[%s1475_s13 + $0x8] sm:$0xff] (!%p304_p10)   ;;  %v1318_v20 = vld [vmem:[%s1475_s13 + $0x10] sm:$0xff] (!%p304_p10)   ;;  %p1065_p12 = scmp.ge.s32.totalorder (!%p304_p10), %s1362_s17, 1 }
  0x27   : > { %1228 = vmatprep.subr.bf16.mxu0 (!%p304_p10), %v1316_v18  ;;  %1260 = vmatprep.subr.bf16.mxu1 (!%p304_p10), %v1316_v18  ;;  %v1319_v21 = vld [vmem:[%s1475_s13 + $0x18] sm:$0xff] (!%p304_p10)   ;;  %v1320_v22 = vld [vmem:[%s1475_s13 + $0x20] sm:$0xff] (!%p304_p10)   ;;  %v1321_v23 = vld [vmem:[%s1475_s13 + $0x28] sm:$0xff] (!%p304_p10)  }
  0x28   : > { %1229 = vmatpush3.bf16.msra.mxu0 (!%p304_p10), %v1316_v18  ;;  %1268 = vmatpush3.bf16.msra.mxu1 (!%p304_p10), %v1316_v18  ;;  %v1322_v24 = vld [vmem:[%s1475_s13 + $0x30] sm:$0xff] (!%p304_p10)   ;;  %v1323_v25 = vld [vmem:[%s1475_s13 + $0x38] sm:$0xff] (!%p304_p10)  }
  0x29   : > { %1230 = vmatprep.subr.bf16.mxu0 (!%p304_p10), %v1317_v19  ;;  %1261 = vmatprep.subr.bf16.mxu1 (!%p304_p10), %v1317_v19  ;;  %v1331_v31 = vld [vmem:[%s1584_s0 + $0x38] sm:$0xff] (!%p304_p10)  }
  0x2b   : > { %s352_s7 = scalar_select %p351_p11, %s1362_s17, 1 }
  0x2c   : > { %1231 = vmatpush3.bf16.msra.mxu0 %v1317_v19  ;;  %1269 = vmatpush3.bf16.msra.mxu1 %v1317_v19 }
  0x2d   : > { %1232 = vmatprep.subr.bf16.mxu0 %v1318_v20  ;;  %1262 = vmatprep.subr.bf16.mxu1 %v1318_v20  ;;  %s353_s11 = scalar_lea.vmem %s1586_s2, %s352_s7  ;;  %s356_s14 = scalar_lea.vmem %s1587_s3, %s352_s7 }
  0x2e   : > { %v1047_v32 = vld [vmem:[%s353_s11] ss:$0 sm:$0xff] }
  0x2f   : > { %v1048_v39 = vld [vmem:[%s356_s14] ss:$0 sm:$0xff] }
  0x30   : > { %1233 = vmatpush3.bf16.msra.mxu0 %v1318_v20  ;;  %1270 = vmatpush3.bf16.msra.mxu1 %v1318_v20 }
  0x31   : > { %1234 = vmatprep.subr.bf16.mxu0 %v1319_v21  ;;  %1263 = vmatprep.subr.bf16.mxu1 %v1319_v21 }
  0x34   : > { %1235 = vmatpush3.bf16.msra.mxu0 %v1319_v21  ;;  %1271 = vmatpush3.bf16.msra.mxu1 %v1319_v21 }
  0x35   : > { %1236 = vmatprep.subr.bf16.mxu0 %v1320_v22  ;;  %1264 = vmatprep.subr.bf16.mxu1 %v1320_v22 }
  0x38   : > { %1237 = vmatpush3.bf16.msra.mxu0 %v1320_v22  ;;  %1272 = vmatpush3.bf16.msra.mxu1 %v1320_v22 }
  0x39   : > { %1238 = vmatprep.subr.bf16.mxu0 %v1321_v23  ;;  %1265 = vmatprep.subr.bf16.mxu1 %v1321_v23 }
  0x3c   : > { %1239 = vmatpush3.bf16.msra.mxu0 %v1321_v23  ;;  %1273 = vmatpush3.bf16.msra.mxu1 %v1321_v23 }
  0x3d   : > { %1240 = vmatprep.subr.bf16.mxu0 %v1322_v24  ;;  %1266 = vmatprep.subr.bf16.mxu1 %v1322_v24 }
  0x40   : > { %1241 = vmatpush3.bf16.msra.mxu0 %v1322_v24  ;;  %1274 = vmatpush3.bf16.msra.mxu1 %v1322_v24 }
  0x41   : > { %1242 = vmatprep.subr.bf16.mxu0 %v1323_v25  ;;  %1267 = vmatprep.subr.bf16.mxu1 %v1323_v25 }
  0x44   : > { %1243 = vmatpush3.bf16.msra.mxu0 %v1323_v25  ;;  %1275 = vmatpush3.bf16.msra.mxu1 %v1323_v25 }
  0x47   : > { %1245 = vmatmul.mubr.bf16.vlgmr.msra.gmra.mrb[0].mxu0 %v1326_v26  ;;  %1253 = vmatmul.mubr.bf16.vlgmr.msra.gmra.mrb[0].mxu1 %v1327_v27 }
  0x48   : > { %1248 = vmatprep.mubr.bf16.mxu0 %v1328_v28  ;;  %1256 = vmatprep.mubr.bf16.mxu1 %v1329_v29 }
  0x4f   : > { %1249 = vmatmul.mubr.bf16.gmra.mrb[4].mxu0 %v1330_v30  ;;  %1257 = vmatmul.mubr.bf16.gmra.mrb[4].mxu1 %v1331_v31 }
 0x11a   : > { %v1246_v33 = vpop.f32.mrb[0].mxu0  ;;  %v1254_v34 = vpop.f32.mrb[0].mxu1 }
 0x11b   : > { %v593_v35 = vmul.f32 %v1246_v33, %v1047_v32  ;;  %v601_v36 = vmul.f32 %v1254_v34, %v1047_v32  ;;  %v521_v37 = vpop.f32.mrb[1].mxu0  ;;  %v553_v38 = vpop.f32.mrb[1].mxu1 }
 0x11c   : > { %v591_v40 = vmul.f32 %v1047_v32, %v521_v37  ;;  %v599_v41 = vmul.f32 %v1047_v32, %v553_v38  ;;  %v1247_v42 = vpop.f32.mrb[2].mxu0  ;;  %v1255_v43 = vpop.f32.mrb[2].mxu1 }
 0x11d   : > { %v594_v44 = vmul.f32 %v1247_v42, %v1047_v32  ;;  %v602_v45 = vmul.f32 %v1255_v43, %v1047_v32  ;;  %v524_v46 = vpop.f32.mrb[3].mxu0  ;;  %v556_v47 = vpop.f32.mrb[3].mxu1  ;;  %v616_v50 = vadd.f32 %v1048_v39, %v593_v35  ;;  %v1511_v51 = vadd.f32 %v1048_v39, %v601_v36 }
 0x11e   : > { %v592_v48 = vmul.f32 %v1047_v32, %v524_v46  ;;  %v600_v49 = vmul.f32 %v1047_v32, %v556_v47  ;;  %v614_v54 = vadd.f32 %v1048_v39, %v591_v40  ;;  %v1515_v55 = vadd.f32 %v1048_v39, %v599_v41 }
 0x11f   : > { %v617_v52 = vadd.f32 %v1048_v39, %v594_v44  ;;  %v1513_v53 = vadd.f32 %v1048_v39, %v602_v45  ;;  %v716_v28 = vmax.f32 (!%p1065_p12), %v616_v50, 0.0  ;;  %v724_v40 = vmax.f32 (!%p1065_p12), %v1511_v51, 0.0 }
 0x120   : > { %v615_v56 = vadd.f32 %v1048_v39, %v592_v48  ;;  %v1517_v57 = vadd.f32 %v1048_v39, %v600_v49  ;;  %v714_v26 = vmax.f32 (!%p1065_p12), %v614_v54, 0.0  ;;  %v722_v36 = vmax.f32 (!%p1065_p12), %v1515_v55, 0.0 }
 0x121   : > { %v1126_v58 = vpack.c.bf16 %v617_v52, %v616_v50  ;;  %v1146_v59 = vpack.c.bf16 %v1513_v53, %v1511_v51  ;;  %v717_v29 = vmax.f32 (!%p1065_p12), %v617_v52, 0.0  ;;  %v725_v41 = vmax.f32 (!%p1065_p12), %v1513_v53, 0.0 }
 0x122   : > { %v1121_v60 = vpack.c.bf16 %v615_v56, %v614_v54  ;;  %v1141_v61 = vpack.c.bf16 %v1517_v57, %v1515_v55  ;;  %v1250_v62 = vpop.f32.mrb[4].mxu0  ;;  %v1258_v63 = vpop.f32.mrb[4].mxu1  ;;  %v715_v27 = vmax.f32 (!%p1065_p12), %v615_v56, 0.0  ;;  %v723_v37 = vmax.f32 (!%p1065_p12), %v1517_v57, 0.0 }
 0x123   : > { %1198 = vst [vmem:[%s1524_s15 + $0x8] sm:$0xff] %v1126_v58   ;;  %1202 = vst [vmem:[%s1524_s15 + $0x28] sm:$0xff] %v1146_v59   ;;  %v597_v0 = vmul.f32 %v1250_v62, %v1047_v32  ;;  %v605_v1 = vmul.f32 %v1258_v63, %v1047_v32  ;;  %v537_v2 = vpop.f32.mrb[5].mxu0  ;;  %v569_v3 = vpop.f32.mrb[5].mxu1  ;;  %v1166_v35 = vpack.c.bf16 (!%p1065_p12), %v717_v29, %v716_v28 }
 0x124   : > { %1122 = vst [vmem:[%s1524_s15] sm:$0xff] %v1121_v60   ;;  %1201 = vst [vmem:[%s1524_s15 + $0x20] sm:$0xff] %v1141_v61   ;;  %v595_v4 = vmul.f32 %v1047_v32, %v537_v2  ;;  %v603_v5 = vmul.f32 %v1047_v32, %v569_v3  ;;  %v1251_v6 = vpop.f32.mrb[6].mxu0  ;;  %v1259_v7 = vpop.f32.mrb[6].mxu1  ;;  %v1161_v34 = vpack.c.bf16 (!%p1065_p12), %v715_v27, %v714_v26 }
 0x125   : > { %v598_v8 = vmul.f32 %v1251_v6, %v1047_v32  ;;  %v606_v9 = vmul.f32 %v1259_v7, %v1047_v32  ;;  %v540_v10 = vpop.f32.mrb[7].mxu0  ;;  %v572_v11 = vpop.f32.mrb[7].mxu1  ;;  %v620_v14 = vadd.f32 %v1048_v39, %v597_v0  ;;  %v628_v15 = vadd.f32 %v1048_v39, %v605_v1  ;;  %1205 = vst [vmem:[%s1524_s15 + $0x8] sm:$0xff] (!%p1065_p12), %v1166_v35  }
 0x126   : > { %v596_v12 = vmul.f32 %v1047_v32, %v540_v10  ;;  %v604_v13 = vmul.f32 %v1047_v32, %v572_v11  ;;  %v618_v18 = vadd.f32 %v1048_v39, %v595_v4  ;;  %v626_v19 = vadd.f32 %v1048_v39, %v603_v5  ;;  %713 = sbr.rel (%p1065_p12) target bundleno = 304 (0x130), region = 81  ;;  %1162 = vst [vmem:[%s1524_s15] sm:$0xff] (!%p1065_p12), %v1161_v34  }
 0x127   : > { %v621_v16 = vadd.f32 %v1048_v39, %v598_v8  ;;  %v629_v17 = vadd.f32 %v1048_v39, %v606_v9  ;;  %v720_v32 = vmax.f32 (!%p1065_p12), %v620_v14, 0.0  ;;  %v1181_v42 = vpack.c.bf16 (!%p1065_p12), %v723_v37, %v722_v36 }
 0x128   : > { %v619_v20 = vadd.f32 %v1048_v39, %v596_v12  ;;  %v627_v21 = vadd.f32 %v1048_v39, %v604_v13  ;;  %v718_v30 = vmax.f32 (!%p1065_p12), %v618_v18, 0.0  ;;  %v726_v43 = vmax.f32 (!%p1065_p12), %v626_v19, 0.0 }
 0x129   : > { %v1136_v22 = vpack.c.bf16 %v621_v16, %v620_v14  ;;  %v1156_v23 = vpack.c.bf16 %v629_v17, %v628_v15  ;;  %v721_v33 = vmax.f32 (!%p1065_p12), %v621_v16, 0.0  ;;  %v728_v45 = vmax.f32 (!%p1065_p12), %v628_v15, 0.0  ;;  %1208 = vst [vmem:[%s1524_s15 + $0x20] sm:$0xff] (!%p1065_p12), %v1181_v42  }
 0x12a   : > { %v1131_v24 = vpack.c.bf16 %v619_v20, %v618_v18  ;;  %v1151_v25 = vpack.c.bf16 %v627_v21, %v626_v19  ;;  %v719_v31 = vmax.f32 (!%p1065_p12), %v619_v20, 0.0  ;;  %v727_v44 = vmax.f32 (!%p1065_p12), %v627_v21, 0.0 }
 0x12b   : > { %1200 = vst [vmem:[%s1524_s15 + $0x18] sm:$0xff] %v1136_v22   ;;  %1204 = vst [vmem:[%s1524_s15 + $0x38] sm:$0xff] %v1156_v23   ;;  %v1176_v39 = vpack.c.bf16 (!%p1065_p12), %v721_v33, %v720_v32  ;;  %v1186_v46 = vpack.c.bf16 (!%p1065_p12), %v725_v41, %v724_v40  ;;  %v729_v47 = vmax.f32 (!%p1065_p12), %v629_v17, 0.0 }
 0x12c   : > { %1199 = vst [vmem:[%s1524_s15 + $0x10] sm:$0xff] %v1131_v24   ;;  %1203 = vst [vmem:[%s1524_s15 + $0x30] sm:$0xff] %v1151_v25   ;;  %v1171_v38 = vpack.c.bf16 (!%p1065_p12), %v719_v31, %v718_v30  ;;  %v1191_v48 = vpack.c.bf16 (!%p1065_p12), %v727_v44, %v726_v43 }
 0x12d   : > { %1207 = vst [vmem:[%s1524_s15 + $0x18] sm:$0xff] %v1176_v39   ;;  %1209 = vst [vmem:[%s1524_s15 + $0x28] sm:$0xff] %v1186_v46   ;;  %v1196_v49 = vpack.c.bf16 %v729_v47, %v728_v45 }
 0x12e   : > { %1206 = vst [vmem:[%s1524_s15 + $0x10] sm:$0xff] %v1171_v38   ;;  %1210 = vst [vmem:[%s1524_s15 + $0x30] sm:$0xff] %v1191_v48  }
 0x12f   : > { %1211 = vst [vmem:[%s1524_s15 + $0x38] sm:$0xff] %v1196_v49  }
 0x130 PF: > { %816 = sbr.rel (!%p1432_p6) target bundleno = 317 (0x13d), region = 85  ;;  %s1083_s10 = sshll.u32 (%p1432_p6), %s1362_s17, 2  ;;  %v837_v50 = vld [vmem:[%s1524_s15] sm:$0xf] (%p1432_p6)  ;;  %v839_v51 = vld [vmem:[%s1524_s15 + $0x4] sm:$0xf] (%p1432_p6) }
 0x131   : > { %s821_s23 = scalar_lea.vmem (%p1432_p6), %s1588_s4, %s1083_s10  ;;  %v841_v52 = vld [vmem:[%s1524_s15 + $0x8] sm:$0xf] (%p1432_p6)  ;;  %v843_v53 = vld [vmem:[%s1524_s15 + $0xc] sm:$0xf] (%p1432_p6) }
 0x132   : > { %838 = vst [vmem:[%s821_s23] sm:$0xf] (%p1432_p6), %v837_v50  ;;  %840 = vst [vmem:[%s821_s23 + $0x8] sm:$0xf] (%p1432_p6), %v839_v51 }
 0x133   : > { %842 = vst [vmem:[%s821_s23 + $0x10] sm:$0xf] (%p1432_p6), %v841_v52  ;;  %844 = vst [vmem:[%s821_s23 + $0x18] sm:$0xf] (%p1432_p6), %v843_v53  ;;  %v853_v58 = vld [vmem:[%s1524_s15 + $0x20] sm:$0xf] (%p1432_p6) }
 0x134   : > { %v855_v59 = vld [vmem:[%s1524_s15 + $0x24] sm:$0xf] (%p1432_p6)  ;;  %854 = vst [vmem:[%s821_s23 + $0x40] sm:$0xf] (%p1432_p6), %v853_v58 }
 0x135   : > { %856 = vst [vmem:[%s821_s23 + $0x48] sm:$0xf] (%p1432_p6), %v855_v59 }
 0x136   : > { %v845_v54 = vld [vmem:[%s1524_s15 + $0x10] sm:$0xf] (%p1432_p6)  ;;  %v847_v55 = vld [vmem:[%s1524_s15 + $0x14] sm:$0xf] (%p1432_p6)  ;;  %v865_v0 = vld [vmem:[%s1524_s15 + $0x38] sm:$0xf] (%p1432_p6) }
 0x137   : > { %846 = vst [vmem:[%s821_s23 + $0x20] sm:$0xf] %v845_v54  ;;  %v849_v56 = vld [vmem:[%s1524_s15 + $0x18] sm:$0xf]  ;;  %v851_v57 = vld [vmem:[%s1524_s15 + $0x1c] sm:$0xf] }
 0x138   : > { %848 = vst [vmem:[%s821_s23 + $0x28] sm:$0xf] %v847_v55  ;;  %850 = vst [vmem:[%s821_s23 + $0x30] sm:$0xf] %v849_v56  ;;  %v857_v60 = vld [vmem:[%s1524_s15 + $0x28] sm:$0xf] }
 0x139   : > { %852 = vst [vmem:[%s821_s23 + $0x38] sm:$0xf] %v851_v57  ;;  %858 = vst [vmem:[%s821_s23 + $0x50] sm:$0xf] %v857_v60  ;;  %v859_v61 = vld [vmem:[%s1524_s15 + $0x2c] sm:$0xf] }
 0x13a   : > { %v861_v62 = vld [vmem:[%s1524_s15 + $0x30] sm:$0xf]  ;;  %v863_v63 = vld [vmem:[%s1524_s15 + $0x34] sm:$0xf]  ;;  %860 = vst [vmem:[%s821_s23 + $0x58] sm:$0xf] %v859_v61 }
 0x13b   : > { %862 = vst [vmem:[%s821_s23 + $0x60] sm:$0xf] %v861_v62  ;;  %864 = vst [vmem:[%s821_s23 + $0x68] sm:$0xf] %v863_v63  ;;  %v867_v1 = vld [vmem:[%s1524_s15 + $0x3c] sm:$0xf] }
 0x13c   : > { %866 = vst [vmem:[%s821_s23 + $0x70] sm:$0xf] %v865_v0  ;;  %868 = vst [vmem:[%s821_s23 + $0x78] sm:$0xf] %v867_v1 }
 0x13d PF: > { %s14_s19 = sadd.s32 1, %s1370_s19   ;;  %s1590_s15 = smov %s1358_s16 }
 0x13e   : > { %p11_p13 = scmp.ge.s32.totalorder %s14_s19, 4   ;;  %s1591_s16 = smov %s1437_s25 }
 0x13f   : > { %s1592_s17 = smov %s1366_s18  ;;  %s1593_s18 = smov %s1595_s20 }
 0x140   :  { %13 = sbr.rel (!%p11_p13) target bundleno = 3 (0x3), region = 166 }

// kernel: encoder_cnn_forward.15
= control target key start
LH: loop header
LB: loop body
LE: loop exit
PB: predicated region body
PF: predicated region fallthrough
CT: control target
= control target key end

     0   :  { %s687_s1 = inlined_call_operand.vmem [shape: bf16[128,128], index: 1, kind: input, shape index: {}]   ;;  %s688_s0 = inlined_call_operand.vmem [shape: bf16[128,128], index: 0, kind: input, shape index: {}]   ;;  %s689_s2 = inlined_call_operand.vmem [shape: f32[1,128], index: 2, kind: input, shape index: {}]   ;;  %s690_s3 = inlined_call_operand.vmem [shape: f32[1,128], index: 3, kind: input, shape index: {}]   ;;  %s691_s4 = inlined_call_operand.vmem [shape: bf16[128,128], index: 4, kind: output, shape index: {}]  }
   0x1   :  { %v550_v0 = vld [vmem:[%s687_s1] sm:$0xff]   ;;  %v551_v1 = vld [vmem:[%s687_s1 + $0x8] sm:$0xff]   ;;  %v552_v2 = vld [vmem:[%s687_s1 + $0x10] sm:$0xff]  }
   0x2   :  { %502 = vmatprep.subr.bf16.mxu0 %v550_v0  ;;  %534 = vmatprep.subr.bf16.mxu1 %v550_v0  ;;  %v553_v3 = vld [vmem:[%s687_s1 + $0x18] sm:$0xff]   ;;  %v558_v4 = vld [vmem:[%s688_s0] sm:$0xff]   ;;  %v555_v7 = vld [vmem:[%s687_s1 + $0x28] sm:$0xff]  }
   0x3   :  { %503 = vmatpush3.bf16.msra.mxu0 %v550_v0  ;;  %542 = vmatpush3.bf16.msra.mxu1 %v550_v0  ;;  %v559_v5 = vld [vmem:[%s688_s0 + $0x20] sm:$0xff]   ;;  %v556_v8 = vld [vmem:[%s687_s1 + $0x30] sm:$0xff]   ;;  %v557_v9 = vld [vmem:[%s687_s1 + $0x38] sm:$0xff]  }
   0x4   :  { %504 = vmatprep.subr.bf16.mxu0 %v551_v1  ;;  %535 = vmatprep.subr.bf16.mxu1 %v551_v1  ;;  %v554_v6 = vld [vmem:[%s687_s1 + $0x20] sm:$0xff]   ;;  %v560_v10 = vld [vmem:[%s688_s0 + $0x8] sm:$0xff]   ;;  %v562_v12 = vld [vmem:[%s688_s0 + $0x10] sm:$0xff]  }
   0x5   :  { %518 = vmatprep.mubr.bf16.mxu0 %v558_v4  ;;  %526 = vmatprep.mubr.bf16.mxu1 %v559_v5  ;;  %v561_v11 = vld [vmem:[%s688_s0 + $0x28] sm:$0xff]   ;;  %v563_v13 = vld [vmem:[%s688_s0 + $0x30] sm:$0xff]   ;;  %v564_v14 = vld [vmem:[%s688_s0 + $0x18] sm:$0xff]  }
   0x6   :  { %v565_v15 = vld [vmem:[%s688_s0 + $0x38] sm:$0xff]   ;;  %v405_v16 = vld [vmem:[%s689_s2] ss:$0 sm:$0xff] }
   0x7   :  { %505 = vmatpush3.bf16.msra.mxu0 %v551_v1  ;;  %543 = vmatpush3.bf16.msra.mxu1 %v551_v1  ;;  %v645_v18 = vld [vmem:[%s690_s3] ss:$0 sm:$0xff] }
   0x8   :  { %506 = vmatprep.subr.bf16.mxu0 %v552_v2  ;;  %536 = vmatprep.subr.bf16.mxu1 %v552_v2 }
   0xb   :  { %507 = vmatpush3.bf16.msra.mxu0 %v552_v2  ;;  %544 = vmatpush3.bf16.msra.mxu1 %v552_v2 }
   0xc   :  { %508 = vmatprep.subr.bf16.mxu0 %v553_v3  ;;  %537 = vmatprep.subr.bf16.mxu1 %v553_v3 }
   0xf   :  { %509 = vmatpush3.bf16.msra.mxu0 %v553_v3  ;;  %545 = vmatpush3.bf16.msra.mxu1 %v553_v3 }
  0x10   :  { %510 = vmatprep.subr.bf16.mxu0 %v554_v6  ;;  %538 = vmatprep.subr.bf16.mxu1 %v554_v6 }
  0x13   :  { %511 = vmatpush3.bf16.msra.mxu0 %v554_v6  ;;  %546 = vmatpush3.bf16.msra.mxu1 %v554_v6 }
  0x14   :  { %512 = vmatprep.subr.bf16.mxu0 %v555_v7  ;;  %539 = vmatprep.subr.bf16.mxu1 %v555_v7 }
  0x17   :  { %513 = vmatpush3.bf16.msra.mxu0 %v555_v7  ;;  %547 = vmatpush3.bf16.msra.mxu1 %v555_v7 }
  0x18   :  { %514 = vmatprep.subr.bf16.mxu0 %v556_v8  ;;  %540 = vmatprep.subr.bf16.mxu1 %v556_v8 }
  0x1b   :  { %515 = vmatpush3.bf16.msra.mxu0 %v556_v8  ;;  %548 = vmatpush3.bf16.msra.mxu1 %v556_v8 }
  0x1c   :  { %516 = vmatprep.subr.bf16.mxu0 %v557_v9  ;;  %541 = vmatprep.subr.bf16.mxu1 %v557_v9 }
  0x1f   :  { %517 = vmatpush3.bf16.msra.mxu0 %v557_v9  ;;  %549 = vmatpush3.bf16.msra.mxu1 %v557_v9 }
  0x22   :  { %519 = vmatmul.mubr.bf16.vlgmr.msra.gmra.mrb[0].mxu0 %v560_v10  ;;  %527 = vmatmul.mubr.bf16.vlgmr.msra.gmra.mrb[0].mxu1 %v561_v11 }
  0x23   :  { %522 = vmatprep.mubr.bf16.mxu0 %v562_v12  ;;  %530 = vmatprep.mubr.bf16.mxu1 %v563_v13 }
  0x2a   :  { %523 = vmatmul.mubr.bf16.gmra.mrb[4].mxu0 %v564_v14  ;;  %531 = vmatmul.mubr.bf16.gmra.mrb[4].mxu1 %v565_v15 }
  0xf5   :  { %v520_v17 = vpop.f32.mrb[0].mxu0  ;;  %v528_v19 = vpop.f32.mrb[0].mxu1 }
  0xf6   :  { %v252_v20 = vmul.f32 %v520_v17, %v405_v16  ;;  %v260_v21 = vmul.f32 %v528_v19, %v405_v16  ;;  %v180_v22 = vpop.f32.mrb[1].mxu0  ;;  %v212_v23 = vpop.f32.mrb[1].mxu1 }
  0xf7   :  { %v250_v24 = vmul.f32 %v405_v16, %v180_v22  ;;  %v258_v25 = vmul.f32 %v405_v16, %v212_v23  ;;  %v521_v26 = vpop.f32.mrb[2].mxu0  ;;  %v529_v27 = vpop.f32.mrb[2].mxu1 }
  0xf8   :  { %v275_v28 = vadd.f32 %v645_v18, %v252_v20  ;;  %v283_v29 = vadd.f32 %v645_v18, %v260_v21  ;;  %v253_v30 = vmul.f32 %v521_v26, %v405_v16  ;;  %v261_v31 = vmul.f32 %v529_v27, %v405_v16  ;;  %v183_v32 = vpop.f32.mrb[3].mxu0  ;;  %v215_v33 = vpop.f32.mrb[3].mxu1 }
  0xf9   :  { %v273_v34 = vadd.f32 %v645_v18, %v250_v24  ;;  %v281_v35 = vadd.f32 %v645_v18, %v258_v25  ;;  %v251_v36 = vmul.f32 %v405_v16, %v183_v32  ;;  %v259_v37 = vmul.f32 %v405_v16, %v215_v33 }
  0xfa   :  { %v276_v38 = vadd.f32 %v645_v18, %v253_v30  ;;  %v284_v39 = vadd.f32 %v645_v18, %v261_v31  ;;  %v291_v42 = vmax.f32 %v275_v28, 0.0  ;;  %v299_v43 = vmax.f32 %v283_v29, 0.0 }
  0xfb   :  { %v274_v40 = vadd.f32 %v645_v18, %v251_v36  ;;  %v282_v41 = vadd.f32 %v645_v18, %v259_v37  ;;  %v289_v46 = vmax.f32 %v273_v34, 0.0  ;;  %v297_v47 = vmax.f32 %v281_v35, 0.0 }
  0xfc   :  { %v292_v44 = vmax.f32 %v276_v38, 0.0  ;;  %v300_v45 = vmax.f32 %v284_v39, 0.0 }
  0xfd   :  { %v290_v48 = vmax.f32 %v274_v40, 0.0  ;;  %v298_v49 = vmax.f32 %v282_v41, 0.0  ;;  %v524_v50 = vpop.f32.mrb[4].mxu0  ;;  %v532_v51 = vpop.f32.mrb[4].mxu1 }
  0xfe   :  { %v447_v52 = vpack.c.bf16 %v292_v44, %v291_v42  ;;  %v467_v53 = vpack.c.bf16 %v300_v45, %v299_v43  ;;  %v256_v54 = vmul.f32 %v524_v50, %v405_v16  ;;  %v264_v55 = vmul.f32 %v532_v51, %v405_v16  ;;  %v196_v56 = vpop.f32.mrb[5].mxu0  ;;  %v228_v57 = vpop.f32.mrb[5].mxu1 }
  0xff   :  { %v442_v58 = vpack.c.bf16 %v290_v48, %v289_v46  ;;  %v462_v59 = vpack.c.bf16 %v298_v49, %v297_v47  ;;  %v254_v60 = vmul.f32 %v405_v16, %v196_v56  ;;  %v262_v61 = vmul.f32 %v405_v16, %v228_v57  ;;  %v525_v62 = vpop.f32.mrb[6].mxu0  ;;  %v533_v63 = vpop.f32.mrb[6].mxu1 }
 0x100   :  { %479 = vst [vmem:[%s691_s4 + $0x8] sm:$0xff] %v447_v52   ;;  %483 = vst [vmem:[%s691_s4 + $0x28] sm:$0xff] %v467_v53   ;;  %v279_v0 = vadd.f32 %v645_v18, %v256_v54  ;;  %v287_v1 = vadd.f32 %v645_v18, %v264_v55  ;;  %v257_v2 = vmul.f32 %v525_v62, %v405_v16  ;;  %v199_v4 = vpop.f32.mrb[7].mxu0  ;;  %v231_v5 = vpop.f32.mrb[7].mxu1 }
 0x101   :  { %v265_v3 = vmul.f32 %v533_v63, %v405_v16  ;;  %443 = vst [vmem:[%s691_s4] sm:$0xff] %v442_v58   ;;  %482 = vst [vmem:[%s691_s4 + $0x20] sm:$0xff] %v462_v59   ;;  %v277_v6 = vadd.f32 %v645_v18, %v254_v60  ;;  %v285_v7 = vadd.f32 %v645_v18, %v262_v61 }
 0x102   :  { %v255_v8 = vmul.f32 %v405_v16, %v199_v4  ;;  %v263_v9 = vmul.f32 %v405_v16, %v231_v5  ;;  %v280_v10 = vadd.f32 %v645_v18, %v257_v2  ;;  %v295_v14 = vmax.f32 %v279_v0, 0.0 }
 0x103   :  { %v288_v11 = vadd.f32 %v645_v18, %v265_v3  ;;  %v303_v15 = vmax.f32 %v287_v1, 0.0  ;;  %v293_v20 = vmax.f32 %v277_v6, 0.0  ;;  %v301_v21 = vmax.f32 %v285_v7, 0.0 }
 0x104   :  { %v278_v12 = vadd.f32 %v645_v18, %v255_v8  ;;  %v286_v13 = vadd.f32 %v645_v18, %v263_v9  ;;  %v296_v17 = vmax.f32 %v280_v10, 0.0 }
 0x105   :  { %v304_v19 = vmax.f32 %v288_v11, 0.0 }
 0x106   :  { %v294_v22 = vmax.f32 %v278_v12, 0.0  ;;  %v302_v23 = vmax.f32 %v286_v13, 0.0  ;;  %v457_v24 = vpack.c.bf16 %v296_v17, %v295_v14 }
 0x107   :  { %v477_v25 = vpack.c.bf16 %v304_v19, %v303_v15 }
 0x108   :  { %v452_v26 = vpack.c.bf16 %v294_v22, %v293_v20  ;;  %v472_v16 = vpack.c.bf16 %v302_v23, %v301_v21  ;;  %481 = vst [vmem:[%s691_s4 + $0x18] sm:$0xff] %v457_v24  }
 0x109   :  { %485 = vst [vmem:[%s691_s4 + $0x38] sm:$0xff] %v477_v25  }
 0x10a   :  { %480 = vst [vmem:[%s691_s4 + $0x10] sm:$0xff] %v452_v26   ;;  %484 = vst [vmem:[%s691_s4 + $0x30] sm:$0xff] %v472_v16  }

// kernel: encoder_cnn_forward.13
= control target key start
LH: loop header
LB: loop body
LE: loop exit
PB: predicated region body
PF: predicated region fallthrough
CT: control target
= control target key end

     0   :  { %s998_s0 = inlined_call_operand.vmem [shape: bf16[128,128], index: 0, kind: input, shape index: {}]   ;;  %s999_s1 = inlined_call_operand.vmem [shape: bf16[128,128], index: 1, kind: input, shape index: {}]   ;;  %s1000_s2 = inlined_call_operand.vmem [shape: f32[1,128], index: 2, kind: input, shape index: {}]   ;;  %s1001_s3 = inlined_call_operand.vmem [shape: f32[1,128], index: 3, kind: input, shape index: {}]   ;;  %s1002_s4 = inlined_call_operand.vmem [shape: bf16[128,256], index: 4, kind: input, shape index: {}]   ;;  %s1003_s5 = inlined_call_operand.vmem [shape: bf16[128,128], index: 5, kind: output, shape index: {}]  }
   0x1   :  { %v766_v0 = vld [vmem:[%s999_s1] sm:$0xff]   ;;  %v767_v1 = vld [vmem:[%s999_s1 + $0x8] sm:$0xff]   ;;  %v768_v2 = vld [vmem:[%s999_s1 + $0x10] sm:$0xff]  }
   0x2   :  { %718 = vmatprep.subr.bf16.mxu0 %v766_v0  ;;  %750 = vmatprep.subr.bf16.mxu1 %v766_v0  ;;  %v769_v3 = vld [vmem:[%s999_s1 + $0x18] sm:$0xff]   ;;  %v774_v4 = vld [vmem:[%s998_s0] sm:$0xff]   ;;  %v771_v7 = vld [vmem:[%s999_s1 + $0x28] sm:$0xff]  }
   0x3   :  { %719 = vmatpush3.bf16.msra.mxu0 %v766_v0  ;;  %758 = vmatpush3.bf16.msra.mxu1 %v766_v0  ;;  %v775_v5 = vld [vmem:[%s998_s0 + $0x20] sm:$0xff]   ;;  %v552_v8 = vld [vmem:[%s1002_s4 + $0x14] sm:$0xf]  ;;  %v553_v9 = vld [vmem:[%s1002_s4 + $0x1c] sm:$0xf] }
   0x4   :  { %720 = vmatprep.subr.bf16.mxu0 %v767_v1  ;;  %751 = vmatprep.subr.bf16.mxu1 %v767_v1  ;;  %v770_v6 = vld [vmem:[%s999_s1 + $0x20] sm:$0xff]   ;;  %43 = vst [vmem:[#allocation2 + $0x8] sm:$0xf] %v552_v8  ;;  %45 = vst [vmem:[#allocation2 + $0xc] sm:$0xf] %v553_v9  ;;  %v772_v10 = vld [vmem:[%s999_s1 + $0x30] sm:$0xff]  }
   0x5   :  { %734 = vmatprep.mubr.bf16.mxu0 %v774_v4  ;;  %742 = vmatprep.mubr.bf16.mxu1 %v775_v5  ;;  %v773_v11 = vld [vmem:[%s999_s1 + $0x38] sm:$0xff]   ;;  %v776_v12 = vld [vmem:[%s998_s0 + $0x8] sm:$0xff]   ;;  %v778_v14 = vld [vmem:[%s998_s0 + $0x10] sm:$0xff]  }
   0x6   :  { %v777_v13 = vld [vmem:[%s998_s0 + $0x28] sm:$0xff]   ;;  %v779_v15 = vld [vmem:[%s998_s0 + $0x30] sm:$0xff]   ;;  %v780_v16 = vld [vmem:[%s998_s0 + $0x18] sm:$0xff]  }
   0x7   :  { %721 = vmatpush3.bf16.msra.mxu0 %v767_v1  ;;  %759 = vmatpush3.bf16.msra.mxu1 %v767_v1  ;;  %v781_v17 = vld [vmem:[%s998_s0 + $0x38] sm:$0xff]   ;;  %v560_v18 = vld [vmem:[%s1002_s4 + $0x54] sm:$0xf]  ;;  %v550_v20 = vld [vmem:[%s1002_s4 + $0x4] sm:$0xf] }
   0x8   :  { %722 = vmatprep.subr.bf16.mxu0 %v768_v2  ;;  %752 = vmatprep.subr.bf16.mxu1 %v768_v2  ;;  %v561_v19 = vld [vmem:[%s1002_s4 + $0x5c] sm:$0xf]  ;;  %59 = vst [vmem:[#allocation2 + $0x28] sm:$0xf] %v560_v18  ;;  %v551_v21 = vld [vmem:[%s1002_s4 + $0xc] sm:$0xf] }
   0x9   :  { %61 = vst [vmem:[#allocation2 + $0x2c] sm:$0xf] %v561_v19  ;;  %v558_v22 = vld [vmem:[%s1002_s4 + $0x44] sm:$0xf]  ;;  %39 = vst [vmem:[#allocation2] sm:$0xf] %v550_v20 }
   0xa   :  { %41 = vst [vmem:[#allocation2 + $0x4] sm:$0xf] %v551_v21  ;;  %55 = vst [vmem:[#allocation2 + $0x20] sm:$0xf] %v558_v22  ;;  %v559_v23 = vld [vmem:[%s1002_s4 + $0x4c] sm:$0xf] }
   0xb   :  { %723 = vmatpush3.bf16.msra.mxu0 %v768_v2  ;;  %760 = vmatpush3.bf16.msra.mxu1 %v768_v2  ;;  %57 = vst [vmem:[#allocation2 + $0x24] sm:$0xf] %v559_v23  ;;  %v556_v24 = vld [vmem:[%s1002_s4 + $0x34] sm:$0xf]  ;;  %v557_v25 = vld [vmem:[%s1002_s4 + $0x3c] sm:$0xf] }
   0xc   :  { %724 = vmatprep.subr.bf16.mxu0 %v769_v3  ;;  %753 = vmatprep.subr.bf16.mxu1 %v769_v3  ;;  %51 = vst [vmem:[#allocation2 + $0x18] sm:$0xf] %v556_v24  ;;  %v564_v26 = vld [vmem:[%s1002_s4 + $0x74] sm:$0xf]  ;;  %53 = vst [vmem:[#allocation2 + $0x1c] sm:$0xf] %v557_v25 }
   0xd   :  { %67 = vst [vmem:[#allocation2 + $0x38] sm:$0xf] %v564_v26  ;;  %v565_v27 = vld [vmem:[%s1002_s4 + $0x7c] sm:$0xf]  ;;  %v554_v28 = vld [vmem:[%s1002_s4 + $0x24] sm:$0xf] }
   0xe   :  { %69 = vst [vmem:[#allocation2 + $0x3c] sm:$0xf] %v565_v27  ;;  %47 = vst [vmem:[#allocation2 + $0x10] sm:$0xf] %v554_v28  ;;  %v555_v29 = vld [vmem:[%s1002_s4 + $0x2c] sm:$0xf] }
   0xf   :  { %725 = vmatpush3.bf16.msra.mxu0 %v769_v3  ;;  %761 = vmatpush3.bf16.msra.mxu1 %v769_v3  ;;  %v562_v30 = vld [vmem:[%s1002_s4 + $0x64] sm:$0xf]  ;;  %v563_v31 = vld [vmem:[%s1002_s4 + $0x6c] sm:$0xf]  ;;  %49 = vst [vmem:[#allocation2 + $0x14] sm:$0xf] %v555_v29 }
  0x10   :  { %726 = vmatprep.subr.bf16.mxu0 %v770_v6  ;;  %754 = vmatprep.subr.bf16.mxu1 %v770_v6  ;;  %63 = vst [vmem:[#allocation2 + $0x30] sm:$0xf] %v562_v30  ;;  %65 = vst [vmem:[#allocation2 + $0x34] sm:$0xf] %v563_v31  ;;  %v688_v32 = vld [vmem:[#allocation2 + $0x8] sm:$0xff]  }
  0x11   :  { %v692_v33 = vld [vmem:[#allocation2 + $0x28] sm:$0xff]   ;;  %v617_v34 = vld [vmem:[#allocation2] sm:$0xff]   ;;  %v622_v39 = vunpack.c.l.bf16 %v688_v32  ;;  %v623_v48 = vunpack.c.h.bf16 %v688_v32 }
  0x12   :  { %v691_v35 = vld [vmem:[#allocation2 + $0x20] sm:$0xff]   ;;  %v638_v40 = vunpack.c.l.bf16 %v692_v33  ;;  %v618_v41 = vunpack.c.l.bf16 %v617_v34  ;;  %v639_v49 = vunpack.c.h.bf16 %v692_v33  ;;  %v619_v50 = vunpack.c.h.bf16 %v617_v34 }
  0x13   :  { %727 = vmatpush3.bf16.msra.mxu0 %v770_v6  ;;  %762 = vmatpush3.bf16.msra.mxu1 %v770_v6  ;;  %v911_v36 = vld [vmem:[%s1000_s2] ss:$0 sm:$0xff]  ;;  %v913_v37 = vld [vmem:[#allocation2 + $0x18] sm:$0xff]   ;;  %v634_v42 = vunpack.c.l.bf16 %v691_v35  ;;  %v635_v51 = vunpack.c.h.bf16 %v691_v35 }
  0x14   :  { %728 = vmatprep.subr.bf16.mxu0 %v771_v7  ;;  %755 = vmatprep.subr.bf16.mxu1 %v771_v7  ;;  %v924_v46 = vld [vmem:[%s1001_s3] ss:$0 sm:$0xff]  ;;  %v630_v56 = vunpack.c.l.bf16 %v913_v37 }
  0x15   :  { %v915_v38 = vld [vmem:[#allocation2 + $0x38] sm:$0xff]  }
  0x16   :  { %v917_v43 = vld [vmem:[#allocation2 + $0x10] sm:$0xff]   ;;  %v646_v57 = vunpack.c.l.bf16 %v915_v38 }
  0x17   :  { %729 = vmatpush3.bf16.msra.mxu0 %v771_v7  ;;  %763 = vmatpush3.bf16.msra.mxu1 %v771_v7  ;;  %v919_v44 = vld [vmem:[#allocation2 + $0x30] sm:$0xff]   ;;  %v626_v62 = vunpack.c.l.bf16 %v917_v43 }
  0x18   :  { %730 = vmatprep.subr.bf16.mxu0 %v772_v10  ;;  %756 = vmatprep.subr.bf16.mxu1 %v772_v10  ;;  %v642_v63 = vunpack.c.l.bf16 %v919_v44 }
  0x1b   :  { %731 = vmatpush3.bf16.msra.mxu0 %v772_v10  ;;  %764 = vmatpush3.bf16.msra.mxu1 %v772_v10 }
  0x1c   :  { %732 = vmatprep.subr.bf16.mxu0 %v773_v11  ;;  %757 = vmatprep.subr.bf16.mxu1 %v773_v11 }
  0x1f   :  { %733 = vmatpush3.bf16.msra.mxu0 %v773_v11  ;;  %765 = vmatpush3.bf16.msra.mxu1 %v773_v11 }
  0x22   :  { %735 = vmatmul.mubr.bf16.vlgmr.msra.gmra.mrb[0].mxu0 %v776_v12  ;;  %743 = vmatmul.mubr.bf16.vlgmr.msra.gmra.mrb[0].mxu1 %v777_v13 }
  0x23   :  { %738 = vmatprep.mubr.bf16.mxu0 %v778_v14  ;;  %746 = vmatprep.mubr.bf16.mxu1 %v779_v15 }
  0x2a   :  { %739 = vmatmul.mubr.bf16.gmra.mrb[4].mxu0 %v780_v16  ;;  %747 = vmatmul.mubr.bf16.gmra.mrb[4].mxu1 %v781_v17 }
  0xf5   :  { %v736_v45 = vpop.f32.mrb[0].mxu0  ;;  %v744_v47 = vpop.f32.mrb[0].mxu1 }
  0xf6   :  { %v360_v52 = vmul.f32 %v736_v45, %v911_v36  ;;  %v368_v53 = vmul.f32 %v744_v47, %v911_v36  ;;  %v288_v54 = vpop.f32.mrb[1].mxu0  ;;  %v320_v55 = vpop.f32.mrb[1].mxu1 }
  0xf7   :  { %v358_v58 = vmul.f32 %v911_v36, %v288_v54  ;;  %v366_v59 = vmul.f32 %v911_v36, %v320_v55  ;;  %v737_v60 = vpop.f32.mrb[2].mxu0  ;;  %v745_v61 = vpop.f32.mrb[2].mxu1 }
  0xf8   :  { %v383_v0 = vadd.f32 %v924_v46, %v360_v52  ;;  %v391_v1 = vadd.f32 %v924_v46, %v368_v53  ;;  %v361_v2 = vmul.f32 %v737_v60, %v911_v36  ;;  %v369_v3 = vmul.f32 %v745_v61, %v911_v36  ;;  %v291_v4 = vpop.f32.mrb[3].mxu0  ;;  %v323_v5 = vpop.f32.mrb[3].mxu1 }
  0xf9   :  { %v381_v6 = vadd.f32 %v924_v46, %v358_v58  ;;  %v389_v7 = vadd.f32 %v924_v46, %v366_v59  ;;  %v359_v8 = vmul.f32 %v911_v36, %v291_v4  ;;  %v367_v9 = vmul.f32 %v911_v36, %v323_v5 }
  0xfa   :  { %v431_v10 = vadd.f32 %v622_v39, %v383_v0  ;;  %v439_v11 = vadd.f32 %v638_v40, %v391_v1  ;;  %v384_v12 = vadd.f32 %v924_v46, %v361_v2  ;;  %v392_v13 = vadd.f32 %v924_v46, %v369_v3 }
  0xfb   :  { %v429_v14 = vadd.f32 %v618_v41, %v381_v6  ;;  %v437_v15 = vadd.f32 %v634_v42, %v389_v7  ;;  %v382_v16 = vadd.f32 %v924_v46, %v359_v8  ;;  %v390_v17 = vadd.f32 %v924_v46, %v367_v9 }
  0xfc   :  { %v447_v18 = vmax.f32 %v431_v10, 0.0  ;;  %v455_v19 = vmax.f32 %v439_v11, 0.0  ;;  %v432_v20 = vadd.f32 %v623_v48, %v384_v12  ;;  %v440_v21 = vadd.f32 %v639_v49, %v392_v13 }
  0xfd   :  { %v445_v22 = vmax.f32 %v429_v14, 0.0  ;;  %v453_v23 = vmax.f32 %v437_v15, 0.0  ;;  %v430_v24 = vadd.f32 %v619_v50, %v382_v16  ;;  %v438_v25 = vadd.f32 %v635_v51, %v390_v17  ;;  %v740_v26 = vpop.f32.mrb[4].mxu0  ;;  %v748_v27 = vpop.f32.mrb[4].mxu1 }
  0xfe   :  { %v448_v28 = vmax.f32 %v432_v20, 0.0  ;;  %v456_v29 = vmax.f32 %v440_v21, 0.0  ;;  %v364_v30 = vmul.f32 %v740_v26, %v911_v36  ;;  %v372_v31 = vmul.f32 %v748_v27, %v911_v36  ;;  %v304_v32 = vpop.f32.mrb[5].mxu0  ;;  %v336_v33 = vpop.f32.mrb[5].mxu1 }
  0xff   :  { %v446_v34 = vmax.f32 %v430_v24, 0.0  ;;  %v454_v35 = vmax.f32 %v438_v25, 0.0  ;;  %v362_v39 = vmul.f32 %v911_v36, %v304_v32  ;;  %v370_v40 = vmul.f32 %v911_v36, %v336_v33  ;;  %v741_v41 = vpop.f32.mrb[6].mxu0  ;;  %v749_v42 = vpop.f32.mrb[6].mxu1 }
 0x100   :  { %v656_v45 = vpack.c.bf16 %v448_v28, %v447_v18  ;;  %v676_v47 = vpack.c.bf16 %v456_v29, %v455_v19  ;;  %v387_v48 = vadd.f32 %v924_v46, %v364_v30  ;;  %v395_v49 = vadd.f32 %v924_v46, %v372_v31  ;;  %v307_v50 = vpop.f32.mrb[7].mxu0  ;;  %v339_v51 = vpop.f32.mrb[7].mxu1 }
 0x101   :  { %v651_v52 = vpack.c.bf16 %v446_v34, %v445_v22  ;;  %v671_v53 = vpack.c.bf16 %v454_v35, %v453_v23  ;;  %v385_v54 = vadd.f32 %v924_v46, %v362_v39  ;;  %v393_v55 = vadd.f32 %v924_v46, %v370_v40 }
 0x102   :  { %695 = vst [vmem:[%s1003_s5 + $0x8] sm:$0xff] %v656_v45   ;;  %699 = vst [vmem:[%s1003_s5 + $0x28] sm:$0xff] %v676_v47   ;;  %v365_v58 = vmul.f32 %v741_v41, %v911_v36  ;;  %v631_v59 = vunpack.c.h.bf16 %v913_v37  ;;  %v373_v60 = vmul.f32 %v749_v42, %v911_v36  ;;  %v647_v61 = vunpack.c.h.bf16 %v915_v38 }
 0x103   :  { %652 = vst [vmem:[%s1003_s5] sm:$0xff] %v651_v52   ;;  %698 = vst [vmem:[%s1003_s5 + $0x20] sm:$0xff] %v671_v53   ;;  %v363_v0 = vmul.f32 %v911_v36, %v307_v50  ;;  %v627_v1 = vunpack.c.h.bf16 %v917_v43  ;;  %v371_v2 = vmul.f32 %v911_v36, %v339_v51  ;;  %v643_v3 = vunpack.c.h.bf16 %v919_v44 }
 0x104   :  { %v435_v4 = vadd.f32 %v630_v56, %v387_v48  ;;  %v443_v5 = vadd.f32 %v646_v57, %v395_v49  ;;  %v388_v6 = vadd.f32 %v924_v46, %v365_v58  ;;  %v396_v7 = vadd.f32 %v924_v46, %v373_v60 }
 0x105   :  { %v433_v8 = vadd.f32 %v626_v62, %v385_v54  ;;  %v441_v9 = vadd.f32 %v642_v63, %v393_v55  ;;  %v386_v36 = vadd.f32 %v924_v46, %v363_v0  ;;  %v394_v10 = vadd.f32 %v924_v46, %v371_v2 }
 0x106   :  { %v436_v11 = vadd.f32 %v631_v59, %v388_v6  ;;  %v444_v37 = vadd.f32 %v647_v61, %v396_v7  ;;  %v451_v38 = vmax.f32 %v435_v4, 0.0  ;;  %v459_v57 = vmax.f32 %v443_v5, 0.0 }
 0x107   :  { %v434_v56 = vadd.f32 %v627_v1, %v386_v36  ;;  %v442_v12 = vadd.f32 %v643_v3, %v394_v10  ;;  %v449_v15 = vmax.f32 %v433_v8, 0.0  ;;  %v457_v16 = vmax.f32 %v441_v9, 0.0 }
 0x108   :  { %v452_v13 = vmax.f32 %v436_v11, 0.0  ;;  %v460_v14 = vmax.f32 %v444_v37, 0.0 }
 0x109   :  { %v450_v17 = vmax.f32 %v434_v56, 0.0  ;;  %v458_v43 = vmax.f32 %v442_v12, 0.0 }
 0x10a   :  { %v666_v62 = vpack.c.bf16 %v452_v13, %v451_v38  ;;  %v686_v18 = vpack.c.bf16 %v460_v14, %v459_v57 }
 0x10b   :  { %v661_v44 = vpack.c.bf16 %v450_v17, %v449_v15  ;;  %v681_v63 = vpack.c.bf16 %v458_v43, %v457_v16 }
 0x10c   :  { %697 = vst [vmem:[%s1003_s5 + $0x18] sm:$0xff] %v666_v62   ;;  %701 = vst [vmem:[%s1003_s5 + $0x38] sm:$0xff] %v686_v18  }
 0x10d   :  { %696 = vst [vmem:[%s1003_s5 + $0x10] sm:$0xff] %v661_v44   ;;  %700 = vst [vmem:[%s1003_s5 + $0x30] sm:$0xff] %v681_v63  }

// kernel: encoder_cnn_forward.12
= control target key start
LH: loop header
LB: loop body
LE: loop exit
PB: predicated region body
PF: predicated region fallthrough
CT: control target
= control target key end

     0   :  { %s5521_s1 = inlined_call_operand.vmem [shape: bf16[2304,128], index: 1, kind: input, shape index: {}]   ;;  %s5522_s0 = inlined_call_operand.vmem [shape: bf16[128,2304], index: 0, kind: input, shape index: {}]   ;;  %s5523_s2 = inlined_call_operand.vmem [shape: f32[1,128], index: 2, kind: input, shape index: {}]   ;;  %s5524_s3 = inlined_call_operand.vmem [shape: f32[1,128], index: 3, kind: input, shape index: {}]   ;;  %s5525_s4 = inlined_call_operand.vmem [shape: bf16[128,128], index: 4, kind: output, shape index: {}]  }
   0x1   :  { %v4014_v0 = vld [vmem:[%s5521_s1 + $0x40] sm:$0xff]   ;;  %v4016_v2 = vld [vmem:[%s5521_s1 + $0x48] sm:$0xff]   ;;  %v4018_v4 = vld [vmem:[%s5521_s1 + $0x50] sm:$0xff]  }
   0x2   :  { %v4015_v1 = vld [vmem:[%s5521_s1] sm:$0xff]   ;;  %3422 = vmatprep.subr.bf16.mxu0 %v4014_v0  ;;  %3998 = vmatprep.subr.bf16.mxu1 %v4014_v0  ;;  %v4017_v3 = vld [vmem:[%s5521_s1 + $0x8] sm:$0xff]   ;;  %v4019_v5 = vld [vmem:[%s5521_s1 + $0x10] sm:$0xff]  }
   0x3   :  { %3423 = vmatpush3.bf16.msra.mxu0 %v4015_v1  ;;  %4006 = vmatpush3.bf16.msra.mxu1 %v4015_v1  ;;  %v4020_v6 = vld [vmem:[%s5521_s1 + $0x58] sm:$0xff]   ;;  %v4022_v8 = vld [vmem:[%s5521_s1 + $0x60] sm:$0xff]   ;;  %v4024_v10 = vld [vmem:[%s5521_s1 + $0x68] sm:$0xff]  }
   0x4   :  { %3424 = vmatprep.subr.bf16.mxu0 %v4016_v2  ;;  %3999 = vmatprep.subr.bf16.mxu1 %v4016_v2  ;;  %v4021_v7 = vld [vmem:[%s5521_s1 + $0x18] sm:$0xff]   ;;  %v4023_v9 = vld [vmem:[%s5521_s1 + $0x20] sm:$0xff]   ;;  %v4025_v13 = vld [vmem:[%s5521_s1 + $0x28] sm:$0xff]  }
   0x5   :  { %v4032_v11 = vld [vmem:[%s5522_s0 + $0x4] ss:$72 sps:$4 sm:$0xff]   ;;  %v4026_v14 = vld [vmem:[%s5521_s1 + $0x70] sm:$0xff]   ;;  %v4028_v16 = vld [vmem:[%s5521_s1 + $0x78] sm:$0xff]  }
   0x6   :  { %v4035_v12 = vld [vmem:[%s5522_s0 + $0x244] ss:$72 sps:$4 sm:$0xff]   ;;  %2066 = vmatprep.mubr.bf16.mxu0 %v4032_v11  ;;  %v4027_v15 = vld [vmem:[%s5521_s1 + $0x30] sm:$0xff]   ;;  %v4029_v17 = vld [vmem:[%s5521_s1 + $0x38] sm:$0xff]  }
   0x7   :  { %3425 = vmatpush3.bf16.msra.mxu0 %v4017_v3  ;;  %4007 = vmatpush3.bf16.msra.mxu1 %v4017_v3  ;;  %v4030_v18 = vld [vmem:[%s5522_s0] ss:$72 sps:$4 sm:$0xff]   ;;  %v4044_v26 = vld [vmem:[%s5522_s0 + $0x94] ss:$72 sps:$4 sm:$0xff]   ;;  %v4048_v31 = vld [vmem:[%s5522_s0 + $0x90] ss:$72 sps:$4 sm:$0xff]  }
   0x8   :  { %3426 = vmatprep.subr.bf16.mxu0 %v4018_v4  ;;  %4000 = vmatprep.subr.bf16.mxu1 %v4018_v4  ;;  %v4033_v19 = vld [vmem:[%s5522_s0 + $0x240] ss:$72 sps:$4 sm:$0xff]   ;;  %v4046_v28 = vld [vmem:[%s5522_s0 + $0x2d4] ss:$72 sps:$4 sm:$0xff]   ;;  %v4049_v33 = vld [vmem:[%s5522_s0 + $0x2d0] ss:$72 sps:$4 sm:$0xff]  }
   0x9   :  { %2098 = vmatprep.mubr.bf16.mxu1 %v4035_v12  ;;  %v4036_v20 = vld [vmem:[%s5521_s1 + $0xc0] sm:$0xff]   ;;  %v4040_v24 = vld [vmem:[%s5521_s1 + $0xc8] sm:$0xff]   ;;  %v4050_v30 = vld [vmem:[%s5521_s1 + $0xd0] sm:$0xff]  }
   0xa   :  { %v4037_v21 = vld [vmem:[%s5521_s1 + $0x140] sm:$0xff]   ;;  %v4041_v25 = vld [vmem:[%s5521_s1 + $0x148] sm:$0xff]   ;;  %v4051_v32 = vld [vmem:[%s5521_s1 + $0x150] sm:$0xff]  }
   0xb   :  { %3427 = vmatpush3.bf16.msra.mxu0 %v4019_v5  ;;  %4008 = vmatpush3.bf16.msra.mxu1 %v4019_v5  ;;  %v4038_v22 = vld [vmem:[%s5521_s1 + $0x80] sm:$0xff]   ;;  %v4042_v27 = vld [vmem:[%s5521_s1 + $0x88] sm:$0xff]   ;;  %v4052_v34 = vld [vmem:[%s5521_s1 + $0x90] sm:$0xff]  }
   0xc   :  { %3428 = vmatprep.subr.bf16.mxu0 %v4020_v6  ;;  %4001 = vmatprep.subr.bf16.mxu1 %v4020_v6  ;;  %v4039_v23 = vld [vmem:[%s5521_s1 + $0x100] sm:$0xff]   ;;  %v4043_v29 = vld [vmem:[%s5521_s1 + $0x108] sm:$0xff]   ;;  %v4053_v35 = vld [vmem:[%s5521_s1 + $0x110] sm:$0xff]  }
   0xd   :  { %v4054_v36 = vld [vmem:[%s5521_s1 + $0xd8] sm:$0xff]   ;;  %v4058_v38 = vld [vmem:[%s5522_s0 + $0x124] ss:$72 sps:$4 sm:$0xff]   ;;  %v4062_v43 = vld [vmem:[%s5522_s0 + $0x120] ss:$72 sps:$4 sm:$0xff]  }
   0xe   :  { %v4055_v37 = vld [vmem:[%s5521_s1 + $0x158] sm:$0xff]   ;;  %v4060_v40 = vld [vmem:[%s5522_s0 + $0x364] ss:$72 sps:$4 sm:$0xff]   ;;  %v4063_v44 = vld [vmem:[%s5522_s0 + $0x360] ss:$72 sps:$4 sm:$0xff]  }
   0xf   :  { %3429 = vmatpush3.bf16.msra.mxu0 %v4021_v7  ;;  %4009 = vmatpush3.bf16.msra.mxu1 %v4021_v7  ;;  %v4056_v39 = vld [vmem:[%s5521_s1 + $0x98] sm:$0xff]   ;;  %v4064_v42 = vld [vmem:[%s5521_s1 + $0xe0] sm:$0xff]   ;;  %v4068_v48 = vld [vmem:[%s5521_s1 + $0xe8] sm:$0xff]  }
  0x10   :  { %3430 = vmatprep.subr.bf16.mxu0 %v4022_v8  ;;  %4002 = vmatprep.subr.bf16.mxu1 %v4022_v8  ;;  %v4057_v41 = vld [vmem:[%s5521_s1 + $0x118] sm:$0xff]   ;;  %v4065_v45 = vld [vmem:[%s5521_s1 + $0x160] sm:$0xff]   ;;  %v4069_v49 = vld [vmem:[%s5521_s1 + $0x168] sm:$0xff]  }
  0x11   :  { %v4066_v46 = vld [vmem:[%s5521_s1 + $0xa0] sm:$0xff]   ;;  %v4072_v50 = vld [vmem:[%s5522_s0 + $0x1b4] ss:$72 sps:$4 sm:$0xff]   ;;  %v4070_v52 = vld [vmem:[%s5521_s1 + $0xa8] sm:$0xff]  }
  0x12   :  { %v4067_v47 = vld [vmem:[%s5521_s1 + $0x120] sm:$0xff]   ;;  %v4074_v51 = vld [vmem:[%s5522_s0 + $0x3f4] ss:$72 sps:$4 sm:$0xff]   ;;  %v4071_v53 = vld [vmem:[%s5521_s1 + $0x128] sm:$0xff]  }
  0x13   :  { %3431 = vmatpush3.bf16.msra.mxu0 %v4023_v9  ;;  %4010 = vmatpush3.bf16.msra.mxu1 %v4023_v9  ;;  %v4078_v54 = vld [vmem:[%s5521_s1 + $0xf0] sm:$0xff]   ;;  %v4082_v60 = vld [vmem:[%s5521_s1 + $0xf8] sm:$0xff]   ;;  %v4092_v4 = vld [vmem:[%s5521_s1 + $0x1c0] sm:$0xff]  }
  0x14   :  { %3432 = vmatprep.subr.bf16.mxu0 %v4024_v10  ;;  %4003 = vmatprep.subr.bf16.mxu1 %v4024_v10  ;;  %v4076_v55 = vld [vmem:[%s5522_s0 + $0x1b0] ss:$72 sps:$4 sm:$0xff]   ;;  %v4088_v0 = vld [vmem:[%s5522_s0 + $0xc] ss:$72 sps:$4 sm:$0xff]   ;;  %v4093_v5 = vld [vmem:[%s5521_s1 + $0x180] sm:$0xff]  }
  0x15   :  { %v4077_v56 = vld [vmem:[%s5522_s0 + $0x3f0] ss:$72 sps:$4 sm:$0xff]   ;;  %v4091_v3 = vld [vmem:[%s5522_s0 + $0x14] ss:$72 sps:$4 sm:$0xff]   ;;  %v4094_v6 = vld [vmem:[%s5521_s1 + $0x240] sm:$0xff]  }
  0x16   :  { %v4079_v57 = vld [vmem:[%s5521_s1 + $0x170] sm:$0xff]   ;;  %v4083_v61 = vld [vmem:[%s5521_s1 + $0x178] sm:$0xff]   ;;  %v4095_v7 = vld [vmem:[%s5521_s1 + $0x200] sm:$0xff]  }
  0x17   :  { %3433 = vmatpush3.bf16.msra.mxu0 %v4025_v13  ;;  %4011 = vmatpush3.bf16.msra.mxu1 %v4025_v13  ;;  %v4080_v58 = vld [vmem:[%s5521_s1 + $0xb0] sm:$0xff]   ;;  %v4084_v62 = vld [vmem:[%s5521_s1 + $0xb8] sm:$0xff]   ;;  %v4098_v9 = vld [vmem:[%s5522_s0 + $0xa4] ss:$72 sps:$4 sm:$0xff]  }
  0x18   :  { %3434 = vmatprep.subr.bf16.mxu0 %v4026_v14  ;;  %4004 = vmatprep.subr.bf16.mxu1 %v4026_v14  ;;  %v4081_v59 = vld [vmem:[%s5521_s1 + $0x130] sm:$0xff]   ;;  %v4085_v63 = vld [vmem:[%s5521_s1 + $0x138] sm:$0xff]   ;;  %v4101_v11 = vld [vmem:[%s5522_s0 + $0xa0] ss:$72 sps:$4 sm:$0xff]  }
  0x19   :  { %v4086_v1 = vld [vmem:[%s5522_s0 + $0x8] ss:$72 sps:$4 sm:$0xff]   ;;  %v4096_v8 = vld [vmem:[%s5522_s0 + $0x9c] ss:$72 sps:$4 sm:$0xff]   ;;  %v4100_v10 = vld [vmem:[%s5522_s0 + $0x98] ss:$72 sps:$4 sm:$0xff]  }
  0x1a   :  { %v4089_v2 = vld [vmem:[%s5522_s0 + $0x10] ss:$72 sps:$4 sm:$0xff]   ;;  %v4102_v12 = vld [vmem:[%s5521_s1 + $0x1c8] sm:$0xff]  }
  0x1b   :  { %3435 = vmatpush3.bf16.msra.mxu0 %v4027_v15  ;;  %4012 = vmatpush3.bf16.msra.mxu1 %v4027_v15  ;;  %v4103_v13 = vld [vmem:[%s5521_s1 + $0x188] sm:$0xff]  }
  0x1c   :  { %3436 = vmatprep.subr.bf16.mxu0 %v4028_v16  ;;  %4005 = vmatprep.subr.bf16.mxu1 %v4028_v16  ;;  %v4104_v14 = vld [vmem:[%s5521_s1 + $0x248] sm:$0xff]  }
  0x1d   :  { %v4105_v15 = vld [vmem:[%s5521_s1 + $0x208] sm:$0xff]  }
  0x1e   :  { %v4106_v16 = vld [vmem:[%s5522_s0 + $0x12c] ss:$72 sps:$4 sm:$0xff]  }
  0x1f   :  { %3437 = vmatpush3.bf16.msra.mxu0 %v4029_v17  ;;  %4013 = vmatpush3.bf16.msra.mxu1 %v4029_v17  ;;  %v4108_v17 = vld [vmem:[%s5522_s0 + $0x134] ss:$72 sps:$4 sm:$0xff]  }
  0x20   :  { %3486 = vmatprep.subr.bf16.mxu1 %v4036_v20  ;;  %3550 = vmatprep.subr.bf16.mxu0 %v4037_v21  ;;  %v4111_v20 = vld [vmem:[%s5522_s0 + $0x130] ss:$72 sps:$4 sm:$0xff]  }
  0x21   :  { %v4113_v21 = vld [vmem:[%s5521_s1 + $0x190] sm:$0xff]  }
  0x22   :  { %2067 = vmatmul.mubr.bf16.vlgmr.msra.gmra.mrb[0].mxu0 %v4030_v18  ;;  %2099 = vmatmul.mubr.bf16.vlgmr.msra.gmra.mrb[0].mxu1 %v4033_v19  ;;  %v4112_v18 = vld [vmem:[%s5521_s1 + $0x1d0] sm:$0xff]  }
  0x23   :  { %3487 = vmatpush3.bf16.msra.mxu1 %v4038_v22  ;;  %3551 = vmatpush3.bf16.msra.mxu0 %v4039_v23  ;;  %v4110_v19 = vld [vmem:[%s5522_s0 + $0x128] ss:$72 sps:$4 sm:$0xff]  }
  0x24   :  { %3488 = vmatprep.subr.bf16.mxu1 %v4040_v24  ;;  %3552 = vmatprep.subr.bf16.mxu0 %v4041_v25  ;;  %v4114_v22 = vld [vmem:[%s5521_s1 + $0x250] sm:$0xff]   ;;  %v4116_v24 = vld [vmem:[%s5522_s0 + $0x1bc] ss:$72 sps:$4 sm:$0xff]  }
  0x25   :  { %2074 = vmatprep.mubr.bf16.mxu0 %v4044_v26  ;;  %2106 = vmatprep.mubr.bf16.mxu1 %v4046_v28  ;;  %v4115_v23 = vld [vmem:[%s5521_s1 + $0x210] sm:$0xff]   ;;  %v4118_v25 = vld [vmem:[%s5522_s0 + $0x1c4] ss:$72 sps:$4 sm:$0xff]   ;;  %v4122_v26 = vld [vmem:[%s5521_s1 + $0x1d8] sm:$0xff]  }
  0x26   :  { %v4120_v28 = vld [vmem:[%s5522_s0 + $0x1b8] ss:$72 sps:$4 sm:$0xff]  }
  0x27   :  { %3489 = vmatpush3.bf16.msra.mxu1 %v4042_v27  ;;  %3553 = vmatpush3.bf16.msra.mxu0 %v4043_v29  ;;  %v4123_v27 = vld [vmem:[%s5521_s1 + $0x198] sm:$0xff]  }
  0x28   :  { %3490 = vmatprep.subr.bf16.mxu1 %v4050_v30  ;;  %3554 = vmatprep.subr.bf16.mxu0 %v4051_v32  ;;  %v4124_v29 = vld [vmem:[%s5521_s1 + $0x258] sm:$0xff]   ;;  %v4126_v32 = vld [vmem:[%s5522_s0 + $0x24c] ss:$72 sps:$4 sm:$0xff]  }
  0x29   :  { %v4125_v30 = vld [vmem:[%s5521_s1 + $0x218] sm:$0xff]  }
  0x2a   :  { %2075 = vmatmul.mubr.bf16.gmra.mrb[4].mxu0 %v4048_v31  ;;  %2107 = vmatmul.mubr.bf16.gmra.mrb[4].mxu1 %v4049_v33  ;;  %v4121_v31 = vld [vmem:[%s5522_s0 + $0x1c0] ss:$72 sps:$4 sm:$0xff]   ;;  %v4128_v33 = vld [vmem:[%s5522_s0 + $0x254] ss:$72 sps:$4 sm:$0xff]  }
  0x2b   :  { %3491 = vmatpush3.bf16.msra.mxu1 %v4052_v34  ;;  %3555 = vmatpush3.bf16.msra.mxu0 %v4053_v35  ;;  %v4132_v34 = vld [vmem:[%s5521_s1 + $0x1e0] sm:$0xff]  }
  0x2c   :  { %3492 = vmatprep.subr.bf16.mxu1 %v4054_v36  ;;  %3556 = vmatprep.subr.bf16.mxu0 %v4055_v37  ;;  %v4133_v35 = vld [vmem:[%s5521_s1 + $0x1a0] sm:$0xff]  }
  0x2d   :  { %2082 = vmatprep.mubr.bf16.mxu0 %v4058_v38  ;;  %2114 = vmatprep.mubr.bf16.mxu1 %v4060_v40  ;;  %v4134_v36 = vld [vmem:[%s5521_s1 + $0x260] sm:$0xff]   ;;  %v4130_v38 = vld [vmem:[%s5522_s0 + $0x248] ss:$72 sps:$4 sm:$0xff]  }
  0x2e   :  { %v4135_v37 = vld [vmem:[%s5521_s1 + $0x220] sm:$0xff]  }
  0x2f   :  { %3493 = vmatpush3.bf16.msra.mxu1 %v4056_v39  ;;  %3557 = vmatpush3.bf16.msra.mxu0 %v4057_v41  ;;  %v4131_v39 = vld [vmem:[%s5522_s0 + $0x250] ss:$72 sps:$4 sm:$0xff]   ;;  %v4136_v40 = vld [vmem:[%s5522_s0 + $0x2dc] ss:$72 sps:$4 sm:$0xff]  }
  0x30   :  { %3494 = vmatprep.subr.bf16.mxu1 %v4064_v42  ;;  %3558 = vmatprep.subr.bf16.mxu0 %v4065_v45  ;;  %v4138_v41 = vld [vmem:[%s5522_s0 + $0x2e4] ss:$72 sps:$4 sm:$0xff]  }
  0x31   :  { %v4142_v42 = vld [vmem:[%s5521_s1 + $0x1e8] sm:$0xff]  }
  0x32   :  { %2083 = vmatmul.mubr.bf16.gmra.mrb[8].mxu0 %v4062_v43  ;;  %2115 = vmatmul.mubr.bf16.gmra.mrb[8].mxu1 %v4063_v44  ;;  %v4143_v43 = vld [vmem:[%s5521_s1 + $0x1a8] sm:$0xff]  }
  0x33   :  { %3495 = vmatpush3.bf16.msra.mxu1 %v4066_v46  ;;  %3559 = vmatpush3.bf16.msra.mxu0 %v4067_v47  ;;  %v4144_v44 = vld [vmem:[%s5521_s1 + $0x268] sm:$0xff]   ;;  %v4140_v46 = vld [vmem:[%s5522_s0 + $0x2d8] ss:$72 sps:$4 sm:$0xff]  }
  0x34   :  { %3496 = vmatprep.subr.bf16.mxu1 %v4068_v48  ;;  %3560 = vmatprep.subr.bf16.mxu0 %v4069_v49  ;;  %v4145_v45 = vld [vmem:[%s5521_s1 + $0x228] sm:$0xff]   ;;  %v4148_v49 = vld [vmem:[%s5522_s0 + $0x374] ss:$72 sps:$4 sm:$0xff]  }
  0x35   :  { %2090 = vmatprep.mubr.bf16.mxu0 %v4072_v50  ;;  %2122 = vmatprep.mubr.bf16.mxu1 %v4074_v51  ;;  %v4141_v47 = vld [vmem:[%s5522_s0 + $0x2e0] ss:$72 sps:$4 sm:$0xff]   ;;  %v4146_v48 = vld [vmem:[%s5522_s0 + $0x36c] ss:$72 sps:$4 sm:$0xff]  }
  0x36   :  { %v4152_v50 = vld [vmem:[%s5521_s1 + $0x1f0] sm:$0xff]  }
  0x37   :  { %3497 = vmatpush3.bf16.msra.mxu1 %v4070_v52  ;;  %3561 = vmatpush3.bf16.msra.mxu0 %v4071_v53  ;;  %v4153_v51 = vld [vmem:[%s5521_s1 + $0x1b0] sm:$0xff]  }
  0x38   :  { %3498 = vmatprep.subr.bf16.mxu1 %v4078_v54  ;;  %3562 = vmatprep.subr.bf16.mxu0 %v4079_v57  ;;  %v4154_v52 = vld [vmem:[%s5521_s1 + $0x270] sm:$0xff]   ;;  %v4156_v57 = vld [vmem:[%s5522_s0 + $0x3fc] ss:$72 sps:$4 sm:$0xff]  }
  0x39   :  { %v4155_v53 = vld [vmem:[%s5521_s1 + $0x230] sm:$0xff]  }
  0x3a   :  { %2091 = vmatmul.mubr.bf16.gmra.mrb[12].mxu0 %v4076_v55  ;;  %2123 = vmatmul.mubr.bf16.gmra.mrb[12].mxu1 %v4077_v56  ;;  %v4150_v54 = vld [vmem:[%s5522_s0 + $0x368] ss:$72 sps:$4 sm:$0xff]   ;;  %v4162_v56 = vld [vmem:[%s5521_s1 + $0x1f8] sm:$0xff]  }
  0x3b   :  { %3499 = vmatpush3.bf16.msra.mxu1 %v4080_v58  ;;  %3563 = vmatpush3.bf16.msra.mxu0 %v4081_v59  ;;  %v4151_v55 = vld [vmem:[%s5522_s0 + $0x370] ss:$72 sps:$4 sm:$0xff]   ;;  %v4158_v58 = vld [vmem:[%s5522_s0 + $0x404] ss:$72 sps:$4 sm:$0xff]  }
  0x3c   :  { %3500 = vmatprep.subr.bf16.mxu1 %v4082_v60  ;;  %3564 = vmatprep.subr.bf16.mxu0 %v4083_v61  ;;  %v4163_v59 = vld [vmem:[%s5521_s1 + $0x1b8] sm:$0xff]  }
  0x3d   :  { %2163 = vmatprep.mubr.bf16.mxu1 %v4088_v0  ;;  %2260 = vmatprep.mubr.bf16.mxu0 %v4091_v3  ;;  %v4164_v60 = vld [vmem:[%s5521_s1 + $0x278] sm:$0xff]   ;;  %v4161_v0 = vld [vmem:[%s5522_s0 + $0x400] ss:$72 sps:$4 sm:$0xff]   ;;  %v4171_v3 = vld [vmem:[%s5522_s0 + $0x24] ss:$72 sps:$4 sm:$0xff]  }
  0x3e   :  { %v4165_v61 = vld [vmem:[%s5521_s1 + $0x238] sm:$0xff]  }
  0x3f   :  { %3501 = vmatpush3.bf16.msra.mxu1 %v4084_v62  ;;  %3565 = vmatpush3.bf16.msra.mxu0 %v4085_v63  ;;  %v4172_v62 = vld [vmem:[%s5521_s1 + $0x2c0] sm:$0xff]  }
  0x40   :  { %3614 = vmatprep.subr.bf16.mxu1 %v4092_v4  ;;  %3678 = vmatprep.subr.bf16.mxu0 %v4094_v6  ;;  %v4160_v63 = vld [vmem:[%s5522_s0 + $0x3f8] ss:$72 sps:$4 sm:$0xff]  }
  0x41   :  { %v4166_v4 = vld [vmem:[%s5522_s0 + $0x18] ss:$72 sps:$4 sm:$0xff]  }
  0x42   :  { %2164 = vmatmul.mubr.bf16.vlgmr.msra.gmra.mrb[16].mxu1 %v4086_v1  ;;  %2261 = vmatmul.mubr.bf16.vlgmr.msra.gmra.mrb[16].mxu0 %v4089_v2  ;;  %v4174_v1 = vld [vmem:[%s5521_s1 + $0x340] sm:$0xff]  }
  0x43   :  { %3615 = vmatpush3.bf16.msra.mxu1 %v4093_v5  ;;  %3679 = vmatpush3.bf16.msra.mxu0 %v4095_v7  ;;  %v4168_v2 = vld [vmem:[%s5522_s0 + $0x1c] ss:$72 sps:$4 sm:$0xff]   ;;  %v4169_v5 = vld [vmem:[%s5522_s0 + $0x20] ss:$72 sps:$4 sm:$0xff]  }
  0x44   :  { %2171 = vmatprep.mubr.bf16.mxu1 %v4096_v8  ;;  %2268 = vmatprep.mubr.bf16.mxu0 %v4098_v9  ;;  %v4173_v6 = vld [vmem:[%s5521_s1 + $0x280] sm:$0xff]   ;;  %v4176_v8 = vld [vmem:[%s5522_s0 + $0xac] ss:$72 sps:$4 sm:$0xff]  }
  0x45   :  { %3616 = vmatprep.subr.bf16.mxu1 %v4102_v12  ;;  %3680 = vmatprep.subr.bf16.mxu0 %v4104_v14  ;;  %v4175_v7 = vld [vmem:[%s5521_s1 + $0x300] sm:$0xff]   ;;  %v4178_v9 = vld [vmem:[%s5522_s0 + $0xb4] ss:$72 sps:$4 sm:$0xff]   ;;  %v4184_v12 = vld [vmem:[%s5521_s1 + $0x348] sm:$0xff]  }
  0x46   :  { %v4192_v14 = vld [vmem:[%s5521_s1 + $0x2d0] sm:$0xff]  }
  0x47   :  { %3617 = vmatpush3.bf16.msra.mxu1 %v4103_v13  ;;  %3681 = vmatpush3.bf16.msra.mxu0 %v4105_v15  ;;  %v4185_v13 = vld [vmem:[%s5521_s1 + $0x308] sm:$0xff]  }
  0x48   :  { %3618 = vmatprep.subr.bf16.mxu1 %v4112_v18  ;;  %3682 = vmatprep.subr.bf16.mxu0 %v4114_v22  ;;  %v4180_v15 = vld [vmem:[%s5522_s0 + $0xa8] ss:$72 sps:$4 sm:$0xff]   ;;  %v4186_v18 = vld [vmem:[%s5522_s0 + $0x13c] ss:$72 sps:$4 sm:$0xff]  }
  0x49   :  { %v4202_v22 = vld [vmem:[%s5521_s1 + $0x2d8] sm:$0xff]  }
  0x4a   :  { %2172 = vmatmul.mubr.bf16.gmra.mrb[20].mxu1 %v4100_v10  ;;  %2269 = vmatmul.mubr.bf16.gmra.mrb[20].mxu0 %v4101_v11  ;;  %v4182_v10 = vld [vmem:[%s5521_s1 + $0x2c8] sm:$0xff]  }
  0x4b   :  { %2179 = vmatprep.mubr.bf16.mxu1 %v4106_v16  ;;  %2276 = vmatprep.mubr.bf16.mxu0 %v4108_v17  ;;  %v4183_v11 = vld [vmem:[%s5521_s1 + $0x288] sm:$0xff]   ;;  %v4181_v16 = vld [vmem:[%s5522_s0 + $0xb0] ss:$72 sps:$4 sm:$0xff]  }
  0x4c   :  { %3619 = vmatpush3.bf16.msra.mxu1 %v4113_v21  ;;  %3683 = vmatpush3.bf16.msra.mxu0 %v4115_v23  ;;  %v4194_v17 = vld [vmem:[%s5521_s1 + $0x350] sm:$0xff]   ;;  %v4204_v23 = vld [vmem:[%s5521_s1 + $0x358] sm:$0xff]  }
  0x4d   :  { %3620 = vmatprep.subr.bf16.mxu1 %v4122_v26  ;;  %3684 = vmatprep.subr.bf16.mxu0 %v4124_v29  ;;  %v4195_v21 = vld [vmem:[%s5521_s1 + $0x310] sm:$0xff]   ;;  %v4203_v26 = vld [vmem:[%s5521_s1 + $0x298] sm:$0xff]  }
  0x4e   :  { %v4198_v29 = vld [vmem:[%s5522_s0 + $0x1d4] ss:$72 sps:$4 sm:$0xff]  }
  0x50   :  { %3621 = vmatpush3.bf16.msra.mxu1 %v4123_v27  ;;  %3685 = vmatpush3.bf16.msra.mxu0 %v4125_v30  ;;  %v4205_v27 = vld [vmem:[%s5521_s1 + $0x318] sm:$0xff]   ;;  %v4212_v30 = vld [vmem:[%s5521_s1 + $0x2e0] sm:$0xff]  }
  0x51   :  { %3622 = vmatprep.subr.bf16.mxu1 %v4132_v34  ;;  %3686 = vmatprep.subr.bf16.mxu0 %v4134_v36  ;;  %v4200_v34 = vld [vmem:[%s5522_s0 + $0x1c8] ss:$72 sps:$4 sm:$0xff]  }
  0x52   :  { %2180 = vmatmul.mubr.bf16.gmra.mrb[24].mxu1 %v4110_v19  ;;  %2277 = vmatmul.mubr.bf16.gmra.mrb[24].mxu0 %v4111_v20  ;;  %v4188_v19 = vld [vmem:[%s5522_s0 + $0x144] ss:$72 sps:$4 sm:$0xff]   ;;  %v4193_v20 = vld [vmem:[%s5521_s1 + $0x290] sm:$0xff]  }
  0x53   :  { %2187 = vmatprep.mubr.bf16.mxu1 %v4116_v24  ;;  %2284 = vmatprep.mubr.bf16.mxu0 %v4118_v25  ;;  %v4190_v24 = vld [vmem:[%s5522_s0 + $0x138] ss:$72 sps:$4 sm:$0xff]   ;;  %v4222_v36 = vld [vmem:[%s5521_s1 + $0x2e8] sm:$0xff]  }
  0x54   :  { %3623 = vmatpush3.bf16.msra.mxu1 %v4133_v35  ;;  %3687 = vmatpush3.bf16.msra.mxu0 %v4135_v37  ;;  %v4191_v25 = vld [vmem:[%s5522_s0 + $0x140] ss:$72 sps:$4 sm:$0xff]   ;;  %v4201_v35 = vld [vmem:[%s5522_s0 + $0x1d0] ss:$72 sps:$4 sm:$0xff]   ;;  %v4206_v37 = vld [vmem:[%s5522_s0 + $0x25c] ss:$72 sps:$4 sm:$0xff]  }
  0x55   :  { %3624 = vmatprep.subr.bf16.mxu1 %v4142_v42  ;;  %3688 = vmatprep.subr.bf16.mxu0 %v4144_v44  ;;  %v4232_v42 = vld [vmem:[%s5521_s1 + $0x2f0] sm:$0xff]   ;;  %v4211_v44 = vld [vmem:[%s5522_s0 + $0x260] ss:$72 sps:$4 sm:$0xff]  }
  0x58   :  { %3625 = vmatpush3.bf16.msra.mxu1 %v4143_v43  ;;  %3689 = vmatpush3.bf16.msra.mxu0 %v4145_v45  ;;  %v4210_v43 = vld [vmem:[%s5522_s0 + $0x258] ss:$72 sps:$4 sm:$0xff]   ;;  %v4233_v45 = vld [vmem:[%s5521_s1 + $0x2b0] sm:$0xff]  }
  0x59   :  { %3626 = vmatprep.subr.bf16.mxu1 %v4152_v50  ;;  %3690 = vmatprep.subr.bf16.mxu0 %v4154_v52  ;;  %v4242_v50 = vld [vmem:[%s5521_s1 + $0x2f8] sm:$0xff]  }
  0x5a   :  { %2188 = vmatmul.mubr.bf16.gmra.mrb[28].mxu1 %v4120_v28  ;;  %2285 = vmatmul.mubr.bf16.gmra.mrb[28].mxu0 %v4121_v31  ;;  %v4196_v28 = vld [vmem:[%s5522_s0 + $0x1cc] ss:$72 sps:$4 sm:$0xff]   ;;  %v4213_v31 = vld [vmem:[%s5521_s1 + $0x2a0] sm:$0xff]   ;;  %v4244_v52 = vld [vmem:[%s5521_s1 + $0x378] sm:$0xff]  }
  0x5b   :  { %2195 = vmatprep.mubr.bf16.mxu1 %v4126_v32  ;;  %2292 = vmatprep.mubr.bf16.mxu0 %v4128_v33  ;;  %v4214_v32 = vld [vmem:[%s5521_s1 + $0x360] sm:$0xff]  }
  0x5c   :  { %3627 = vmatpush3.bf16.msra.mxu1 %v4153_v51  ;;  %3691 = vmatpush3.bf16.msra.mxu0 %v4155_v53  ;;  %v4215_v33 = vld [vmem:[%s5521_s1 + $0x320] sm:$0xff]   ;;  %v4243_v51 = vld [vmem:[%s5521_s1 + $0x2b8] sm:$0xff]  }
  0x5d   :  { %3628 = vmatprep.subr.bf16.mxu1 %v4162_v56  ;;  %3692 = vmatprep.subr.bf16.mxu0 %v4164_v60  ;;  %v4245_v53 = vld [vmem:[%s5521_s1 + $0x338] sm:$0xff]  }
  0x5e   :  { %v4226_v56 = vld [vmem:[%s5522_s0 + $0x37c] ss:$72 sps:$4 sm:$0xff]   ;;  %v4230_v60 = vld [vmem:[%s5522_s0 + $0x378] ss:$72 sps:$4 sm:$0xff]  }
  0x60   :  { %3629 = vmatpush3.bf16.msra.mxu1 %v4163_v59  ;;  %3693 = vmatpush3.bf16.msra.mxu0 %v4165_v61  ;;  %v4254_v59 = vld [vmem:[%s5521_s1 + $0x440] sm:$0xff]  }
  0x61   :  { %3742 = vmatprep.subr.bf16.mxu1 %v4172_v62  ;;  %3806 = vmatprep.subr.bf16.mxu0 %v4174_v1  ;;  %v4231_v61 = vld [vmem:[%s5522_s0 + $0x380] ss:$72 sps:$4 sm:$0xff]   ;;  %v4236_v62 = vld [vmem:[%s5522_s0 + $0x40c] ss:$72 sps:$4 sm:$0xff]   ;;  %v4241_v1 = vld [vmem:[%s5522_s0 + $0x410] ss:$72 sps:$4 sm:$0xff]  }
  0x62   :  { %2196 = vmatmul.mubr.bf16.gmra.mrb[32].mxu1 %v4130_v38  ;;  %2293 = vmatmul.mubr.bf16.gmra.mrb[32].mxu0 %v4131_v39  ;;  %v4208_v38 = vld [vmem:[%s5522_s0 + $0x264] ss:$72 sps:$4 sm:$0xff]  }
  0x63   :  { %2203 = vmatprep.mubr.bf16.mxu1 %v4136_v40  ;;  %2300 = vmatprep.mubr.bf16.mxu0 %v4138_v41  ;;  %v4223_v39 = vld [vmem:[%s5521_s1 + $0x2a8] sm:$0xff]  }
  0x64   :  { %v4224_v40 = vld [vmem:[%s5521_s1 + $0x368] sm:$0xff]  }
  0x65   :  { %v4225_v41 = vld [vmem:[%s5521_s1 + $0x328] sm:$0xff]  }
  0x6a   :  { %2204 = vmatmul.mubr.bf16.gmra.mrb[36].mxu1 %v4140_v46  ;;  %2301 = vmatmul.mubr.bf16.gmra.mrb[36].mxu0 %v4141_v47  ;;  %v4216_v46 = vld [vmem:[%s5522_s0 + $0x2ec] ss:$72 sps:$4 sm:$0xff]  }
  0x6b   :  { %2211 = vmatprep.mubr.bf16.mxu1 %v4146_v48  ;;  %2308 = vmatprep.mubr.bf16.mxu0 %v4148_v49  ;;  %v4234_v47 = vld [vmem:[%s5521_s1 + $0x370] sm:$0xff]  }
  0x6c   :  { %v4235_v48 = vld [vmem:[%s5521_s1 + $0x330] sm:$0xff]  }
  0x6d   :  { %v4218_v49 = vld [vmem:[%s5522_s0 + $0x2f4] ss:$72 sps:$4 sm:$0xff]  }
  0x72   :  { %2212 = vmatmul.mubr.bf16.gmra.mrb[40].mxu1 %v4150_v54  ;;  %2309 = vmatmul.mubr.bf16.gmra.mrb[40].mxu0 %v4151_v55  ;;  %v4220_v54 = vld [vmem:[%s5522_s0 + $0x2e8] ss:$72 sps:$4 sm:$0xff]  }
  0x73   :  { %2219 = vmatprep.mubr.bf16.mxu1 %v4156_v57  ;;  %2316 = vmatprep.mubr.bf16.mxu0 %v4158_v58  ;;  %v4221_v55 = vld [vmem:[%s5522_s0 + $0x2f0] ss:$72 sps:$4 sm:$0xff]   ;;  %v4228_v57 = vld [vmem:[%s5522_s0 + $0x384] ss:$72 sps:$4 sm:$0xff]  }
  0x74   :  { %v4252_v58 = vld [vmem:[%s5521_s1 + $0x3c0] sm:$0xff]  }
  0x7a   :  { %2220 = vmatmul.mubr.bf16.gmra.mrb[44].mxu1 %v4160_v63  ;;  %2317 = vmatmul.mubr.bf16.gmra.mrb[44].mxu0 %v4161_v0  ;;  %v4238_v63 = vld [vmem:[%s5522_s0 + $0x414] ss:$72 sps:$4 sm:$0xff]   ;;  %v4240_v0 = vld [vmem:[%s5522_s0 + $0x408] ss:$72 sps:$4 sm:$0xff]  }
  0x7b   :  { %2357 = vmatprep.mubr.bf16.mxu1 %v4168_v2  ;;  %2454 = vmatprep.mubr.bf16.mxu0 %v4171_v3  ;;  %v4248_v2 = vld [vmem:[%s5522_s0 + $0x2c] ss:$72 sps:$4 sm:$0xff]  }
  0x7c   :  { %v4251_v3 = vld [vmem:[%s5522_s0 + $0x34] ss:$72 sps:$4 sm:$0xff]  }
  0x82   :  { %2358 = vmatmul.mubr.bf16.vlgmr.msra.gmra.mrb[48].mxu1 %v4166_v4  ;;  %2455 = vmatmul.mubr.bf16.vlgmr.msra.gmra.mrb[48].mxu0 %v4169_v5  ;;  %v4246_v4 = vld [vmem:[%s5522_s0 + $0x28] ss:$72 sps:$4 sm:$0xff]  }
  0x83   :  { %3743 = vmatpush3.bf16.msra.mxu1 %v4173_v6  ;;  %3807 = vmatpush3.bf16.msra.mxu0 %v4175_v7  ;;  %v4249_v5 = vld [vmem:[%s5522_s0 + $0x30] ss:$72 sps:$4 sm:$0xff]   ;;  %v4253_v6 = vld [vmem:[%s5521_s1 + $0x380] sm:$0xff]  }
  0x84   :  { %2365 = vmatprep.mubr.bf16.mxu1 %v4176_v8  ;;  %2462 = vmatprep.mubr.bf16.mxu0 %v4178_v9  ;;  %v4255_v7 = vld [vmem:[%s5521_s1 + $0x400] sm:$0xff]  }
  0x85   :  { %3744 = vmatprep.subr.bf16.mxu1 %v4182_v10  ;;  %3808 = vmatprep.subr.bf16.mxu0 %v4184_v12  ;;  %v4256_v8 = vld [vmem:[%s5522_s0 + $0xbc] ss:$72 sps:$4 sm:$0xff]   ;;  %v4262_v10 = vld [vmem:[%s5521_s1 + $0x3c8] sm:$0xff]  }
  0x86   :  { %v4258_v9 = vld [vmem:[%s5522_s0 + $0xc4] ss:$72 sps:$4 sm:$0xff]  }
  0x87   :  { %3745 = vmatpush3.bf16.msra.mxu1 %v4183_v11  ;;  %3809 = vmatpush3.bf16.msra.mxu0 %v4185_v13  ;;  %v4264_v11 = vld [vmem:[%s5521_s1 + $0x448] sm:$0xff]  }
  0x88   :  { %3746 = vmatprep.subr.bf16.mxu1 %v4192_v14  ;;  %3810 = vmatprep.subr.bf16.mxu0 %v4194_v17  ;;  %v4263_v12 = vld [vmem:[%s5521_s1 + $0x388] sm:$0xff]   ;;  %v4272_v14 = vld [vmem:[%s5521_s1 + $0x3d0] sm:$0xff]  }
  0x89   :  { %v4265_v13 = vld [vmem:[%s5521_s1 + $0x408] sm:$0xff]   ;;  %v4274_v17 = vld [vmem:[%s5521_s1 + $0x450] sm:$0xff]  }
  0x8a   :  { %2366 = vmatmul.mubr.bf16.gmra.mrb[52].mxu1 %v4180_v15  ;;  %2463 = vmatmul.mubr.bf16.gmra.mrb[52].mxu0 %v4181_v16  ;;  %v4260_v15 = vld [vmem:[%s5522_s0 + $0xb8] ss:$72 sps:$4 sm:$0xff]  }
  0x8b   :  { %2373 = vmatprep.mubr.bf16.mxu1 %v4186_v18  ;;  %2470 = vmatprep.mubr.bf16.mxu0 %v4188_v19  ;;  %v4261_v16 = vld [vmem:[%s5522_s0 + $0xc0] ss:$72 sps:$4 sm:$0xff]   ;;  %v4266_v18 = vld [vmem:[%s5522_s0 + $0x14c] ss:$72 sps:$4 sm:$0xff]  }
  0x8c   :  { %3747 = vmatpush3.bf16.msra.mxu1 %v4193_v20  ;;  %3811 = vmatpush3.bf16.msra.mxu0 %v4195_v21  ;;  %v4268_v19 = vld [vmem:[%s5522_s0 + $0x154] ss:$72 sps:$4 sm:$0xff]  }
  0x8d   :  { %3748 = vmatprep.subr.bf16.mxu1 %v4202_v22  ;;  %3812 = vmatprep.subr.bf16.mxu0 %v4204_v23  ;;  %v4273_v20 = vld [vmem:[%s5521_s1 + $0x390] sm:$0xff]   ;;  %v4282_v22 = vld [vmem:[%s5521_s1 + $0x3d8] sm:$0xff]  }
  0x8e   :  { %v4275_v21 = vld [vmem:[%s5521_s1 + $0x410] sm:$0xff]   ;;  %v4284_v23 = vld [vmem:[%s5521_s1 + $0x458] sm:$0xff]  }
  0x90   :  { %3749 = vmatpush3.bf16.msra.mxu1 %v4203_v26  ;;  %3813 = vmatpush3.bf16.msra.mxu0 %v4205_v27  ;;  %v4270_v26 = vld [vmem:[%s5522_s0 + $0x148] ss:$72 sps:$4 sm:$0xff]  }
  0x91   :  { %3750 = vmatprep.subr.bf16.mxu1 %v4212_v30  ;;  %3814 = vmatprep.subr.bf16.mxu0 %v4214_v32  ;;  %v4271_v27 = vld [vmem:[%s5522_s0 + $0x150] ss:$72 sps:$4 sm:$0xff]   ;;  %v4276_v30 = vld [vmem:[%s5522_s0 + $0x1dc] ss:$72 sps:$4 sm:$0xff]  }
  0x92   :  { %2374 = vmatmul.mubr.bf16.gmra.mrb[56].mxu1 %v4190_v24  ;;  %2471 = vmatmul.mubr.bf16.gmra.mrb[56].mxu0 %v4191_v25  ;;  %v4283_v24 = vld [vmem:[%s5521_s1 + $0x398] sm:$0xff]   ;;  %v4293_v32 = vld [vmem:[%s5521_s1 + $0x3a0] sm:$0xff]  }
  0x93   :  { %2381 = vmatprep.mubr.bf16.mxu1 %v4196_v28  ;;  %2478 = vmatprep.mubr.bf16.mxu0 %v4198_v29  ;;  %v4285_v25 = vld [vmem:[%s5521_s1 + $0x418] sm:$0xff]   ;;  %v4292_v28 = vld [vmem:[%s5521_s1 + $0x3e0] sm:$0xff]  }
  0x94   :  { %3751 = vmatpush3.bf16.msra.mxu1 %v4213_v31  ;;  %3815 = vmatpush3.bf16.msra.mxu0 %v4215_v33  ;;  %v4294_v29 = vld [vmem:[%s5521_s1 + $0x460] sm:$0xff]  }
  0x95   :  { %3752 = vmatprep.subr.bf16.mxu1 %v4222_v36  ;;  %3816 = vmatprep.subr.bf16.mxu0 %v4224_v40  ;;  %v4278_v31 = vld [vmem:[%s5522_s0 + $0x1e4] ss:$72 sps:$4 sm:$0xff]   ;;  %v4312_v40 = vld [vmem:[%s5521_s1 + $0x3f0] sm:$0xff]  }
  0x96   :  { %v4295_v33 = vld [vmem:[%s5521_s1 + $0x420] sm:$0xff]   ;;  %v4303_v36 = vld [vmem:[%s5521_s1 + $0x3a8] sm:$0xff]  }
  0x98   :  { %3753 = vmatpush3.bf16.msra.mxu1 %v4223_v39  ;;  %3817 = vmatpush3.bf16.msra.mxu0 %v4225_v41  ;;  %v4281_v39 = vld [vmem:[%s5522_s0 + $0x1e0] ss:$72 sps:$4 sm:$0xff]   ;;  %v4286_v41 = vld [vmem:[%s5522_s0 + $0x26c] ss:$72 sps:$4 sm:$0xff]  }
  0x99   :  { %3754 = vmatprep.subr.bf16.mxu1 %v4232_v42  ;;  %3818 = vmatprep.subr.bf16.mxu0 %v4234_v47  ;;  %v4314_v42 = vld [vmem:[%s5521_s1 + $0x470] sm:$0xff]   ;;  %v4324_v47 = vld [vmem:[%s5521_s1 + $0x478] sm:$0xff]  }
  0x9a   :  { %2382 = vmatmul.mubr.bf16.gmra.mrb[60].mxu1 %v4200_v34  ;;  %2479 = vmatmul.mubr.bf16.gmra.mrb[60].mxu0 %v4201_v35  ;;  %v4302_v34 = vld [vmem:[%s5521_s1 + $0x3e8] sm:$0xff]  }
  0x9b   :  { %2389 = vmatprep.mubr.bf16.mxu1 %v4206_v37  ;;  %2486 = vmatprep.mubr.bf16.mxu0 %v4208_v38  ;;  %v4304_v35 = vld [vmem:[%s5521_s1 + $0x468] sm:$0xff]   ;;  %v4280_v38 = vld [vmem:[%s5522_s0 + $0x1d8] ss:$72 sps:$4 sm:$0xff]  }
  0x9c   :  { %3755 = vmatpush3.bf16.msra.mxu1 %v4233_v45  ;;  %3819 = vmatpush3.bf16.msra.mxu0 %v4235_v48  ;;  %v4305_v37 = vld [vmem:[%s5521_s1 + $0x428] sm:$0xff]   ;;  %v4315_v45 = vld [vmem:[%s5521_s1 + $0x430] sm:$0xff]   ;;  %v4323_v48 = vld [vmem:[%s5521_s1 + $0x3b8] sm:$0xff]  }
  0x9d   :  { %3756 = vmatprep.subr.bf16.mxu1 %v4242_v50  ;;  %3820 = vmatprep.subr.bf16.mxu0 %v4244_v52  ;;  %v4290_v50 = vld [vmem:[%s5522_s0 + $0x268] ss:$72 sps:$4 sm:$0xff]   ;;  %v4296_v52 = vld [vmem:[%s5522_s0 + $0x2fc] ss:$72 sps:$4 sm:$0xff]  }
  0xa0   :  { %3757 = vmatpush3.bf16.msra.mxu1 %v4243_v51  ;;  %3821 = vmatpush3.bf16.msra.mxu0 %v4245_v53  ;;  %v4291_v51 = vld [vmem:[%s5522_s0 + $0x270] ss:$72 sps:$4 sm:$0xff]   ;;  %v4298_v53 = vld [vmem:[%s5522_s0 + $0x304] ss:$72 sps:$4 sm:$0xff]  }
  0xa1   :  { %3870 = vmatprep.subr.bf16.mxu1 %v4252_v58  ;;  %3934 = vmatprep.subr.bf16.mxu0 %v4254_v59  ;;  %v4310_v58 = vld [vmem:[%s5522_s0 + $0x388] ss:$72 sps:$4 sm:$0xff]  }
  0xa2   :  { %2390 = vmatmul.mubr.bf16.gmra.mrb[64].mxu1 %v4210_v43  ;;  %2487 = vmatmul.mubr.bf16.gmra.mrb[64].mxu0 %v4211_v44  ;;  %v4288_v43 = vld [vmem:[%s5522_s0 + $0x274] ss:$72 sps:$4 sm:$0xff]   ;;  %v4311_v59 = vld [vmem:[%s5522_s0 + $0x390] ss:$72 sps:$4 sm:$0xff]  }
  0xa3   :  { %2397 = vmatprep.mubr.bf16.mxu1 %v4216_v46  ;;  %2494 = vmatprep.mubr.bf16.mxu0 %v4218_v49  ;;  %v4313_v44 = vld [vmem:[%s5521_s1 + $0x3b0] sm:$0xff]   ;;  %v4322_v46 = vld [vmem:[%s5521_s1 + $0x3f8] sm:$0xff]  }
  0xa4   :  { %v4325_v49 = vld [vmem:[%s5521_s1 + $0x438] sm:$0xff]  }
  0xaa   :  { %2398 = vmatmul.mubr.bf16.gmra.mrb[68].mxu1 %v4220_v54  ;;  %2495 = vmatmul.mubr.bf16.gmra.mrb[68].mxu0 %v4221_v55  ;;  %v4300_v54 = vld [vmem:[%s5522_s0 + $0x2f8] ss:$72 sps:$4 sm:$0xff]  }
  0xab   :  { %2405 = vmatprep.mubr.bf16.mxu1 %v4226_v56  ;;  %2502 = vmatprep.mubr.bf16.mxu0 %v4228_v57  ;;  %v4301_v55 = vld [vmem:[%s5522_s0 + $0x300] ss:$72 sps:$4 sm:$0xff]   ;;  %v4306_v56 = vld [vmem:[%s5522_s0 + $0x38c] ss:$72 sps:$4 sm:$0xff]  }
  0xac   :  { %v4308_v57 = vld [vmem:[%s5522_s0 + $0x394] ss:$72 sps:$4 sm:$0xff]  }
  0xb2   :  { %2406 = vmatmul.mubr.bf16.gmra.mrb[72].mxu1 %v4230_v60  ;;  %2503 = vmatmul.mubr.bf16.gmra.mrb[72].mxu0 %v4231_v61  ;;  %v4316_v60 = vld [vmem:[%s5522_s0 + $0x41c] ss:$72 sps:$4 sm:$0xff]  }
  0xb3   :  { %2413 = vmatprep.mubr.bf16.mxu1 %v4236_v62  ;;  %2510 = vmatprep.mubr.bf16.mxu0 %v4238_v63  ;;  %v4318_v61 = vld [vmem:[%s5522_s0 + $0x424] ss:$72 sps:$4 sm:$0xff]  }
  0xba   :  { %2414 = vmatmul.mubr.bf16.gmra.mrb[76].mxu1 %v4240_v0  ;;  %2511 = vmatmul.mubr.bf16.gmra.mrb[76].mxu0 %v4241_v1 }
  0xbb   :  { %2551 = vmatprep.mubr.bf16.mxu1 %v4248_v2  ;;  %2648 = vmatprep.mubr.bf16.mxu0 %v4251_v3  ;;  %v4320_v2 = vld [vmem:[%s5522_s0 + $0x418] ss:$72 sps:$4 sm:$0xff]  }
  0xbc   :  { %v4321_v3 = vld [vmem:[%s5522_s0 + $0x420] ss:$72 sps:$4 sm:$0xff]  }
  0xc2   :  { %2552 = vmatmul.mubr.bf16.vlgmr.msra.gmra.mrb[80].mxu1 %v4246_v4  ;;  %2649 = vmatmul.mubr.bf16.vlgmr.msra.gmra.mrb[80].mxu0 %v4249_v5 }
  0xc3   :  { %3871 = vmatpush3.bf16.msra.mxu1 %v4253_v6  ;;  %3935 = vmatpush3.bf16.msra.mxu0 %v4255_v7 }
  0xc4   :  { %2559 = vmatprep.mubr.bf16.mxu1 %v4256_v8  ;;  %2656 = vmatprep.mubr.bf16.mxu0 %v4258_v9  ;;  %v4328_v8 = vld [vmem:[%s5522_s0 + $0x3c] ss:$72 sps:$4 sm:$0xff]  }
  0xc5   :  { %3872 = vmatprep.subr.bf16.mxu1 %v4262_v10  ;;  %3936 = vmatprep.subr.bf16.mxu0 %v4264_v11  ;;  %v4331_v9 = vld [vmem:[%s5522_s0 + $0x44] ss:$72 sps:$4 sm:$0xff]  }
  0xc7   :  { %3873 = vmatpush3.bf16.msra.mxu1 %v4263_v12  ;;  %3937 = vmatpush3.bf16.msra.mxu0 %v4265_v13 }
  0xc8   :  { %3874 = vmatprep.subr.bf16.mxu1 %v4272_v14  ;;  %3938 = vmatprep.subr.bf16.mxu0 %v4274_v17 }
  0xca   :  { %2560 = vmatmul.mubr.bf16.gmra.mrb[84].mxu1 %v4260_v15  ;;  %2657 = vmatmul.mubr.bf16.gmra.mrb[84].mxu0 %v4261_v16 }
  0xcb   :  { %2567 = vmatprep.mubr.bf16.mxu1 %v4266_v18  ;;  %2664 = vmatprep.mubr.bf16.mxu0 %v4268_v19  ;;  %v4326_v18 = vld [vmem:[%s5522_s0 + $0x38] ss:$72 sps:$4 sm:$0xff]  }
  0xcc   :  { %3875 = vmatpush3.bf16.msra.mxu1 %v4273_v20  ;;  %3939 = vmatpush3.bf16.msra.mxu0 %v4275_v21  ;;  %v4329_v19 = vld [vmem:[%s5522_s0 + $0x40] ss:$72 sps:$4 sm:$0xff]  }
  0xcd   :  { %3876 = vmatprep.subr.bf16.mxu1 %v4282_v22  ;;  %3940 = vmatprep.subr.bf16.mxu0 %v4284_v23 }
  0xd0   :  { %3877 = vmatpush3.bf16.msra.mxu1 %v4283_v24  ;;  %3941 = vmatpush3.bf16.msra.mxu0 %v4285_v25  ;;  %v4332_v24 = vld [vmem:[%s5522_s0 + $0xcc] ss:$72 sps:$4 sm:$0xff]  }
  0xd1   :  { %3878 = vmatprep.subr.bf16.mxu1 %v4292_v28  ;;  %3942 = vmatprep.subr.bf16.mxu0 %v4294_v29  ;;  %v4334_v25 = vld [vmem:[%s5522_s0 + $0xd4] ss:$72 sps:$4 sm:$0xff]  }
  0xd2   :  { %2568 = vmatmul.mubr.bf16.gmra.mrb[88].mxu1 %v4270_v26  ;;  %2665 = vmatmul.mubr.bf16.gmra.mrb[88].mxu0 %v4271_v27 }
  0xd3   :  { %2575 = vmatprep.mubr.bf16.mxu1 %v4276_v30  ;;  %2672 = vmatprep.mubr.bf16.mxu0 %v4278_v31 }
  0xd4   :  { %3879 = vmatpush3.bf16.msra.mxu1 %v4293_v32  ;;  %3943 = vmatpush3.bf16.msra.mxu0 %v4295_v33 }
  0xd5   :  { %3880 = vmatprep.subr.bf16.mxu1 %v4302_v34  ;;  %3944 = vmatprep.subr.bf16.mxu0 %v4304_v35  ;;  %v4336_v34 = vld [vmem:[%s5522_s0 + $0xc8] ss:$72 sps:$4 sm:$0xff]  }
  0xd6   :  { %v4337_v35 = vld [vmem:[%s5522_s0 + $0xd0] ss:$72 sps:$4 sm:$0xff]  }
  0xd8   :  { %3881 = vmatpush3.bf16.msra.mxu1 %v4303_v36  ;;  %3945 = vmatpush3.bf16.msra.mxu0 %v4305_v37 }
  0xd9   :  { %3882 = vmatprep.subr.bf16.mxu1 %v4312_v40  ;;  %3946 = vmatprep.subr.bf16.mxu0 %v4314_v42  ;;  %v4338_v40 = vld [vmem:[%s5522_s0 + $0x15c] ss:$72 sps:$4 sm:$0xff]  }
  0xda   :  { %2576 = vmatmul.mubr.bf16.gmra.mrb[92].mxu1 %v4280_v38  ;;  %2673 = vmatmul.mubr.bf16.gmra.mrb[92].mxu0 %v4281_v39 }
  0xdb   :  { %2583 = vmatprep.mubr.bf16.mxu1 %v4286_v41  ;;  %2680 = vmatprep.mubr.bf16.mxu0 %v4288_v43  ;;  %v4340_v41 = vld [vmem:[%s5522_s0 + $0x164] ss:$72 sps:$4 sm:$0xff]  }
  0xdc   :  { %3883 = vmatpush3.bf16.msra.mxu1 %v4313_v44  ;;  %3947 = vmatpush3.bf16.msra.mxu0 %v4315_v45 }
  0xdd   :  { %3884 = vmatprep.subr.bf16.mxu1 %v4322_v46  ;;  %3948 = vmatprep.subr.bf16.mxu0 %v4324_v47 }
  0xe0   :  { %3885 = vmatpush3.bf16.msra.mxu1 %v4323_v48  ;;  %3949 = vmatpush3.bf16.msra.mxu0 %v4325_v49 }
  0xe2   :  { %2584 = vmatmul.mubr.bf16.gmra.mrb[96].mxu1 %v4290_v50  ;;  %2681 = vmatmul.mubr.bf16.gmra.mrb[96].mxu0 %v4291_v51  ;;  %v4342_v50 = vld [vmem:[%s5522_s0 + $0x158] ss:$72 sps:$4 sm:$0xff]  }
  0xe3   :  { %2591 = vmatprep.mubr.bf16.mxu1 %v4296_v52  ;;  %2688 = vmatprep.mubr.bf16.mxu0 %v4298_v53  ;;  %v4343_v51 = vld [vmem:[%s5522_s0 + $0x160] ss:$72 sps:$4 sm:$0xff]  }
  0xea   :  { %2592 = vmatmul.mubr.bf16.gmra.mrb[100].mxu1 %v4300_v54  ;;  %2689 = vmatmul.mubr.bf16.gmra.mrb[100].mxu0 %v4301_v55 }
  0xeb   :  { %2599 = vmatprep.mubr.bf16.mxu1 %v4306_v56  ;;  %2696 = vmatprep.mubr.bf16.mxu0 %v4308_v57  ;;  %v4344_v56 = vld [vmem:[%s5522_s0 + $0x1ec] ss:$72 sps:$4 sm:$0xff]  }
  0xec   :  { %v4346_v57 = vld [vmem:[%s5522_s0 + $0x1f4] ss:$72 sps:$4 sm:$0xff]  }
  0xf2   :  { %2600 = vmatmul.mubr.bf16.gmra.mrb[104].mxu1 %v4310_v58  ;;  %2697 = vmatmul.mubr.bf16.gmra.mrb[104].mxu0 %v4311_v59 }
  0xf3   :  { %2607 = vmatprep.mubr.bf16.mxu1 %v4316_v60  ;;  %2704 = vmatprep.mubr.bf16.mxu0 %v4318_v61 }
  0xf5   :  { %v3438_v62 = vpop.f32.mrb[0].mxu0  ;;  %v3462_v63 = vpop.f32.mrb[0].mxu1 }
  0xf6   :  { %v3439_v0 = vpop.f32.mrb[1].mxu0  ;;  %v3463_v1 = vpop.f32.mrb[1].mxu1 }
  0xf7   :  { %v5167_v4 = vadd.f32 %v3439_v0, %v3438_v62  ;;  %v5169_v5 = vadd.f32 %v3463_v1, %v3462_v63  ;;  %v3441_v6 = vpop.f32.mrb[2].mxu0  ;;  %v3465_v7 = vpop.f32.mrb[2].mxu1 }
  0xf8   :  { %v3442_v10 = vpop.f32.mrb[3].mxu0  ;;  %v3466_v11 = vpop.f32.mrb[3].mxu1 }
  0xf9   :  { %v5177_v12 = vadd.f32 %v3442_v10, %v3441_v6  ;;  %v5179_v13 = vadd.f32 %v3466_v11, %v3465_v7  ;;  %v4350_v10 = vld [vmem:[%s5522_s0 + $0x27c] ss:$72 sps:$4 sm:$0xff]  }
  0xfa   :  { %2608 = vmatmul.mubr.bf16.gmra.mrb[108].mxu1 %v4320_v2  ;;  %2705 = vmatmul.mubr.bf16.gmra.mrb[108].mxu0 %v4321_v3  ;;  %v4348_v2 = vld [vmem:[%s5522_s0 + $0x1e8] ss:$72 sps:$4 sm:$0xff]   ;;  %v4352_v11 = vld [vmem:[%s5522_s0 + $0x284] ss:$72 sps:$4 sm:$0xff]  }
  0xfb   :  { %2745 = vmatprep.mubr.bf16.mxu1 %v4328_v8  ;;  %2842 = vmatprep.mubr.bf16.mxu0 %v4331_v9  ;;  %v4349_v3 = vld [vmem:[%s5522_s0 + $0x1f0] ss:$72 sps:$4 sm:$0xff]  }
  0xfd   :  { %v3444_v14 = vpop.f32.mrb[4].mxu0  ;;  %v3468_v15 = vpop.f32.mrb[4].mxu1 }
  0xfe   :  { %v3445_v16 = vpop.f32.mrb[5].mxu0  ;;  %v3469_v17 = vpop.f32.mrb[5].mxu1 }
  0xff   :  { %v5187_v20 = vadd.f32 %v3445_v16, %v3444_v14  ;;  %v5189_v21 = vadd.f32 %v3469_v17, %v3468_v15  ;;  %v3447_v22 = vpop.f32.mrb[6].mxu0  ;;  %v3471_v23 = vpop.f32.mrb[6].mxu1 }
 0x100   :  { %v3448_v26 = vpop.f32.mrb[7].mxu0  ;;  %v3472_v27 = vpop.f32.mrb[7].mxu1 }
 0x101   :  { %v5197_v28 = vadd.f32 %v3448_v26, %v3447_v22  ;;  %v5199_v29 = vadd.f32 %v3472_v27, %v3471_v23 }
 0x102   :  { %2746 = vmatmul.mubr.bf16.vlgmr.msra.gmra.mrb[112].mxu1 %v4326_v18  ;;  %2843 = vmatmul.mubr.bf16.vlgmr.msra.gmra.mrb[112].mxu0 %v4329_v19 }
 0x103   :  { %2753 = vmatprep.mubr.bf16.mxu1 %v4332_v24  ;;  %2850 = vmatprep.mubr.bf16.mxu0 %v4334_v25 }
 0x105   :  { %v3450_v30 = vpop.f32.mrb[8].mxu0  ;;  %v3474_v31 = vpop.f32.mrb[8].mxu1 }
 0x106   :  { %v3451_v32 = vpop.f32.mrb[9].mxu0  ;;  %v3475_v33 = vpop.f32.mrb[9].mxu1 }
 0x107   :  { %v5207_v36 = vadd.f32 %v3451_v32, %v3450_v30  ;;  %v5209_v37 = vadd.f32 %v3475_v33, %v3474_v31  ;;  %v3453_v38 = vpop.f32.mrb[10].mxu0  ;;  %v3477_v39 = vpop.f32.mrb[10].mxu1  ;;  %v4355_v30 = vld [vmem:[%s5522_s0 + $0x280] ss:$72 sps:$4 sm:$0xff]  }
 0x108   :  { %v3454_v42 = vpop.f32.mrb[11].mxu0  ;;  %v3478_v43 = vpop.f32.mrb[11].mxu1 }
 0x109   :  { %v5217_v44 = vadd.f32 %v3454_v42, %v3453_v38  ;;  %v5219_v45 = vadd.f32 %v3478_v43, %v3477_v39 }
 0x10a   :  { %2754 = vmatmul.mubr.bf16.gmra.mrb[116].mxu1 %v4336_v34  ;;  %2851 = vmatmul.mubr.bf16.gmra.mrb[116].mxu0 %v4337_v35  ;;  %v4356_v34 = vld [vmem:[%s5522_s0 + $0x30c] ss:$72 sps:$4 sm:$0xff]  }
 0x10b   :  { %2761 = vmatprep.mubr.bf16.mxu1 %v4338_v40  ;;  %2858 = vmatprep.mubr.bf16.mxu0 %v4340_v41  ;;  %v4358_v35 = vld [vmem:[%s5522_s0 + $0x314] ss:$72 sps:$4 sm:$0xff]  }
 0x10d   :  { %v3456_v46 = vpop.f32.mrb[12].mxu0  ;;  %v3480_v47 = vpop.f32.mrb[12].mxu1 }
 0x10e   :  { %v3457_v48 = vpop.f32.mrb[13].mxu0  ;;  %v3481_v49 = vpop.f32.mrb[13].mxu1 }
 0x10f   :  { %v5227_v52 = vadd.f32 %v3457_v48, %v3456_v46  ;;  %v5229_v53 = vadd.f32 %v3481_v49, %v3480_v47  ;;  %v3459_v54 = vpop.f32.mrb[14].mxu0  ;;  %v3483_v55 = vpop.f32.mrb[14].mxu1 }
 0x110   :  { %v3460_v58 = vpop.f32.mrb[15].mxu0  ;;  %v3484_v59 = vpop.f32.mrb[15].mxu1 }
 0x111   :  { %v5237_v60 = vadd.f32 %v3460_v58, %v3459_v54  ;;  %v5239_v61 = vadd.f32 %v3484_v59, %v3483_v55  ;;  %v4361_v54 = vld [vmem:[%s5522_s0 + $0x310] ss:$72 sps:$4 sm:$0xff]   ;;  %v4362_v58 = vld [vmem:[%s5522_s0 + $0x39c] ss:$72 sps:$4 sm:$0xff]  }
 0x112   :  { %2762 = vmatmul.mubr.bf16.gmra.mrb[120].mxu1 %v4342_v50  ;;  %2859 = vmatmul.mubr.bf16.gmra.mrb[120].mxu0 %v4343_v51  ;;  %v4364_v59 = vld [vmem:[%s5522_s0 + $0x3a4] ss:$72 sps:$4 sm:$0xff]  }
 0x113   :  { %2769 = vmatprep.mubr.bf16.mxu1 %v4344_v56  ;;  %2866 = vmatprep.mubr.bf16.mxu0 %v4346_v57 }
 0x115   :  { %v3502_v62 = vpop.f32.mrb[16].mxu1  ;;  %v3566_v63 = vpop.f32.mrb[16].mxu0 }
 0x116   :  { %v3503_v0 = vpop.f32.mrb[17].mxu1  ;;  %v3567_v1 = vpop.f32.mrb[17].mxu0 }
 0x117   :  { %v3504_v6 = vadd.f32 %v3503_v0, %v3502_v62  ;;  %v3568_v7 = vadd.f32 %v3567_v1, %v3566_v63  ;;  %v3505_v8 = vpop.f32.mrb[18].mxu1  ;;  %v3569_v9 = vpop.f32.mrb[18].mxu0 }
 0x118   :  { %v3506_v14 = vpop.f32.mrb[19].mxu1  ;;  %v3570_v15 = vpop.f32.mrb[19].mxu0 }
 0x119   :  { %v2166_v16 = vadd.f32 %v3504_v6, %v5167_v4  ;;  %v3507_v17 = vadd.f32 %v3506_v14, %v3505_v8  ;;  %v3571_v18 = vadd.f32 %v3570_v15, %v3569_v9  ;;  %v4354_v4 = vld [vmem:[%s5522_s0 + $0x278] ss:$72 sps:$4 sm:$0xff]  }
 0x11a   :  { %2770 = vmatmul.mubr.bf16.gmra.mrb[124].mxu1 %v4348_v2  ;;  %2867 = vmatmul.mubr.bf16.gmra.mrb[124].mxu0 %v4349_v3  ;;  %v4367_v14 = vld [vmem:[%s5522_s0 + $0x3a0] ss:$72 sps:$4 sm:$0xff]  }
 0x11b   :  { %v5254_v19 = vadd.f32 %v3568_v7, %v2166_v16  ;;  %v2169_v22 = vadd.f32 %v3507_v17, %v5177_v12  ;;  %2777 = vmatprep.mubr.bf16.mxu1 %v4350_v10  ;;  %2874 = vmatprep.mubr.bf16.mxu0 %v4352_v11 }
 0x11d   :  { %v5257_v23 = vadd.f32 %v3571_v18, %v2169_v22  ;;  %v3508_v24 = vpop.f32.mrb[20].mxu1  ;;  %v3572_v25 = vpop.f32.mrb[20].mxu0  ;;  %v4368_v18 = vld [vmem:[%s5522_s0 + $0x42c] ss:$72 sps:$4 sm:$0xff]  }
 0x11e   :  { %v3509_v26 = vpop.f32.mrb[21].mxu1  ;;  %v3573_v27 = vpop.f32.mrb[21].mxu0  ;;  %v4370_v22 = vld [vmem:[%s5522_s0 + $0x434] ss:$72 sps:$4 sm:$0xff]  }
 0x11f   :  { %v3510_v31 = vadd.f32 %v3509_v26, %v3508_v24  ;;  %v3574_v32 = vadd.f32 %v3573_v27, %v3572_v25  ;;  %v3511_v33 = vpop.f32.mrb[22].mxu1  ;;  %v3575_v12 = vpop.f32.mrb[22].mxu0 }
 0x120   :  { %v3512_v38 = vpop.f32.mrb[23].mxu1  ;;  %v3576_v39 = vpop.f32.mrb[23].mxu0 }
 0x121   :  { %v2174_v40 = vadd.f32 %v3510_v31, %v5187_v20  ;;  %v3513_v41 = vadd.f32 %v3512_v38, %v3511_v33  ;;  %v3577_v42 = vadd.f32 %v3576_v39, %v3575_v12  ;;  %v4360_v20 = vld [vmem:[%s5522_s0 + $0x308] ss:$72 sps:$4 sm:$0xff]  }
 0x122   :  { %2778 = vmatmul.mubr.bf16.gmra.mrb[128].mxu1 %v4354_v4  ;;  %2875 = vmatmul.mubr.bf16.gmra.mrb[128].mxu0 %v4355_v30  ;;  %v4373_v38 = vld [vmem:[%s5522_s0 + $0x430] ss:$72 sps:$4 sm:$0xff]  }
 0x123   :  { %v5272_v43 = vadd.f32 %v3574_v32, %v2174_v40  ;;  %v2177_v46 = vadd.f32 %v3513_v41, %v5197_v28  ;;  %2785 = vmatprep.mubr.bf16.mxu1 %v4356_v34  ;;  %2882 = vmatprep.mubr.bf16.mxu0 %v4358_v35 }
 0x125   :  { %v5275_v47 = vadd.f32 %v3577_v42, %v2177_v46  ;;  %v3514_v48 = vpop.f32.mrb[24].mxu1  ;;  %v3578_v49 = vpop.f32.mrb[24].mxu0 }
 0x126   :  { %v3515_v50 = vpop.f32.mrb[25].mxu1  ;;  %v3579_v51 = vpop.f32.mrb[25].mxu0 }
 0x127   :  { %v3516_v55 = vadd.f32 %v3515_v50, %v3514_v48  ;;  %v3580_v56 = vadd.f32 %v3579_v51, %v3578_v49  ;;  %v3517_v57 = vpop.f32.mrb[26].mxu1  ;;  %v3581_v28 = vpop.f32.mrb[26].mxu0 }
 0x128   :  { %v3518_v62 = vpop.f32.mrb[27].mxu1  ;;  %v3582_v63 = vpop.f32.mrb[27].mxu0 }
 0x129   :  { %v2182_v0 = vadd.f32 %v3516_v55, %v5207_v36  ;;  %v3519_v1 = vadd.f32 %v3518_v62, %v3517_v57  ;;  %v3583_v2 = vadd.f32 %v3582_v63, %v3581_v28  ;;  %v4366_v36 = vld [vmem:[%s5522_s0 + $0x398] ss:$72 sps:$4 sm:$0xff]  }
 0x12a   :  { %2786 = vmatmul.mubr.bf16.gmra.mrb[132].mxu1 %v4360_v20  ;;  %2883 = vmatmul.mubr.bf16.gmra.mrb[132].mxu0 %v4361_v54 }
 0x12b   :  { %v5290_v3 = vadd.f32 %v3580_v56, %v2182_v0  ;;  %v2185_v6 = vadd.f32 %v3519_v1, %v5217_v44  ;;  %2793 = vmatprep.mubr.bf16.mxu1 %v4362_v58  ;;  %2890 = vmatprep.mubr.bf16.mxu0 %v4364_v59 }
 0x12d   :  { %v5293_v7 = vadd.f32 %v3583_v2, %v2185_v6  ;;  %v3520_v8 = vpop.f32.mrb[28].mxu1  ;;  %v3584_v9 = vpop.f32.mrb[28].mxu0 }
 0x12e   :  { %v3521_v10 = vpop.f32.mrb[29].mxu1  ;;  %v3585_v11 = vpop.f32.mrb[29].mxu0 }
 0x12f   :  { %v3522_v15 = vadd.f32 %v3521_v10, %v3520_v8  ;;  %v3586_v16 = vadd.f32 %v3585_v11, %v3584_v9  ;;  %v3523_v17 = vpop.f32.mrb[30].mxu1  ;;  %v3587_v44 = vpop.f32.mrb[30].mxu0 }
 0x130   :  { %v3524_v24 = vpop.f32.mrb[31].mxu1  ;;  %v3588_v25 = vpop.f32.mrb[31].mxu0 }
 0x131   :  { %v2190_v26 = vadd.f32 %v3522_v15, %v5227_v52  ;;  %v3525_v27 = vadd.f32 %v3524_v24, %v3523_v17  ;;  %v3589_v4 = vadd.f32 %v3588_v25, %v3587_v44  ;;  %v4372_v52 = vld [vmem:[%s5522_s0 + $0x428] ss:$72 sps:$4 sm:$0xff]  }
 0x132   :  { %2794 = vmatmul.mubr.bf16.gmra.mrb[136].mxu1 %v4366_v36  ;;  %2891 = vmatmul.mubr.bf16.gmra.mrb[136].mxu0 %v4367_v14 }
 0x133   :  { %v5308_v30 = vadd.f32 %v3586_v16, %v2190_v26  ;;  %v2193_v31 = vadd.f32 %v3525_v27, %v5237_v60  ;;  %2801 = vmatprep.mubr.bf16.mxu1 %v4368_v18  ;;  %2898 = vmatprep.mubr.bf16.mxu0 %v4370_v22 }
 0x135   :  { %v5311_v32 = vadd.f32 %v3589_v4, %v2193_v31  ;;  %v3526_v33 = vpop.f32.mrb[32].mxu1  ;;  %v3590_v12 = vpop.f32.mrb[32].mxu0 }
 0x136   :  { %v3527_v34 = vpop.f32.mrb[33].mxu1  ;;  %v3591_v35 = vpop.f32.mrb[33].mxu0 }
 0x137   :  { %v3528_v39 = vadd.f32 %v3527_v34, %v3526_v33  ;;  %v3592_v40 = vadd.f32 %v3591_v35, %v3590_v12  ;;  %v3529_v41 = vpop.f32.mrb[34].mxu1  ;;  %v3593_v60 = vpop.f32.mrb[34].mxu0 }
 0x138   :  { %v3530_v42 = vpop.f32.mrb[35].mxu1  ;;  %v3594_v46 = vpop.f32.mrb[35].mxu0 }
 0x139   :  { %v2198_v48 = vadd.f32 %v3528_v39, %v5169_v5  ;;  %v3531_v49 = vadd.f32 %v3530_v42, %v3529_v41  ;;  %v3595_v50 = vadd.f32 %v3594_v46, %v3593_v60 }
 0x13a   :  { %2802 = vmatmul.mubr.bf16.gmra.mrb[140].mxu1 %v4372_v52  ;;  %2899 = vmatmul.mubr.bf16.gmra.mrb[140].mxu0 %v4373_v38 }
 0x13b   :  { %v5320_v51 = vadd.f32 %v3592_v40, %v2198_v48  ;;  %v2201_v20 = vadd.f32 %v3531_v49, %v5179_v13 }
 0x13d   :  { %v5323_v54 = vadd.f32 %v3595_v50, %v2201_v20  ;;  %v3532_v55 = vpop.f32.mrb[36].mxu1  ;;  %v3596_v56 = vpop.f32.mrb[36].mxu0 }
 0x13e   :  { %v3533_v57 = vpop.f32.mrb[37].mxu1  ;;  %v3597_v28 = vpop.f32.mrb[37].mxu0 }
 0x13f   :  { %v3534_v58 = vadd.f32 %v3533_v57, %v3532_v55  ;;  %v3598_v59 = vadd.f32 %v3597_v28, %v3596_v56  ;;  %v3535_v62 = vpop.f32.mrb[38].mxu1  ;;  %v3599_v63 = vpop.f32.mrb[38].mxu0 }
 0x140   :  { %v3536_v0 = vpop.f32.mrb[39].mxu1  ;;  %v3600_v5 = vpop.f32.mrb[39].mxu0 }
 0x141   :  { %v2206_v1 = vadd.f32 %v3534_v58, %v5189_v21  ;;  %v3537_v2 = vadd.f32 %v3536_v0, %v3535_v62  ;;  %v3601_v6 = vadd.f32 %v3600_v5, %v3599_v63 }
 0x143   :  { %v5326_v8 = vadd.f32 %v3598_v59, %v2206_v1  ;;  %v2209_v13 = vadd.f32 %v3537_v2, %v5199_v29 }
 0x145   :  { %v5329_v9 = vadd.f32 %v3601_v6, %v2209_v13  ;;  %v3538_v10 = vpop.f32.mrb[40].mxu1  ;;  %v3602_v11 = vpop.f32.mrb[40].mxu0 }
 0x146   :  { %v3539_v36 = vpop.f32.mrb[41].mxu1  ;;  %v3603_v14 = vpop.f32.mrb[41].mxu0 }
 0x147   :  { %v3540_v15 = vadd.f32 %v3539_v36, %v3538_v10  ;;  %v3604_v16 = vadd.f32 %v3603_v14, %v3602_v11  ;;  %v3541_v17 = vpop.f32.mrb[42].mxu1  ;;  %v3605_v44 = vpop.f32.mrb[42].mxu0 }
 0x148   :  { %v3542_v18 = vpop.f32.mrb[43].mxu1  ;;  %v3606_v22 = vpop.f32.mrb[43].mxu0 }
 0x149   :  { %v2214_v21 = vadd.f32 %v3540_v15, %v5209_v37  ;;  %v3543_v24 = vadd.f32 %v3542_v18, %v3541_v17  ;;  %v3607_v25 = vadd.f32 %v3606_v22, %v3605_v44 }
 0x14b   :  { %v5332_v26 = vadd.f32 %v3604_v16, %v2214_v21  ;;  %v2217_v29 = vadd.f32 %v3543_v24, %v5219_v45 }
 0x14d   :  { %v5335_v27 = vadd.f32 %v3607_v25, %v2217_v29  ;;  %v3544_v4 = vpop.f32.mrb[44].mxu1  ;;  %v3608_v31 = vpop.f32.mrb[44].mxu0 }
 0x14e   :  { %v3545_v33 = vpop.f32.mrb[45].mxu1  ;;  %v3609_v12 = vpop.f32.mrb[45].mxu0 }
 0x14f   :  { %v3546_v34 = vadd.f32 %v3545_v33, %v3544_v4  ;;  %v3610_v35 = vadd.f32 %v3609_v12, %v3608_v31  ;;  %v3547_v52 = vpop.f32.mrb[46].mxu1  ;;  %v3611_v38 = vpop.f32.mrb[46].mxu0 }
 0x150   :  { %v3548_v39 = vpop.f32.mrb[47].mxu1  ;;  %v3612_v40 = vpop.f32.mrb[47].mxu0 }
 0x151   :  { %v2222_v37 = vadd.f32 %v3546_v34, %v5229_v53  ;;  %v3549_v41 = vadd.f32 %v3548_v39, %v3547_v52  ;;  %v3613_v60 = vadd.f32 %v3612_v40, %v3611_v38 }
 0x153   :  { %v5338_v42 = vadd.f32 %v3610_v35, %v2222_v37  ;;  %v2225_v45 = vadd.f32 %v3549_v41, %v5239_v61 }
 0x155   :  { %v5341_v46 = vadd.f32 %v3613_v60, %v2225_v45  ;;  %v3630_v48 = vpop.f32.mrb[48].mxu1  ;;  %v3694_v49 = vpop.f32.mrb[48].mxu0 }
 0x156   :  { %v3631_v50 = vpop.f32.mrb[49].mxu1  ;;  %v3695_v20 = vpop.f32.mrb[49].mxu0 }
 0x157   :  { %v3632_v55 = vadd.f32 %v3631_v50, %v3630_v48  ;;  %v3696_v56 = vadd.f32 %v3695_v20, %v3694_v49  ;;  %v3633_v57 = vpop.f32.mrb[50].mxu1  ;;  %v3697_v28 = vpop.f32.mrb[50].mxu0 }
 0x158   :  { %v3634_v58 = vpop.f32.mrb[51].mxu1  ;;  %v3698_v59 = vpop.f32.mrb[51].mxu0 }
 0x159   :  { %v2360_v53 = vadd.f32 %v3632_v55, %v5254_v19  ;;  %v3635_v62 = vadd.f32 %v3634_v58, %v3633_v57  ;;  %v3699_v63 = vadd.f32 %v3698_v59, %v3697_v28 }
 0x15b   :  { %v5344_v0 = vadd.f32 %v3696_v56, %v2360_v53  ;;  %v2363_v61 = vadd.f32 %v3635_v62, %v5257_v23 }
 0x15d   :  { %v5347_v5 = vadd.f32 %v3699_v63, %v2363_v61  ;;  %v3636_v1 = vpop.f32.mrb[52].mxu1  ;;  %v3700_v2 = vpop.f32.mrb[52].mxu0 }
 0x15e   :  { %v3637_v6 = vpop.f32.mrb[53].mxu1  ;;  %v3701_v13 = vpop.f32.mrb[53].mxu0 }
 0x15f   :  { %v3638_v10 = vadd.f32 %v3637_v6, %v3636_v1  ;;  %v3702_v11 = vadd.f32 %v3701_v13, %v3700_v2  ;;  %v3639_v36 = vpop.f32.mrb[54].mxu1  ;;  %v3703_v14 = vpop.f32.mrb[54].mxu0 }
 0x160   :  { %v3640_v15 = vpop.f32.mrb[55].mxu1  ;;  %v3704_v16 = vpop.f32.mrb[55].mxu0 }
 0x161   :  { %v2368_v19 = vadd.f32 %v3638_v10, %v5272_v43  ;;  %v3641_v17 = vadd.f32 %v3640_v15, %v3639_v36  ;;  %v3705_v44 = vadd.f32 %v3704_v16, %v3703_v14 }
 0x163   :  { %v5350_v18 = vadd.f32 %v3702_v11, %v2368_v19  ;;  %v2371_v23 = vadd.f32 %v3641_v17, %v5275_v47 }
 0x165   :  { %v5353_v22 = vadd.f32 %v3705_v44, %v2371_v23  ;;  %v3642_v21 = vpop.f32.mrb[56].mxu1  ;;  %v3706_v24 = vpop.f32.mrb[56].mxu0 }
 0x166   :  { %v3643_v25 = vpop.f32.mrb[57].mxu1  ;;  %v3707_v29 = vpop.f32.mrb[57].mxu0 }
 0x167   :  { %v3644_v4 = vadd.f32 %v3643_v25, %v3642_v21  ;;  %v3708_v31 = vadd.f32 %v3707_v29, %v3706_v24  ;;  %v3645_v33 = vpop.f32.mrb[58].mxu1  ;;  %v3709_v12 = vpop.f32.mrb[58].mxu0 }
 0x168   :  { %v3646_v34 = vpop.f32.mrb[59].mxu1  ;;  %v3710_v35 = vpop.f32.mrb[59].mxu0 }
 0x169   :  { %v2376_v43 = vadd.f32 %v3644_v4, %v5290_v3  ;;  %v3647_v52 = vadd.f32 %v3646_v34, %v3645_v33  ;;  %v3711_v38 = vadd.f32 %v3710_v35, %v3709_v12 }
 0x16b   :  { %v5356_v39 = vadd.f32 %v3708_v31, %v2376_v43  ;;  %v2379_v47 = vadd.f32 %v3647_v52, %v5293_v7 }
 0x16d   :  { %v5359_v40 = vadd.f32 %v3711_v38, %v2379_v47  ;;  %v3648_v37 = vpop.f32.mrb[60].mxu1  ;;  %v3712_v41 = vpop.f32.mrb[60].mxu0 }
 0x16e   :  { %v3649_v60 = vpop.f32.mrb[61].mxu1  ;;  %v3713_v45 = vpop.f32.mrb[61].mxu0 }
 0x16f   :  { %v3650_v48 = vadd.f32 %v3649_v60, %v3648_v37  ;;  %v3714_v49 = vadd.f32 %v3713_v45, %v3712_v41  ;;  %v3651_v50 = vpop.f32.mrb[62].mxu1  ;;  %v3715_v20 = vpop.f32.mrb[62].mxu0 }
 0x170   :  { %v3652_v55 = vpop.f32.mrb[63].mxu1  ;;  %v3716_v56 = vpop.f32.mrb[63].mxu0 }
 0x171   :  { %v2384_v3 = vadd.f32 %v3650_v48, %v5308_v30  ;;  %v3653_v57 = vadd.f32 %v3652_v55, %v3651_v50  ;;  %v3717_v28 = vadd.f32 %v3716_v56, %v3715_v20 }
 0x173   :  { %v5362_v58 = vadd.f32 %v3714_v49, %v2384_v3  ;;  %v2387_v7 = vadd.f32 %v3653_v57, %v5311_v32 }
 0x175   :  { %v5365_v59 = vadd.f32 %v3717_v28, %v2387_v7  ;;  %v3654_v53 = vpop.f32.mrb[64].mxu1  ;;  %v3718_v62 = vpop.f32.mrb[64].mxu0 }
 0x176   :  { %v3655_v63 = vpop.f32.mrb[65].mxu1  ;;  %v3719_v61 = vpop.f32.mrb[65].mxu0 }
 0x177   :  { %v3656_v1 = vadd.f32 %v3655_v63, %v3654_v53  ;;  %v3720_v2 = vadd.f32 %v3719_v61, %v3718_v62  ;;  %v3657_v6 = vpop.f32.mrb[66].mxu1  ;;  %v3721_v13 = vpop.f32.mrb[66].mxu0 }
 0x178   :  { %v3658_v10 = vpop.f32.mrb[67].mxu1  ;;  %v3722_v11 = vpop.f32.mrb[67].mxu0 }
 0x179   :  { %v2392_v30 = vadd.f32 %v3656_v1, %v5320_v51  ;;  %v3659_v36 = vadd.f32 %v3658_v10, %v3657_v6  ;;  %v3723_v14 = vadd.f32 %v3722_v11, %v3721_v13 }
 0x17b   :  { %v5368_v15 = vadd.f32 %v3720_v2, %v2392_v30  ;;  %v2395_v32 = vadd.f32 %v3659_v36, %v5323_v54 }
 0x17d   :  { %v5371_v16 = vadd.f32 %v3723_v14, %v2395_v32  ;;  %v3660_v19 = vpop.f32.mrb[68].mxu1  ;;  %v3724_v17 = vpop.f32.mrb[68].mxu0 }
 0x17e   :  { %v3661_v44 = vpop.f32.mrb[69].mxu1  ;;  %v3725_v23 = vpop.f32.mrb[69].mxu0 }
 0x17f   :  { %v3662_v21 = vadd.f32 %v3661_v44, %v3660_v19  ;;  %v3726_v24 = vadd.f32 %v3725_v23, %v3724_v17  ;;  %v3663_v25 = vpop.f32.mrb[70].mxu1  ;;  %v3727_v29 = vpop.f32.mrb[70].mxu0 }
 0x180   :  { %v3664_v4 = vpop.f32.mrb[71].mxu1  ;;  %v3728_v31 = vpop.f32.mrb[71].mxu0 }
 0x181   :  { %v2400_v51 = vadd.f32 %v3662_v21, %v5326_v8  ;;  %v3665_v33 = vadd.f32 %v3664_v4, %v3663_v25  ;;  %v3729_v12 = vadd.f32 %v3728_v31, %v3727_v29 }
 0x183   :  { %v5374_v34 = vadd.f32 %v3726_v24, %v2400_v51  ;;  %v2403_v54 = vadd.f32 %v3665_v33, %v5329_v9 }
 0x185   :  { %v5377_v35 = vadd.f32 %v3729_v12, %v2403_v54  ;;  %v3666_v43 = vpop.f32.mrb[72].mxu1  ;;  %v3730_v52 = vpop.f32.mrb[72].mxu0 }
 0x186   :  { %v3667_v38 = vpop.f32.mrb[73].mxu1  ;;  %v3731_v47 = vpop.f32.mrb[73].mxu0 }
 0x187   :  { %v3668_v37 = vadd.f32 %v3667_v38, %v3666_v43  ;;  %v3732_v41 = vadd.f32 %v3731_v47, %v3730_v52  ;;  %v3669_v60 = vpop.f32.mrb[74].mxu1  ;;  %v3733_v45 = vpop.f32.mrb[74].mxu0 }
 0x188   :  { %v3670_v48 = vpop.f32.mrb[75].mxu1  ;;  %v3734_v49 = vpop.f32.mrb[75].mxu0 }
 0x189   :  { %v2408_v8 = vadd.f32 %v3668_v37, %v5332_v26  ;;  %v3671_v50 = vadd.f32 %v3670_v48, %v3669_v60  ;;  %v3735_v20 = vadd.f32 %v3734_v49, %v3733_v45 }
 0x18b   :  { %v5380_v55 = vadd.f32 %v3732_v41, %v2408_v8  ;;  %v2411_v9 = vadd.f32 %v3671_v50, %v5335_v27 }
 0x18d   :  { %v5383_v56 = vadd.f32 %v3735_v20, %v2411_v9  ;;  %v3672_v3 = vpop.f32.mrb[76].mxu1  ;;  %v3736_v57 = vpop.f32.mrb[76].mxu0 }
 0x18e   :  { %v3673_v28 = vpop.f32.mrb[77].mxu1  ;;  %v3737_v7 = vpop.f32.mrb[77].mxu0 }
 0x18f   :  { %v3674_v53 = vadd.f32 %v3673_v28, %v3672_v3  ;;  %v3738_v62 = vadd.f32 %v3737_v7, %v3736_v57  ;;  %v3675_v63 = vpop.f32.mrb[78].mxu1  ;;  %v3739_v61 = vpop.f32.mrb[78].mxu0 }
 0x190   :  { %v3676_v1 = vpop.f32.mrb[79].mxu1  ;;  %v3740_v2 = vpop.f32.mrb[79].mxu0 }
 0x191   :  { %v2416_v26 = vadd.f32 %v3674_v53, %v5338_v42  ;;  %v3677_v6 = vadd.f32 %v3676_v1, %v3675_v63  ;;  %v3741_v13 = vadd.f32 %v3740_v2, %v3739_v61 }
 0x193   :  { %v5386_v10 = vadd.f32 %v3738_v62, %v2416_v26  ;;  %v2419_v27 = vadd.f32 %v3677_v6, %v5341_v46 }
 0x195   :  { %v5389_v11 = vadd.f32 %v3741_v13, %v2419_v27  ;;  %v3758_v30 = vpop.f32.mrb[80].mxu1  ;;  %v3822_v36 = vpop.f32.mrb[80].mxu0 }
 0x196   :  { %v3759_v14 = vpop.f32.mrb[81].mxu1  ;;  %v3823_v32 = vpop.f32.mrb[81].mxu0 }
 0x197   :  { %v3760_v19 = vadd.f32 %v3759_v14, %v3758_v30  ;;  %v3824_v17 = vadd.f32 %v3823_v32, %v3822_v36  ;;  %v3761_v44 = vpop.f32.mrb[82].mxu1  ;;  %v3825_v23 = vpop.f32.mrb[82].mxu0 }
 0x198   :  { %v3762_v21 = vpop.f32.mrb[83].mxu1  ;;  %v3826_v24 = vpop.f32.mrb[83].mxu0 }
 0x199   :  { %v2554_v42 = vadd.f32 %v3760_v19, %v5344_v0  ;;  %v3763_v25 = vadd.f32 %v3762_v21, %v3761_v44  ;;  %v3827_v29 = vadd.f32 %v3826_v24, %v3825_v23 }
 0x19b   :  { %v5392_v4 = vadd.f32 %v3824_v17, %v2554_v42  ;;  %v2557_v46 = vadd.f32 %v3763_v25, %v5347_v5 }
 0x19d   :  { %v5395_v31 = vadd.f32 %v3827_v29, %v2557_v46  ;;  %v3764_v51 = vpop.f32.mrb[84].mxu1  ;;  %v3828_v33 = vpop.f32.mrb[84].mxu0 }
 0x19e   :  { %v3765_v12 = vpop.f32.mrb[85].mxu1  ;;  %v3829_v54 = vpop.f32.mrb[85].mxu0 }
 0x19f   :  { %v3766_v43 = vadd.f32 %v3765_v12, %v3764_v51  ;;  %v3830_v52 = vadd.f32 %v3829_v54, %v3828_v33  ;;  %v3767_v38 = vpop.f32.mrb[86].mxu1  ;;  %v3831_v47 = vpop.f32.mrb[86].mxu0 }
 0x1a0   :  { %v3768_v37 = vpop.f32.mrb[87].mxu1  ;;  %v3832_v41 = vpop.f32.mrb[87].mxu0 }
 0x1a1   :  { %v2562_v0 = vadd.f32 %v3766_v43, %v5350_v18  ;;  %v3769_v60 = vadd.f32 %v3768_v37, %v3767_v38  ;;  %v3833_v45 = vadd.f32 %v3832_v41, %v3831_v47 }
 0x1a3   :  { %v5398_v48 = vadd.f32 %v3830_v52, %v2562_v0  ;;  %v2565_v5 = vadd.f32 %v3769_v60, %v5353_v22 }
 0x1a5   :  { %v5401_v49 = vadd.f32 %v3833_v45, %v2565_v5  ;;  %v3770_v8 = vpop.f32.mrb[88].mxu1  ;;  %v3834_v50 = vpop.f32.mrb[88].mxu0 }
 0x1a6   :  { %v3771_v20 = vpop.f32.mrb[89].mxu1  ;;  %v3835_v9 = vpop.f32.mrb[89].mxu0 }
 0x1a7   :  { %v3772_v3 = vadd.f32 %v3771_v20, %v3770_v8  ;;  %v3836_v57 = vadd.f32 %v3835_v9, %v3834_v50  ;;  %v3773_v28 = vpop.f32.mrb[90].mxu1  ;;  %v3837_v7 = vpop.f32.mrb[90].mxu0 }
 0x1a8   :  { %v3774_v53 = vpop.f32.mrb[91].mxu1  ;;  %v3838_v62 = vpop.f32.mrb[91].mxu0 }
 0x1a9   :  { %v2570_v18 = vadd.f32 %v3772_v3, %v5356_v39  ;;  %v3775_v63 = vadd.f32 %v3774_v53, %v3773_v28  ;;  %v3839_v61 = vadd.f32 %v3838_v62, %v3837_v7 }
 0x1ab   :  { %v5404_v1 = vadd.f32 %v3836_v57, %v2570_v18  ;;  %v2573_v22 = vadd.f32 %v3775_v63, %v5359_v40 }
 0x1ad   :  { %v5407_v2 = vadd.f32 %v3839_v61, %v2573_v22  ;;  %v3776_v26 = vpop.f32.mrb[92].mxu1  ;;  %v3840_v6 = vpop.f32.mrb[92].mxu0 }
 0x1ae   :  { %v3777_v13 = vpop.f32.mrb[93].mxu1  ;;  %v3841_v27 = vpop.f32.mrb[93].mxu0 }
 0x1af   :  { %v3778_v30 = vadd.f32 %v3777_v13, %v3776_v26  ;;  %v3842_v36 = vadd.f32 %v3841_v27, %v3840_v6  ;;  %v3779_v14 = vpop.f32.mrb[94].mxu1  ;;  %v3843_v32 = vpop.f32.mrb[94].mxu0 }
 0x1b0   :  { %v3780_v19 = vpop.f32.mrb[95].mxu1  ;;  %v3844_v17 = vpop.f32.mrb[95].mxu0 }
 0x1b1   :  { %v2578_v39 = vadd.f32 %v3778_v30, %v5362_v58  ;;  %v3781_v44 = vadd.f32 %v3780_v19, %v3779_v14  ;;  %v3845_v23 = vadd.f32 %v3844_v17, %v3843_v32 }
 0x1b3   :  { %v5410_v21 = vadd.f32 %v3842_v36, %v2578_v39  ;;  %v2581_v40 = vadd.f32 %v3781_v44, %v5365_v59 }
 0x1b5   :  { %v5413_v24 = vadd.f32 %v3845_v23, %v2581_v40  ;;  %v3782_v42 = vpop.f32.mrb[96].mxu1  ;;  %v3846_v25 = vpop.f32.mrb[96].mxu0 }
 0x1b6   :  { %v3783_v29 = vpop.f32.mrb[97].mxu1  ;;  %v3847_v46 = vpop.f32.mrb[97].mxu0 }
 0x1b7   :  { %v3784_v51 = vadd.f32 %v3783_v29, %v3782_v42  ;;  %v3848_v33 = vadd.f32 %v3847_v46, %v3846_v25  ;;  %v3785_v12 = vpop.f32.mrb[98].mxu1  ;;  %v3849_v54 = vpop.f32.mrb[98].mxu0 }
 0x1b8   :  { %v3786_v43 = vpop.f32.mrb[99].mxu1  ;;  %v3850_v52 = vpop.f32.mrb[99].mxu0 }
 0x1b9   :  { %v2586_v58 = vadd.f32 %v3784_v51, %v5368_v15  ;;  %v3787_v38 = vadd.f32 %v3786_v43, %v3785_v12  ;;  %v3851_v47 = vadd.f32 %v3850_v52, %v3849_v54 }
 0x1bb   :  { %v5416_v37 = vadd.f32 %v3848_v33, %v2586_v58  ;;  %v2589_v59 = vadd.f32 %v3787_v38, %v5371_v16 }
 0x1bd   :  { %v5419_v41 = vadd.f32 %v3851_v47, %v2589_v59  ;;  %v3788_v0 = vpop.f32.mrb[100].mxu1  ;;  %v3852_v60 = vpop.f32.mrb[100].mxu0 }
 0x1be   :  { %v3789_v45 = vpop.f32.mrb[101].mxu1  ;;  %v3853_v5 = vpop.f32.mrb[101].mxu0 }
 0x1bf   :  { %v3790_v8 = vadd.f32 %v3789_v45, %v3788_v0  ;;  %v3854_v50 = vadd.f32 %v3853_v5, %v3852_v60  ;;  %v3791_v20 = vpop.f32.mrb[102].mxu1  ;;  %v3855_v9 = vpop.f32.mrb[102].mxu0 }
 0x1c0   :  { %v3792_v3 = vpop.f32.mrb[103].mxu1  ;;  %v3856_v57 = vpop.f32.mrb[103].mxu0 }
 0x1c1   :  { %v2594_v15 = vadd.f32 %v3790_v8, %v5374_v34  ;;  %v3793_v28 = vadd.f32 %v3792_v3, %v3791_v20  ;;  %v3857_v7 = vadd.f32 %v3856_v57, %v3855_v9 }
 0x1c3   :  { %v5422_v53 = vadd.f32 %v3854_v50, %v2594_v15  ;;  %v2597_v16 = vadd.f32 %v3793_v28, %v5377_v35  ;;  %v5449_v15 = vld [vmem:[%s5524_s3] ss:$0 sm:$0xff] }
 0x1c5   :  { %v5425_v62 = vadd.f32 %v3857_v7, %v2597_v16  ;;  %v3794_v18 = vpop.f32.mrb[104].mxu1  ;;  %v3858_v63 = vpop.f32.mrb[104].mxu0 }
 0x1c6   :  { %v3795_v61 = vpop.f32.mrb[105].mxu1  ;;  %v3859_v22 = vpop.f32.mrb[105].mxu0 }
 0x1c7   :  { %v3796_v26 = vadd.f32 %v3795_v61, %v3794_v18  ;;  %v3860_v6 = vadd.f32 %v3859_v22, %v3858_v63  ;;  %v3797_v13 = vpop.f32.mrb[106].mxu1  ;;  %v3861_v27 = vpop.f32.mrb[106].mxu0 }
 0x1c8   :  { %v3798_v30 = vpop.f32.mrb[107].mxu1  ;;  %v3862_v36 = vpop.f32.mrb[107].mxu0 }
 0x1c9   :  { %v2602_v34 = vadd.f32 %v3796_v26, %v5380_v55  ;;  %v3799_v14 = vadd.f32 %v3798_v30, %v3797_v13  ;;  %v3863_v32 = vadd.f32 %v3862_v36, %v3861_v27 }
 0x1cb   :  { %v5428_v19 = vadd.f32 %v3860_v6, %v2602_v34  ;;  %v2605_v35 = vadd.f32 %v3799_v14, %v5383_v56 }
 0x1cd   :  { %v5431_v17 = vadd.f32 %v3863_v32, %v2605_v35  ;;  %v3800_v39 = vpop.f32.mrb[108].mxu1  ;;  %v3864_v44 = vpop.f32.mrb[108].mxu0 }
 0x1ce   :  { %v3801_v23 = vpop.f32.mrb[109].mxu1  ;;  %v3865_v40 = vpop.f32.mrb[109].mxu0 }
 0x1cf   :  { %v3802_v42 = vadd.f32 %v3801_v23, %v3800_v39  ;;  %v3866_v25 = vadd.f32 %v3865_v40, %v3864_v44  ;;  %v3803_v29 = vpop.f32.mrb[110].mxu1  ;;  %v3867_v46 = vpop.f32.mrb[110].mxu0 }
 0x1d0   :  { %v3804_v51 = vpop.f32.mrb[111].mxu1  ;;  %v3868_v33 = vpop.f32.mrb[111].mxu0 }
 0x1d1   :  { %v2610_v55 = vadd.f32 %v3802_v42, %v5386_v10  ;;  %v3805_v12 = vadd.f32 %v3804_v51, %v3803_v29  ;;  %v3869_v54 = vadd.f32 %v3868_v33, %v3867_v46 }
 0x1d3   :  { %v5434_v43 = vadd.f32 %v3866_v25, %v2610_v55  ;;  %v2613_v56 = vadd.f32 %v3805_v12, %v5389_v11  ;;  %v5443_v11 = vld [vmem:[%s5523_s2] ss:$0 sm:$0xff] }
 0x1d5   :  { %v5437_v52 = vadd.f32 %v3869_v54, %v2613_v56  ;;  %v3886_v58 = vpop.f32.mrb[112].mxu1  ;;  %v3950_v38 = vpop.f32.mrb[112].mxu0 }
 0x1d6   :  { %v3887_v47 = vpop.f32.mrb[113].mxu1  ;;  %v3951_v59 = vpop.f32.mrb[113].mxu0 }
 0x1d7   :  { %v3888_v0 = vadd.f32 %v3887_v47, %v3886_v58  ;;  %v3952_v60 = vadd.f32 %v3951_v59, %v3950_v38  ;;  %v3889_v45 = vpop.f32.mrb[114].mxu1  ;;  %v3953_v5 = vpop.f32.mrb[114].mxu0 }
 0x1d8   :  { %v3890_v8 = vpop.f32.mrb[115].mxu1  ;;  %v3954_v50 = vpop.f32.mrb[115].mxu0 }
 0x1d9   :  { %v2748_v10 = vadd.f32 %v3888_v0, %v5392_v4  ;;  %v3891_v20 = vadd.f32 %v3890_v8, %v3889_v45  ;;  %v3955_v9 = vadd.f32 %v3954_v50, %v3953_v5 }
 0x1db   :  { %v2845_v3 = vadd.f32 %v3952_v60, %v2748_v10  ;;  %v2751_v57 = vadd.f32 %v3891_v20, %v5395_v31 }
 0x1dd   :  { %v2914_v28 = vmul.f32 %v5443_v11, %v2845_v3  ;;  %v2848_v7 = vadd.f32 %v3955_v9, %v2751_v57  ;;  %v3892_v16 = vpop.f32.mrb[116].mxu1  ;;  %v3956_v4 = vpop.f32.mrb[116].mxu0 }
 0x1de   :  { %v3893_v18 = vpop.f32.mrb[117].mxu1  ;;  %v3957_v63 = vpop.f32.mrb[117].mxu0 }
 0x1df   :  { %v2937_v61 = vadd.f32 %v5449_v15, %v2914_v28  ;;  %v2915_v22 = vmul.f32 %v5443_v11, %v2848_v7  ;;  %v3894_v26 = vadd.f32 %v3893_v18, %v3892_v16  ;;  %v3958_v6 = vadd.f32 %v3957_v63, %v3956_v4  ;;  %v3895_v13 = vpop.f32.mrb[118].mxu1  ;;  %v3959_v31 = vpop.f32.mrb[118].mxu0 }
 0x1e0   :  { %v3896_v27 = vpop.f32.mrb[119].mxu1  ;;  %v3960_v30 = vpop.f32.mrb[119].mxu0 }
 0x1e1   :  { %v2938_v36 = vadd.f32 %v5449_v15, %v2915_v22  ;;  %v2756_v34 = vadd.f32 %v3894_v26, %v5398_v48  ;;  %v3897_v14 = vadd.f32 %v3896_v27, %v3895_v13  ;;  %v3961_v32 = vadd.f32 %v3960_v30, %v3959_v31 }
 0x1e2   :  { %v2953_v35 = vmax.f32 %v2937_v61, 0.0 }
 0x1e3   :  { %v2954_v39 = vmax.f32 %v2938_v36, 0.0  ;;  %v2853_v44 = vadd.f32 %v3958_v6, %v2756_v34  ;;  %v2759_v23 = vadd.f32 %v3897_v14, %v5401_v49 }
 0x1e5   :  { %v3378_v40 = vpack.c.bf16 %v2954_v39, %v2953_v35  ;;  %v2916_v42 = vmul.f32 %v5443_v11, %v2853_v44  ;;  %v2856_v25 = vadd.f32 %v3961_v32, %v2759_v23  ;;  %v3898_v29 = vpop.f32.mrb[120].mxu1  ;;  %v3962_v46 = vpop.f32.mrb[120].mxu0 }
 0x1e6   :  { %v3899_v51 = vpop.f32.mrb[121].mxu1  ;;  %v3963_v33 = vpop.f32.mrb[121].mxu0 }
 0x1e7   :  { %3379 = vst [vmem:[%s5525_s4] sm:$0xff] %v3378_v40   ;;  %v2939_v48 = vadd.f32 %v5449_v15, %v2916_v42  ;;  %v2917_v55 = vmul.f32 %v5443_v11, %v2856_v25  ;;  %v3900_v12 = vadd.f32 %v3899_v51, %v3898_v29  ;;  %v3964_v54 = vadd.f32 %v3963_v33, %v3962_v46  ;;  %v3901_v56 = vpop.f32.mrb[122].mxu1  ;;  %v3965_v49 = vpop.f32.mrb[122].mxu0 }
 0x1e8   :  { %v3902_v58 = vpop.f32.mrb[123].mxu1  ;;  %v3966_v38 = vpop.f32.mrb[123].mxu0 }
 0x1e9   :  { %v2940_v47 = vadd.f32 %v5449_v15, %v2917_v55  ;;  %v2764_v59 = vadd.f32 %v3900_v12, %v5404_v1  ;;  %v3903_v0 = vadd.f32 %v3902_v58, %v3901_v56  ;;  %v3967_v60 = vadd.f32 %v3966_v38, %v3965_v49 }
 0x1ea   :  { %v2955_v45 = vmax.f32 %v2939_v48, 0.0 }
 0x1eb   :  { %v2956_v5 = vmax.f32 %v2940_v47, 0.0  ;;  %v2861_v8 = vadd.f32 %v3964_v54, %v2764_v59  ;;  %v2767_v50 = vadd.f32 %v3903_v0, %v5407_v2 }
 0x1ed   :  { %v3383_v10 = vpack.c.bf16 %v2956_v5, %v2955_v45  ;;  %v2918_v20 = vmul.f32 %v5443_v11, %v2861_v8  ;;  %v2864_v9 = vadd.f32 %v3967_v60, %v2767_v50  ;;  %v3904_v3 = vpop.f32.mrb[124].mxu1  ;;  %v3968_v57 = vpop.f32.mrb[124].mxu0 }
 0x1ee   :  { %v3905_v28 = vpop.f32.mrb[125].mxu1  ;;  %v3969_v7 = vpop.f32.mrb[125].mxu0 }
 0x1ef   :  { %3415 = vst [vmem:[%s5525_s4 + $0x8] sm:$0xff] %v3383_v10   ;;  %v2941_v1 = vadd.f32 %v5449_v15, %v2918_v20  ;;  %v2919_v16 = vmul.f32 %v5443_v11, %v2864_v9  ;;  %v3906_v4 = vadd.f32 %v3905_v28, %v3904_v3  ;;  %v3970_v18 = vadd.f32 %v3969_v7, %v3968_v57  ;;  %v3907_v63 = vpop.f32.mrb[126].mxu1  ;;  %v3971_v2 = vpop.f32.mrb[126].mxu0 }
 0x1f0   :  { %v3908_v61 = vpop.f32.mrb[127].mxu1  ;;  %v3972_v22 = vpop.f32.mrb[127].mxu0 }
 0x1f1   :  { %v2942_v26 = vadd.f32 %v5449_v15, %v2919_v16  ;;  %v2772_v6 = vadd.f32 %v3906_v4, %v5410_v21  ;;  %v3909_v13 = vadd.f32 %v3908_v61, %v3907_v63  ;;  %v3973_v31 = vadd.f32 %v3972_v22, %v3971_v2 }
 0x1f2   :  { %v2957_v27 = vmax.f32 %v2941_v1, 0.0 }
 0x1f3   :  { %v2958_v30 = vmax.f32 %v2942_v26, 0.0  ;;  %v2869_v36 = vadd.f32 %v3970_v18, %v2772_v6  ;;  %v2775_v34 = vadd.f32 %v3909_v13, %v5413_v24 }
 0x1f5   :  { %v3388_v14 = vpack.c.bf16 %v2958_v30, %v2957_v27  ;;  %v2920_v32 = vmul.f32 %v5443_v11, %v2869_v36  ;;  %v2872_v35 = vadd.f32 %v3973_v31, %v2775_v34  ;;  %v3910_v39 = vpop.f32.mrb[128].mxu1  ;;  %v3974_v44 = vpop.f32.mrb[128].mxu0 }
 0x1f6   :  { %v3911_v23 = vpop.f32.mrb[129].mxu1  ;;  %v3975_v40 = vpop.f32.mrb[129].mxu0 }
 0x1f7   :  { %3416 = vst [vmem:[%s5525_s4 + $0x10] sm:$0xff] %v3388_v14   ;;  %v2943_v21 = vadd.f32 %v5449_v15, %v2920_v32  ;;  %v2921_v42 = vmul.f32 %v5443_v11, %v2872_v35  ;;  %v3912_v25 = vadd.f32 %v3911_v23, %v3910_v39  ;;  %v3976_v29 = vadd.f32 %v3975_v40, %v3974_v44  ;;  %v3913_v46 = vpop.f32.mrb[130].mxu1  ;;  %v3977_v24 = vpop.f32.mrb[130].mxu0 }
 0x1f8   :  { %v3914_v51 = vpop.f32.mrb[131].mxu1  ;;  %v3978_v33 = vpop.f32.mrb[131].mxu0 }
 0x1f9   :  { %v2944_v48 = vadd.f32 %v5449_v15, %v2921_v42  ;;  %v2780_v55 = vadd.f32 %v3912_v25, %v5416_v37  ;;  %v3915_v12 = vadd.f32 %v3914_v51, %v3913_v46  ;;  %v3979_v54 = vadd.f32 %v3978_v33, %v3977_v24 }
 0x1fa   :  { %v2959_v56 = vmax.f32 %v2943_v21, 0.0 }
 0x1fb   :  { %v2960_v49 = vmax.f32 %v2944_v48, 0.0  ;;  %v2877_v58 = vadd.f32 %v3976_v29, %v2780_v55  ;;  %v2783_v38 = vadd.f32 %v3915_v12, %v5419_v41 }
 0x1fd   :  { %v3393_v47 = vpack.c.bf16 %v2960_v49, %v2959_v56  ;;  %v2922_v59 = vmul.f32 %v5443_v11, %v2877_v58  ;;  %v2880_v0 = vadd.f32 %v3979_v54, %v2783_v38  ;;  %v3916_v60 = vpop.f32.mrb[132].mxu1  ;;  %v3980_v45 = vpop.f32.mrb[132].mxu0 }
 0x1fe   :  { %v3917_v5 = vpop.f32.mrb[133].mxu1  ;;  %v3981_v8 = vpop.f32.mrb[133].mxu0 }
 0x1ff   :  { %3417 = vst [vmem:[%s5525_s4 + $0x18] sm:$0xff] %v3393_v47   ;;  %v2945_v37 = vadd.f32 %v5449_v15, %v2922_v59  ;;  %v2923_v50 = vmul.f32 %v5443_v11, %v2880_v0  ;;  %v3918_v10 = vadd.f32 %v3917_v5, %v3916_v60  ;;  %v3982_v20 = vadd.f32 %v3981_v8, %v3980_v45  ;;  %v3919_v9 = vpop.f32.mrb[134].mxu1  ;;  %v3983_v41 = vpop.f32.mrb[134].mxu0 }
 0x200   :  { %v3920_v3 = vpop.f32.mrb[135].mxu1  ;;  %v3984_v57 = vpop.f32.mrb[135].mxu0 }
 0x201   :  { %v2946_v28 = vadd.f32 %v5449_v15, %v2923_v50  ;;  %v2788_v7 = vadd.f32 %v3918_v10, %v5422_v53  ;;  %v3921_v1 = vadd.f32 %v3920_v3, %v3919_v9  ;;  %v3985_v16 = vadd.f32 %v3984_v57, %v3983_v41 }
 0x202   :  { %v2961_v4 = vmax.f32 %v2945_v37, 0.0 }
 0x203   :  { %v2962_v18 = vmax.f32 %v2946_v28, 0.0  ;;  %v2885_v63 = vadd.f32 %v3982_v20, %v2788_v7  ;;  %v2791_v2 = vadd.f32 %v3921_v1, %v5425_v62 }
 0x205   :  { %v3398_v61 = vpack.c.bf16 %v2962_v18, %v2961_v4  ;;  %v2924_v22 = vmul.f32 %v5443_v11, %v2885_v63  ;;  %v2888_v26 = vadd.f32 %v3985_v16, %v2791_v2  ;;  %v3922_v6 = vpop.f32.mrb[136].mxu1  ;;  %v3986_v13 = vpop.f32.mrb[136].mxu0 }
 0x206   :  { %v3923_v31 = vpop.f32.mrb[137].mxu1  ;;  %v3987_v27 = vpop.f32.mrb[137].mxu0 }
 0x207   :  { %3418 = vst [vmem:[%s5525_s4 + $0x20] sm:$0xff] %v3398_v61   ;;  %v2947_v53 = vadd.f32 %v5449_v15, %v2924_v22  ;;  %v2925_v30 = vmul.f32 %v5443_v11, %v2888_v26  ;;  %v3924_v36 = vadd.f32 %v3923_v31, %v3922_v6  ;;  %v3988_v34 = vadd.f32 %v3987_v27, %v3986_v13  ;;  %v3925_v14 = vpop.f32.mrb[138].mxu1  ;;  %v3989_v62 = vpop.f32.mrb[138].mxu0 }
 0x208   :  { %v3926_v32 = vpop.f32.mrb[139].mxu1  ;;  %v3990_v35 = vpop.f32.mrb[139].mxu0 }
 0x209   :  { %v2948_v39 = vadd.f32 %v5449_v15, %v2925_v30  ;;  %v2796_v44 = vadd.f32 %v3924_v36, %v5428_v19  ;;  %v3927_v23 = vadd.f32 %v3926_v32, %v3925_v14  ;;  %v3991_v40 = vadd.f32 %v3990_v35, %v3989_v62 }
 0x20a   :  { %v2963_v21 = vmax.f32 %v2947_v53, 0.0 }
 0x20b   :  { %v2964_v42 = vmax.f32 %v2948_v39, 0.0  ;;  %v2893_v25 = vadd.f32 %v3988_v34, %v2796_v44  ;;  %v2799_v29 = vadd.f32 %v3927_v23, %v5431_v17 }
 0x20d   :  { %v3403_v46 = vpack.c.bf16 %v2964_v42, %v2963_v21  ;;  %v2926_v24 = vmul.f32 %v5443_v11, %v2893_v25  ;;  %v2896_v51 = vadd.f32 %v3991_v40, %v2799_v29  ;;  %v3928_v33 = vpop.f32.mrb[140].mxu1  ;;  %v3992_v48 = vpop.f32.mrb[140].mxu0 }
 0x20e   :  { %v3929_v55 = vpop.f32.mrb[141].mxu1  ;;  %v3993_v12 = vpop.f32.mrb[141].mxu0 }
 0x20f   :  { %3419 = vst [vmem:[%s5525_s4 + $0x28] sm:$0xff] %v3403_v46   ;;  %v2949_v19 = vadd.f32 %v5449_v15, %v2926_v24  ;;  %v2927_v54 = vmul.f32 %v5443_v11, %v2896_v51  ;;  %v3930_v56 = vadd.f32 %v3929_v55, %v3928_v33  ;;  %v3994_v49 = vadd.f32 %v3993_v12, %v3992_v48  ;;  %v3931_v58 = vpop.f32.mrb[142].mxu1  ;;  %v3995_v17 = vpop.f32.mrb[142].mxu0 }
 0x210   :  { %v3932_v38 = vpop.f32.mrb[143].mxu1  ;;  %v3996_v47 = vpop.f32.mrb[143].mxu0 }
 0x211   :  { %v2950_v59 = vadd.f32 %v5449_v15, %v2927_v54  ;;  %v2804_v0 = vadd.f32 %v3930_v56, %v5434_v43  ;;  %v3933_v60 = vadd.f32 %v3932_v38, %v3931_v58  ;;  %v3997_v45 = vadd.f32 %v3996_v47, %v3995_v17 }
 0x212   :  { %v2965_v5 = vmax.f32 %v2949_v19, 0.0 }
 0x213   :  { %v2966_v8 = vmax.f32 %v2950_v59, 0.0  ;;  %v2901_v37 = vadd.f32 %v3994_v49, %v2804_v0  ;;  %v2807_v50 = vadd.f32 %v3933_v60, %v5437_v52 }
 0x215   :  { %v3408_v10 = vpack.c.bf16 %v2966_v8, %v2965_v5  ;;  %v2928_v20 = vmul.f32 %v5443_v11, %v2901_v37  ;;  %v2904_v9 = vadd.f32 %v3997_v45, %v2807_v50 }
 0x217   :  { %3420 = vst [vmem:[%s5525_s4 + $0x30] sm:$0xff] %v3408_v10   ;;  %v2951_v41 = vadd.f32 %v5449_v15, %v2928_v20  ;;  %v2929_v3 = vmul.f32 %v5443_v11, %v2904_v9 }
 0x219   :  { %v2952_v43 = vadd.f32 %v5449_v15, %v2929_v3  ;;  %v2967_v57 = vmax.f32 %v2951_v41, 0.0 }
 0x21b   :  { %v2968_v28 = vmax.f32 %v2952_v43, 0.0 }
 0x21d   :  { %v3413_v7 = vpack.c.bf16 %v2968_v28, %v2967_v57 }
 0x21f   :  { %3421 = vst [vmem:[%s5525_s4 + $0x38] sm:$0xff] %v3413_v7  }

// kernel: encoder_cnn_forward.14
= control target key start
LH: loop header
LB: loop body
LE: loop exit
PB: predicated region body
PF: predicated region fallthrough
CT: control target
= control target key end

     0   :  { %s331_s1 = inlined_call_operand.vmem [shape: bf16[128,128], index: 1, kind: input, shape index: {}]   ;;  %s332_s0 = inlined_call_operand.vmem [shape: bf16[32,128], index: 0, kind: input, shape index: {}]   ;;  %s333_s2 = inlined_call_operand.vmem [shape: f32[1,128], index: 2, kind: input, shape index: {}]   ;;  %s334_s3 = inlined_call_operand.vmem [shape: f32[1,128], index: 3, kind: input, shape index: {}]   ;;  %s335_s4 = inlined_call_operand.vmem [shape: bf16[32,128], index: 4, kind: output, shape index: {}]  }
   0x1   :  { %v254_v0 = vld [vmem:[%s331_s1] sm:$0xff]   ;;  %v255_v1 = vld [vmem:[%s331_s1 + $0x8] sm:$0xff]   ;;  %v256_v2 = vld [vmem:[%s331_s1 + $0x10] sm:$0xff]  }
   0x2   :  { %234 = vmatprep.subr.bf16.mxu0 %v254_v0  ;;  %v257_v3 = vld [vmem:[%s331_s1 + $0x18] sm:$0xff]   ;;  %v262_v4 = vld [vmem:[%s332_s0] sm:$0xff]   ;;  %v259_v6 = vld [vmem:[%s331_s1 + $0x28] sm:$0xff]  }
   0x3   :  { %235 = vmatpush3.bf16.msra.mxu0 %v254_v0  ;;  %250 = vmatprep.mubr.bf16.mxu0 %v262_v4  ;;  %v258_v5 = vld [vmem:[%s331_s1 + $0x20] sm:$0xff]   ;;  %v260_v7 = vld [vmem:[%s331_s1 + $0x30] sm:$0xff]   ;;  %v261_v8 = vld [vmem:[%s331_s1 + $0x38] sm:$0xff]  }
   0x4   :  { %236 = vmatprep.subr.bf16.mxu0 %v255_v1  ;;  %v263_v9 = vld [vmem:[%s332_s0 + $0x8] sm:$0xff]   ;;  %v203_v10 = vld [vmem:[%s333_s2] ss:$0 sm:$0xff] }
   0x5   :  { %v204_v14 = vld [vmem:[%s334_s3] ss:$0 sm:$0xff] }
   0x7   :  { %237 = vmatpush3.bf16.msra.mxu0 %v255_v1 }
   0x8   :  { %238 = vmatprep.subr.bf16.mxu0 %v256_v2 }
   0xb   :  { %239 = vmatpush3.bf16.msra.mxu0 %v256_v2 }
   0xc   :  { %240 = vmatprep.subr.bf16.mxu0 %v257_v3 }
   0xf   :  { %241 = vmatpush3.bf16.msra.mxu0 %v257_v3 }
  0x10   :  { %242 = vmatprep.subr.bf16.mxu0 %v258_v5 }
  0x13   :  { %243 = vmatpush3.bf16.msra.mxu0 %v258_v5 }
  0x14   :  { %244 = vmatprep.subr.bf16.mxu0 %v259_v6 }
  0x17   :  { %245 = vmatpush3.bf16.msra.mxu0 %v259_v6 }
  0x18   :  { %246 = vmatprep.subr.bf16.mxu0 %v260_v7 }
  0x1b   :  { %247 = vmatpush3.bf16.msra.mxu0 %v260_v7 }
  0x1c   :  { %248 = vmatprep.subr.bf16.mxu0 %v261_v8 }
  0x1f   :  { %249 = vmatpush3.bf16.msra.mxu0 %v261_v8 }
  0x22   :  { %251 = vmatmul.mubr.bf16.vlgmr.msra.gmra.mrb[0].mxu0 %v263_v9 }
  0xf5   :  { %v252_v11 = vpop.f32.mrb[0].mxu0 }
  0xf6   :  { %v156_v12 = vmul.f32 %v252_v11, %v203_v10  ;;  %v132_v13 = vpop.f32.mrb[1].mxu0 }
  0xf7   :  { %v154_v15 = vmul.f32 %v203_v10, %v132_v13  ;;  %v253_v16 = vpop.f32.mrb[2].mxu0 }
  0xf8   :  { %v157_v17 = vmul.f32 %v253_v16, %v203_v10  ;;  %v135_v18 = vpop.f32.mrb[3].mxu0  ;;  %v167_v20 = vadd.f32 %v204_v14, %v156_v12 }
  0xf9   :  { %v155_v19 = vmul.f32 %v203_v10, %v135_v18  ;;  %v165_v22 = vadd.f32 %v204_v14, %v154_v15 }
  0xfa   :  { %v168_v21 = vadd.f32 %v204_v14, %v157_v17 }
  0xfb   :  { %v166_v23 = vadd.f32 %v204_v14, %v155_v19 }
  0xfc   :  { %v221_v24 = vpack.c.bf16 %v168_v21, %v167_v20 }
  0xfd   :  { %v216_v25 = vpack.c.bf16 %v166_v23, %v165_v22 }
  0xfe   :  { %223 = vst [vmem:[%s335_s4 + $0x8] sm:$0xff] %v221_v24  }
  0xff   :  { %217 = vst [vmem:[%s335_s4] sm:$0xff] %v216_v25  }

// kernel: encoder_cnn_forward.17
= control target key start
LH: loop header
LB: loop body
LE: loop exit
PB: predicated region body
PF: predicated region fallthrough
CT: control target
= control target key end

     0   :  { %s370_s1 = inlined_call_operand.vmem [shape: bf16[128,128], index: 1, kind: input, shape index: {}]   ;;  %s371_s0 = inlined_call_operand.vmem [shape: bf16[32,128], index: 0, kind: input, shape index: {}]   ;;  %s372_s2 = inlined_call_operand.vmem [shape: f32[1,128], index: 2, kind: input, shape index: {}]   ;;  %s373_s4 = inlined_call_operand.vmem [shape: bf16[32,128], index: 4, kind: input, shape index: {}]   ;;  %s374_s3 = inlined_call_operand.vmem [shape: f32[1,128], index: 3, kind: input, shape index: {}]   ;;  %s375_s5 = inlined_call_operand.vmem [shape: bf16[32,128], index: 5, kind: output, shape index: {}]  }
   0x1   :  { %v282_v0 = vld [vmem:[%s370_s1] sm:$0xff]   ;;  %v283_v1 = vld [vmem:[%s370_s1 + $0x8] sm:$0xff]   ;;  %v284_v2 = vld [vmem:[%s370_s1 + $0x10] sm:$0xff]  }
   0x2   :  { %262 = vmatprep.subr.bf16.mxu0 %v282_v0  ;;  %v285_v3 = vld [vmem:[%s370_s1 + $0x18] sm:$0xff]   ;;  %v290_v4 = vld [vmem:[%s371_s0] sm:$0xff]   ;;  %v287_v6 = vld [vmem:[%s370_s1 + $0x28] sm:$0xff]  }
   0x3   :  { %263 = vmatpush3.bf16.msra.mxu0 %v282_v0  ;;  %278 = vmatprep.mubr.bf16.mxu0 %v290_v4  ;;  %v286_v5 = vld [vmem:[%s370_s1 + $0x20] sm:$0xff]   ;;  %v288_v7 = vld [vmem:[%s370_s1 + $0x30] sm:$0xff]   ;;  %v289_v8 = vld [vmem:[%s370_s1 + $0x38] sm:$0xff]  }
   0x4   :  { %264 = vmatprep.subr.bf16.mxu0 %v283_v1  ;;  %v291_v9 = vld [vmem:[%s371_s0 + $0x8] sm:$0xff]   ;;  %v222_v10 = vld [vmem:[%s372_s2] ss:$0 sm:$0xff] }
   0x5   :  { %v250_v11 = vld [vmem:[%s373_s4 + $0x8] sm:$0xff]   ;;  %v233_v12 = vld [vmem:[%s373_s4] sm:$0xff]  }
   0x6   :  { %v223_v14 = vld [vmem:[%s374_s3] ss:$0 sm:$0xff]  ;;  %v238_v16 = vunpack.c.l.bf16 %v250_v11  ;;  %v234_v19 = vunpack.c.l.bf16 %v233_v12  ;;  %v239_v23 = vunpack.c.h.bf16 %v250_v11  ;;  %v235_v27 = vunpack.c.h.bf16 %v233_v12 }
   0x7   :  { %265 = vmatpush3.bf16.msra.mxu0 %v283_v1 }
   0x8   :  { %266 = vmatprep.subr.bf16.mxu0 %v284_v2 }
   0xb   :  { %267 = vmatpush3.bf16.msra.mxu0 %v284_v2 }
   0xc   :  { %268 = vmatprep.subr.bf16.mxu0 %v285_v3 }
   0xf   :  { %269 = vmatpush3.bf16.msra.mxu0 %v285_v3 }
  0x10   :  { %270 = vmatprep.subr.bf16.mxu0 %v286_v5 }
  0x13   :  { %271 = vmatpush3.bf16.msra.mxu0 %v286_v5 }
  0x14   :  { %272 = vmatprep.subr.bf16.mxu0 %v287_v6 }
  0x17   :  { %273 = vmatpush3.bf16.msra.mxu0 %v287_v6 }
  0x18   :  { %274 = vmatprep.subr.bf16.mxu0 %v288_v7 }
  0x1b   :  { %275 = vmatpush3.bf16.msra.mxu0 %v288_v7 }
  0x1c   :  { %276 = vmatprep.subr.bf16.mxu0 %v289_v8 }
  0x1f   :  { %277 = vmatpush3.bf16.msra.mxu0 %v289_v8 }
  0x22   :  { %279 = vmatmul.mubr.bf16.vlgmr.msra.gmra.mrb[0].mxu0 %v291_v9 }
  0xf5   :  { %v280_v13 = vpop.f32.mrb[0].mxu0 }
  0xf6   :  { %v159_v15 = vmul.f32 %v280_v13, %v222_v10  ;;  %v135_v17 = vpop.f32.mrb[1].mxu0 }
  0xf7   :  { %v157_v18 = vmul.f32 %v222_v10, %v135_v17  ;;  %v281_v20 = vpop.f32.mrb[2].mxu0 }
  0xf8   :  { %v170_v21 = vadd.f32 %v223_v14, %v159_v15  ;;  %v160_v22 = vmul.f32 %v281_v20, %v222_v10  ;;  %v138_v24 = vpop.f32.mrb[3].mxu0 }
  0xf9   :  { %v168_v25 = vadd.f32 %v223_v14, %v157_v18  ;;  %v158_v26 = vmul.f32 %v222_v10, %v138_v24 }
  0xfa   :  { %v182_v28 = vadd.f32 %v238_v16, %v170_v21  ;;  %v171_v29 = vadd.f32 %v223_v14, %v160_v22 }
  0xfb   :  { %v180_v30 = vadd.f32 %v234_v19, %v168_v25  ;;  %v169_v31 = vadd.f32 %v223_v14, %v158_v26 }
  0xfc   :  { %v183_v32 = vadd.f32 %v239_v23, %v171_v29  ;;  %v186_v34 = vmax.f32 %v182_v28, 0.0 }
  0xfd   :  { %v181_v33 = vadd.f32 %v235_v27, %v169_v31  ;;  %v184_v36 = vmax.f32 %v180_v30, 0.0 }
  0xfe   :  { %v187_v35 = vmax.f32 %v183_v32, 0.0 }
  0xff   :  { %v185_v37 = vmax.f32 %v181_v33, 0.0 }
 0x100   :  { %v248_v38 = vpack.c.bf16 %v187_v35, %v186_v34 }
 0x101   :  { %v243_v39 = vpack.c.bf16 %v185_v37, %v184_v36 }
 0x102   :  { %251 = vst [vmem:[%s375_s5 + $0x8] sm:$0xff] %v248_v38  }
 0x103   :  { %244 = vst [vmem:[%s375_s5] sm:$0xff] %v243_v39  }

// kernel: encoder_cnn_forward.16
= control target key start
LH: loop header
LB: loop body
LE: loop exit
PB: predicated region body
PF: predicated region fallthrough
CT: control target
= control target key end

     0   :  { %s1659_s1 = inlined_call_operand.vmem [shape: bf16[1152,128], index: 1, kind: input, shape index: {}]   ;;  %s1660_s0 = inlined_call_operand.vmem [shape: bf16[32,1152], index: 0, kind: input, shape index: {}]   ;;  %s1661_s2 = inlined_call_operand.vmem [shape: f32[1,128], index: 2, kind: input, shape index: {}]   ;;  %s1662_s3 = inlined_call_operand.vmem [shape: f32[1,128], index: 3, kind: input, shape index: {}]   ;;  %s1663_s4 = inlined_call_operand.vmem [shape: bf16[32,128], index: 4, kind: output, shape index: {}]  }
   0x1   :  { %v1254_v0 = vld [vmem:[%s1659_s1 + $0x40] sm:$0xff]   ;;  %v1258_v4 = vld [vmem:[%s1659_s1 + $0x48] sm:$0xff]   ;;  %v1262_v8 = vld [vmem:[%s1659_s1 + $0x50] sm:$0xff]  }
   0x2   :  { %v1255_v1 = vld [vmem:[%s1659_s1 + $0xc0] sm:$0xff]   ;;  %1112 = vmatprep.subr.bf16.mxu0 %v1254_v0  ;;  %v1259_v5 = vld [vmem:[%s1659_s1 + $0xc8] sm:$0xff]   ;;  %v1263_v9 = vld [vmem:[%s1659_s1 + $0xd0] sm:$0xff]  }
   0x3   :  { %v1256_v2 = vld [vmem:[%s1659_s1] sm:$0xff]   ;;  %1140 = vmatprep.subr.bf16.mxu1 %v1255_v1  ;;  %v1260_v6 = vld [vmem:[%s1659_s1 + $0x8] sm:$0xff]   ;;  %v1264_v10 = vld [vmem:[%s1659_s1 + $0x10] sm:$0xff]  }
   0x4   :  { %v1257_v3 = vld [vmem:[%s1659_s1 + $0x80] sm:$0xff]   ;;  %1113 = vmatpush3.bf16.msra.mxu0 %v1256_v2  ;;  %v1261_v7 = vld [vmem:[%s1659_s1 + $0x88] sm:$0xff]   ;;  %v1265_v11 = vld [vmem:[%s1659_s1 + $0x90] sm:$0xff]  }
   0x5   :  { %1141 = vmatpush3.bf16.msra.mxu1 %v1257_v3  ;;  %1114 = vmatprep.subr.bf16.mxu0 %v1258_v4  ;;  %v1266_v12 = vld [vmem:[%s1659_s1 + $0x58] sm:$0xff]   ;;  %v1270_v16 = vld [vmem:[%s1659_s1 + $0x60] sm:$0xff]   ;;  %v1274_v20 = vld [vmem:[%s1659_s1 + $0x68] sm:$0xff]  }
   0x6   :  { %1142 = vmatprep.subr.bf16.mxu1 %v1259_v5  ;;  %v1267_v13 = vld [vmem:[%s1659_s1 + $0xd8] sm:$0xff]   ;;  %v1271_v17 = vld [vmem:[%s1659_s1 + $0xe0] sm:$0xff]   ;;  %v1275_v21 = vld [vmem:[%s1659_s1 + $0xe8] sm:$0xff]  }
   0x7   :  { %v1268_v14 = vld [vmem:[%s1659_s1 + $0x18] sm:$0xff]   ;;  %v1272_v18 = vld [vmem:[%s1659_s1 + $0x20] sm:$0xff]   ;;  %v1276_v22 = vld [vmem:[%s1659_s1 + $0x28] sm:$0xff]  }
   0x8   :  { %1115 = vmatpush3.bf16.msra.mxu0 %v1260_v6  ;;  %v1269_v15 = vld [vmem:[%s1659_s1 + $0x98] sm:$0xff]   ;;  %v1273_v19 = vld [vmem:[%s1659_s1 + $0xa0] sm:$0xff]   ;;  %v1277_v23 = vld [vmem:[%s1659_s1 + $0xa8] sm:$0xff]  }
   0x9   :  { %1143 = vmatpush3.bf16.msra.mxu1 %v1261_v7  ;;  %1116 = vmatprep.subr.bf16.mxu0 %v1262_v8  ;;  %v1278_v24 = vld [vmem:[%s1659_s1 + $0x70] sm:$0xff]   ;;  %v1282_v28 = vld [vmem:[%s1659_s1 + $0x78] sm:$0xff]   ;;  %v1286_v32 = vld [vmem:[%s1660_s0] ss:$36 sps:$4 sm:$0xff]  }
   0xa   :  { %1144 = vmatprep.subr.bf16.mxu1 %v1263_v9  ;;  %v1279_v25 = vld [vmem:[%s1659_s1 + $0xf0] sm:$0xff]   ;;  %v1283_v29 = vld [vmem:[%s1659_s1 + $0xf8] sm:$0xff]   ;;  %v1288_v33 = vld [vmem:[%s1660_s0 + $0x4] ss:$36 sps:$4 sm:$0xff]  }
   0xb   :  { %v1280_v26 = vld [vmem:[%s1659_s1 + $0x30] sm:$0xff]   ;;  %v1284_v30 = vld [vmem:[%s1659_s1 + $0x38] sm:$0xff]   ;;  %v1289_v34 = vld [vmem:[%s1660_s0 + $0x8] ss:$36 sps:$4 sm:$0xff]   ;;  %738 = vmatprep.mubr.bf16.mxu0 %v1288_v33 }
   0xc   :  { %1117 = vmatpush3.bf16.msra.mxu0 %v1264_v10  ;;  %v1281_v27 = vld [vmem:[%s1659_s1 + $0xb0] sm:$0xff]   ;;  %v1285_v31 = vld [vmem:[%s1659_s1 + $0xb8] sm:$0xff]   ;;  %v1292_v36 = vld [vmem:[%s1659_s1 + $0x140] sm:$0xff]  }
   0xd   :  { %1145 = vmatpush3.bf16.msra.mxu1 %v1265_v11  ;;  %1118 = vmatprep.subr.bf16.mxu0 %v1266_v12  ;;  %v1291_v35 = vld [vmem:[%s1660_s0 + $0xc] ss:$36 sps:$4 sm:$0xff]   ;;  %v1293_v37 = vld [vmem:[%s1659_s1 + $0x100] sm:$0xff]   ;;  %v1304_v48 = vld [vmem:[%s1659_s1 + $0x158] sm:$0xff]  }
   0xe   :  { %1146 = vmatprep.subr.bf16.mxu1 %v1267_v13  ;;  %787 = vmatprep.mubr.bf16.mxu1 %v1291_v35  ;;  %v1294_v38 = vld [vmem:[%s1659_s1 + $0x1c0] sm:$0xff]   ;;  %v1296_v40 = vld [vmem:[%s1659_s1 + $0x148] sm:$0xff]   ;;  %v1300_v44 = vld [vmem:[%s1659_s1 + $0x150] sm:$0xff]  }
   0xf   :  { %v1295_v39 = vld [vmem:[%s1659_s1 + $0x180] sm:$0xff]   ;;  %v1297_v41 = vld [vmem:[%s1659_s1 + $0x108] sm:$0xff]   ;;  %v1301_v45 = vld [vmem:[%s1659_s1 + $0x110] sm:$0xff]  }
  0x10   :  { %1119 = vmatpush3.bf16.msra.mxu0 %v1268_v14  ;;  %v1298_v42 = vld [vmem:[%s1659_s1 + $0x1c8] sm:$0xff]   ;;  %v1302_v46 = vld [vmem:[%s1659_s1 + $0x1d0] sm:$0xff]   ;;  %v1305_v49 = vld [vmem:[%s1659_s1 + $0x118] sm:$0xff]  }
  0x11   :  { %1147 = vmatpush3.bf16.msra.mxu1 %v1269_v15  ;;  %1120 = vmatprep.subr.bf16.mxu0 %v1270_v16  ;;  %v1299_v43 = vld [vmem:[%s1659_s1 + $0x188] sm:$0xff]   ;;  %v1303_v47 = vld [vmem:[%s1659_s1 + $0x190] sm:$0xff]   ;;  %v1306_v50 = vld [vmem:[%s1659_s1 + $0x1d8] sm:$0xff]  }
  0x12   :  { %1148 = vmatprep.subr.bf16.mxu1 %v1271_v17  ;;  %v1307_v51 = vld [vmem:[%s1659_s1 + $0x198] sm:$0xff]   ;;  %v1308_v52 = vld [vmem:[%s1659_s1 + $0x160] sm:$0xff]   ;;  %v1312_v56 = vld [vmem:[%s1659_s1 + $0x168] sm:$0xff]  }
  0x13   :  { %v1309_v53 = vld [vmem:[%s1659_s1 + $0x120] sm:$0xff]   ;;  %v1313_v57 = vld [vmem:[%s1660_s0 + $0x4c] ss:$36 sps:$4 sm:$0xff]   ;;  %v1315_v58 = vld [vmem:[%s1660_s0 + $0x54] ss:$36 sps:$4 sm:$0xff]  }
  0x14   :  { %1121 = vmatpush3.bf16.msra.mxu0 %v1272_v18  ;;  %v1310_v54 = vld [vmem:[%s1659_s1 + $0x1e0] sm:$0xff]   ;;  %v1317_v59 = vld [vmem:[%s1659_s1 + $0x128] sm:$0xff]   ;;  %v1319_v61 = vld [vmem:[%s1660_s0 + $0x50] ss:$36 sps:$4 sm:$0xff]  }
  0x15   :  { %1149 = vmatpush3.bf16.msra.mxu1 %v1273_v19  ;;  %1122 = vmatprep.subr.bf16.mxu0 %v1274_v20  ;;  %v1311_v55 = vld [vmem:[%s1659_s1 + $0x1a0] sm:$0xff]   ;;  %v1318_v60 = vld [vmem:[%s1660_s0 + $0x48] ss:$36 sps:$4 sm:$0xff]   ;;  %v1322_v0 = vld [vmem:[%s1659_s1 + $0x170] sm:$0xff]  }
  0x16   :  { %1150 = vmatprep.subr.bf16.mxu1 %v1275_v21  ;;  %v1320_v62 = vld [vmem:[%s1659_s1 + $0x1e8] sm:$0xff]   ;;  %v1323_v1 = vld [vmem:[%s1659_s1 + $0x130] sm:$0xff]   ;;  %v1326_v4 = vld [vmem:[%s1659_s1 + $0x178] sm:$0xff]  }
  0x17   :  { %v1321_v63 = vld [vmem:[%s1659_s1 + $0x1a8] sm:$0xff]   ;;  %v1324_v2 = vld [vmem:[%s1659_s1 + $0x1f0] sm:$0xff]   ;;  %v1327_v5 = vld [vmem:[%s1659_s1 + $0x138] sm:$0xff]  }
  0x18   :  { %1123 = vmatpush3.bf16.msra.mxu0 %v1276_v22  ;;  %v1325_v3 = vld [vmem:[%s1659_s1 + $0x1b0] sm:$0xff]   ;;  %v1328_v6 = vld [vmem:[%s1659_s1 + $0x1f8] sm:$0xff]   ;;  %v1333_v10 = vld [vmem:[%s1659_s1 + $0x200] sm:$0xff]  }
  0x19   :  { %1151 = vmatpush3.bf16.msra.mxu1 %v1277_v23  ;;  %1124 = vmatprep.subr.bf16.mxu0 %v1278_v24  ;;  %v1329_v7 = vld [vmem:[%s1660_s0 + $0x10] ss:$36 sps:$4 sm:$0xff]   ;;  %v1332_v9 = vld [vmem:[%s1659_s1 + $0x1b8] sm:$0xff]   ;;  %v1337_v13 = vld [vmem:[%s1659_s1 + $0x208] sm:$0xff]  }
  0x1a   :  { %1152 = vmatprep.subr.bf16.mxu1 %v1279_v25  ;;  %v1331_v8 = vld [vmem:[%s1660_s0 + $0x14] ss:$36 sps:$4 sm:$0xff]   ;;  %v1336_v12 = vld [vmem:[%s1660_s0 + $0x1c] ss:$36 sps:$4 sm:$0xff]   ;;  %v1342_v17 = vld [vmem:[%s1660_s0 + $0x64] ss:$36 sps:$4 sm:$0xff]  }
  0x1b   :  { %v1334_v11 = vld [vmem:[%s1660_s0 + $0x18] ss:$36 sps:$4 sm:$0xff]   ;;  %v1341_v16 = vld [vmem:[%s1659_s1 + $0x210] sm:$0xff]   ;;  %v1344_v18 = vld [vmem:[%s1660_s0 + $0x60] ss:$36 sps:$4 sm:$0xff]  }
  0x1c   :  { %1125 = vmatpush3.bf16.msra.mxu0 %v1280_v26  ;;  %v1338_v14 = vld [vmem:[%s1660_s0 + $0x5c] ss:$36 sps:$4 sm:$0xff]   ;;  %v1347_v22 = vld [vmem:[%s1659_s1 + $0x228] sm:$0xff]   ;;  %v1348_v23 = vld [vmem:[%s1659_s1 + $0x230] sm:$0xff]  }
  0x1d   :  { %1153 = vmatpush3.bf16.msra.mxu1 %v1281_v27  ;;  %1126 = vmatprep.subr.bf16.mxu0 %v1282_v28  ;;  %v1340_v15 = vld [vmem:[%s1660_s0 + $0x58] ss:$36 sps:$4 sm:$0xff]   ;;  %v1346_v20 = vld [vmem:[%s1659_s1 + $0x220] sm:$0xff]   ;;  %v1351_v25 = vld [vmem:[%s1660_s0 + $0x68] ss:$36 sps:$4 sm:$0xff]  }
  0x1e   :  { %1154 = vmatprep.subr.bf16.mxu1 %v1283_v29  ;;  %v1345_v19 = vld [vmem:[%s1659_s1 + $0x218] sm:$0xff]   ;;  %v1350_v21 = vld [vmem:[%s1660_s0 + $0x20] ss:$36 sps:$4 sm:$0xff]  }
  0x1f   :  { %v1349_v24 = vld [vmem:[%s1659_s1 + $0x238] sm:$0xff]  }
  0x20   :  { %1127 = vmatpush3.bf16.msra.mxu0 %v1284_v30 }
  0x21   :  { %1155 = vmatpush3.bf16.msra.mxu1 %v1285_v31  ;;  %1168 = vmatprep.subr.bf16.mxu0 %v1292_v36 }
  0x22   :  { %1196 = vmatprep.subr.bf16.mxu1 %v1294_v38 }
  0x23   :  { %739 = vmatmul.mubr.bf16.vlgmr.msra.gmra.mrb[0].mxu0 %v1286_v32 }
  0x24   :  { %788 = vmatmul.mubr.bf16.vlgmr.msra.gmra.mrb[0].mxu1 %v1289_v34  ;;  %1169 = vmatpush3.bf16.msra.mxu0 %v1293_v37 }
  0x25   :  { %1197 = vmatpush3.bf16.msra.mxu1 %v1295_v39  ;;  %1170 = vmatprep.subr.bf16.mxu0 %v1296_v40 }
  0x26   :  { %1198 = vmatprep.subr.bf16.mxu1 %v1298_v42  ;;  %746 = vmatprep.mubr.bf16.mxu0 %v1313_v57 }
  0x27   :  { %795 = vmatprep.mubr.bf16.mxu1 %v1315_v58 }
  0x28   :  { %1171 = vmatpush3.bf16.msra.mxu0 %v1297_v41 }
  0x29   :  { %1199 = vmatpush3.bf16.msra.mxu1 %v1299_v43  ;;  %1172 = vmatprep.subr.bf16.mxu0 %v1300_v44 }
  0x2a   :  { %1200 = vmatprep.subr.bf16.mxu1 %v1302_v46 }
  0x2b   :  { %747 = vmatmul.mubr.bf16.gmra.mrb[4].mxu0 %v1318_v60 }
  0x2c   :  { %1173 = vmatpush3.bf16.msra.mxu0 %v1301_v45  ;;  %796 = vmatmul.mubr.bf16.gmra.mrb[4].mxu1 %v1319_v61 }
  0x2d   :  { %1201 = vmatpush3.bf16.msra.mxu1 %v1303_v47  ;;  %1174 = vmatprep.subr.bf16.mxu0 %v1304_v48 }
  0x2e   :  { %1202 = vmatprep.subr.bf16.mxu1 %v1306_v50  ;;  %836 = vmatprep.mubr.bf16.mxu0 %v1331_v8 }
  0x2f   :  { %885 = vmatprep.mubr.bf16.mxu1 %v1336_v12 }
  0x30   :  { %1175 = vmatpush3.bf16.msra.mxu0 %v1305_v49 }
  0x31   :  { %1203 = vmatpush3.bf16.msra.mxu1 %v1307_v51  ;;  %1176 = vmatprep.subr.bf16.mxu0 %v1308_v52 }
  0x32   :  { %1204 = vmatprep.subr.bf16.mxu1 %v1310_v54 }
  0x34   :  { %1177 = vmatpush3.bf16.msra.mxu0 %v1309_v53 }
  0x35   :  { %1205 = vmatpush3.bf16.msra.mxu1 %v1311_v55  ;;  %1178 = vmatprep.subr.bf16.mxu0 %v1312_v56 }
  0x36   :  { %1206 = vmatprep.subr.bf16.mxu1 %v1320_v62 }
  0x38   :  { %1179 = vmatpush3.bf16.msra.mxu0 %v1317_v59 }
  0x39   :  { %1207 = vmatpush3.bf16.msra.mxu1 %v1321_v63  ;;  %1180 = vmatprep.subr.bf16.mxu0 %v1322_v0 }
  0x3a   :  { %1208 = vmatprep.subr.bf16.mxu1 %v1324_v2 }
  0x3c   :  { %1181 = vmatpush3.bf16.msra.mxu0 %v1323_v1 }
  0x3d   :  { %1209 = vmatpush3.bf16.msra.mxu1 %v1325_v3  ;;  %1182 = vmatprep.subr.bf16.mxu0 %v1326_v4 }
  0x3e   :  { %1210 = vmatprep.subr.bf16.mxu1 %v1328_v6 }
  0x40   :  { %1183 = vmatpush3.bf16.msra.mxu0 %v1327_v5 }
  0x41   :  { %1211 = vmatpush3.bf16.msra.mxu1 %v1332_v9  ;;  %1234 = vmatprep.subr.bf16.mxu0 %v1333_v10 }
  0x43   :  { %837 = vmatmul.mubr.bf16.vlgmr.msra.gmra.mrb[8].mxu0 %v1329_v7 }
  0x44   :  { %1235 = vmatpush3.bf16.msra.mxu0 %v1333_v10  ;;  %886 = vmatmul.mubr.bf16.vlgmr.msra.gmra.mrb[8].mxu1 %v1334_v11 }
  0x45   :  { %1236 = vmatprep.subr.bf16.mxu0 %v1337_v13  ;;  %844 = vmatprep.mubr.bf16.mxu0 %v1338_v14 }
  0x46   :  { %893 = vmatprep.mubr.bf16.mxu1 %v1342_v17 }
  0x48   :  { %1237 = vmatpush3.bf16.msra.mxu0 %v1337_v13 }
  0x49   :  { %1238 = vmatprep.subr.bf16.mxu0 %v1341_v16 }
  0x4b   :  { %845 = vmatmul.mubr.bf16.gmra.mrb[12].mxu0 %v1340_v15 }
  0x4c   :  { %1239 = vmatpush3.bf16.msra.mxu0 %v1341_v16  ;;  %894 = vmatmul.mubr.bf16.gmra.mrb[12].mxu1 %v1344_v18 }
  0x4d   :  { %1240 = vmatprep.subr.bf16.mxu0 %v1345_v19  ;;  %1250 = vmatprep.mubr.bf16.mxu0 %v1350_v21 }
  0x50   :  { %1241 = vmatpush3.bf16.msra.mxu0 %v1345_v19 }
  0x51   :  { %1242 = vmatprep.subr.bf16.mxu0 %v1346_v20 }
  0x54   :  { %1243 = vmatpush3.bf16.msra.mxu0 %v1346_v20 }
  0x55   :  { %1244 = vmatprep.subr.bf16.mxu0 %v1347_v22 }
  0x58   :  { %1245 = vmatpush3.bf16.msra.mxu0 %v1347_v22 }
  0x59   :  { %1246 = vmatprep.subr.bf16.mxu0 %v1348_v23 }
  0x5c   :  { %1247 = vmatpush3.bf16.msra.mxu0 %v1348_v23  ;;  %v1091_v23 = vld [vmem:[%s1661_s2] ss:$0 sm:$0xff] }
  0x5d   :  { %1248 = vmatprep.subr.bf16.mxu0 %v1349_v24 }
  0x60   :  { %1249 = vmatpush3.bf16.msra.mxu0 %v1349_v24 }
  0x63   :  { %1251 = vmatmul.mubr.bf16.vlgmr.msra.gmra.mrb[16].mxu0 %v1351_v25 }
  0xf6   :  { %v1128_v26 = vpop.f32.mrb[0].mxu0 }
  0xf7   :  { %v1156_v27 = vpop.f32.mrb[0].mxu1  ;;  %v1129_v28 = vpop.f32.mrb[1].mxu0 }
  0xf8   :  { %v1130_v29 = vadd.f32 %v1129_v28, %v1128_v26  ;;  %v1157_v30 = vpop.f32.mrb[1].mxu1  ;;  %v1131_v31 = vpop.f32.mrb[2].mxu0  ;;  %v1092_v26 = vld [vmem:[%s1662_s3] ss:$0 sm:$0xff] }
  0xf9   :  { %v1158_v32 = vadd.f32 %v1157_v30, %v1156_v27  ;;  %v1159_v33 = vpop.f32.mrb[2].mxu1  ;;  %v1132_v34 = vpop.f32.mrb[3].mxu0 }
  0xfa   :  { %v1133_v35 = vadd.f32 %v1132_v34, %v1131_v31  ;;  %v1160_v36 = vpop.f32.mrb[3].mxu1 }
  0xfb   :  { %v790_v37 = vadd.f32 %v1158_v32, %v1130_v29  ;;  %v1161_v38 = vadd.f32 %v1160_v36, %v1159_v33 }
  0xfd   :  { %v793_v39 = vadd.f32 %v1161_v38, %v1133_v35 }
  0xfe   :  { %v1134_v40 = vpop.f32.mrb[4].mxu0 }
  0xff   :  { %v1162_v41 = vpop.f32.mrb[4].mxu1  ;;  %v1135_v42 = vpop.f32.mrb[5].mxu0 }
 0x100   :  { %v1163_v43 = vpop.f32.mrb[5].mxu1  ;;  %v1136_v44 = vadd.f32 %v1135_v42, %v1134_v40  ;;  %v1137_v46 = vpop.f32.mrb[6].mxu0 }
 0x101   :  { %v1164_v45 = vadd.f32 %v1163_v43, %v1162_v41  ;;  %v1165_v47 = vpop.f32.mrb[6].mxu1  ;;  %v1138_v48 = vpop.f32.mrb[7].mxu0 }
 0x102   :  { %v1166_v49 = vpop.f32.mrb[7].mxu1  ;;  %v1139_v51 = vadd.f32 %v1138_v48, %v1137_v46 }
 0x103   :  { %v798_v50 = vadd.f32 %v1164_v45, %v1136_v44  ;;  %v1167_v52 = vadd.f32 %v1166_v49, %v1165_v47 }
 0x105   :  { %v801_v53 = vadd.f32 %v1167_v52, %v1139_v51 }
 0x116   :  { %v1184_v54 = vpop.f32.mrb[8].mxu0 }
 0x117   :  { %v1185_v55 = vpop.f32.mrb[9].mxu0  ;;  %v1212_v58 = vpop.f32.mrb[8].mxu1 }
 0x118   :  { %v1186_v56 = vadd.f32 %v1185_v55, %v1184_v54  ;;  %v1187_v57 = vpop.f32.mrb[10].mxu0  ;;  %v1213_v62 = vpop.f32.mrb[9].mxu1 }
 0x119   :  { %v1188_v59 = vpop.f32.mrb[11].mxu0  ;;  %v1214_v63 = vadd.f32 %v1213_v62, %v1212_v58  ;;  %v1215_v0 = vpop.f32.mrb[10].mxu1 }
 0x11a   :  { %v839_v60 = vadd.f32 %v1186_v56, %v790_v37  ;;  %v1189_v61 = vadd.f32 %v1188_v59, %v1187_v57  ;;  %v1216_v2 = vpop.f32.mrb[11].mxu1 }
 0x11b   :  { %v1217_v3 = vadd.f32 %v1216_v2, %v1215_v0 }
 0x11c   :  { %v842_v1 = vadd.f32 %v1189_v61, %v793_v39  ;;  %v888_v4 = vadd.f32 %v1214_v63, %v839_v60 }
 0x11e   :  { %v1190_v5 = vpop.f32.mrb[12].mxu0  ;;  %v891_v7 = vadd.f32 %v1217_v3, %v842_v1 }
 0x11f   :  { %v1191_v6 = vpop.f32.mrb[13].mxu0  ;;  %v1218_v10 = vpop.f32.mrb[12].mxu1 }
 0x120   :  { %v1192_v8 = vadd.f32 %v1191_v6, %v1190_v5  ;;  %v1193_v9 = vpop.f32.mrb[14].mxu0  ;;  %v1219_v14 = vpop.f32.mrb[13].mxu1 }
 0x121   :  { %v1194_v11 = vpop.f32.mrb[15].mxu0  ;;  %v1220_v15 = vadd.f32 %v1219_v14, %v1218_v10  ;;  %v1221_v16 = vpop.f32.mrb[14].mxu1 }
 0x122   :  { %v847_v12 = vadd.f32 %v1192_v8, %v798_v50  ;;  %v1195_v13 = vadd.f32 %v1194_v11, %v1193_v9  ;;  %v1222_v18 = vpop.f32.mrb[15].mxu1 }
 0x123   :  { %v1223_v19 = vadd.f32 %v1222_v18, %v1221_v16 }
 0x124   :  { %v850_v17 = vadd.f32 %v1195_v13, %v801_v53  ;;  %v896_v20 = vadd.f32 %v1220_v15, %v847_v12 }
 0x126   :  { %v899_v21 = vadd.f32 %v1223_v19, %v850_v17 }
 0x136   :  { %v1252_v22 = vpop.f32.mrb[16].mxu0 }
 0x137   :  { %v945_v24 = vadd.f32 %v1252_v22, %v896_v20  ;;  %v936_v25 = vpop.f32.mrb[17].mxu0 }
 0x138   :  { %v937_v27 = vadd.f32 %v936_v25, %v888_v4  ;;  %v1253_v28 = vpop.f32.mrb[18].mxu0 }
 0x139   :  { %v960_v29 = vmul.f32 %v1091_v23, %v945_v24  ;;  %v948_v30 = vadd.f32 %v1253_v28, %v899_v21  ;;  %v939_v31 = vpop.f32.mrb[19].mxu0 }
 0x13a   :  { %v958_v32 = vmul.f32 %v1091_v23, %v937_v27  ;;  %v940_v33 = vadd.f32 %v939_v31, %v891_v7 }
 0x13b   :  { %v971_v34 = vadd.f32 %v1092_v26, %v960_v29  ;;  %v961_v35 = vmul.f32 %v1091_v23, %v948_v30 }
 0x13c   :  { %v969_v36 = vadd.f32 %v1092_v26, %v958_v32  ;;  %v959_v37 = vmul.f32 %v1091_v23, %v940_v33 }
 0x13d   :  { %v972_v38 = vadd.f32 %v1092_v26, %v961_v35  ;;  %v975_v40 = vmax.f32 %v971_v34, 0.0 }
 0x13e   :  { %v970_v39 = vadd.f32 %v1092_v26, %v959_v37  ;;  %v973_v42 = vmax.f32 %v969_v36, 0.0 }
 0x13f   :  { %v976_v41 = vmax.f32 %v972_v38, 0.0 }
 0x140   :  { %v974_v43 = vmax.f32 %v970_v39, 0.0 }
 0x141   :  { %v1109_v44 = vpack.c.bf16 %v976_v41, %v975_v40 }
 0x142   :  { %v1104_v45 = vpack.c.bf16 %v974_v43, %v973_v42 }
 0x143   :  { %1111 = vst [vmem:[%s1663_s4 + $0x8] sm:$0xff] %v1109_v44  }
 0x144   :  { %1105 = vst [vmem:[%s1663_s4] sm:$0xff] %v1104_v45  }

</bundles_post_ra>
